<compile_context>
chip_gen: v7x
topology: tpu7x:2x2x1
jax: 0.10.0
libtpu: 0.0.40
codegen_flags: <defaults>
</compile_context>

<pallas_src>
import jax
import jax.numpy as jnp
from jax.experimental import pallas as pl
from jax.experimental.pallas import tpu as pltpu


# ----------------------------------------------------------------------------
# Fused kernel: BiGRU encoder + word attention + sentence attention + classifier
# ----------------------------------------------------------------------------
def text_classifier_kernel(emb_ref,              # (T*S, E) f32, time-major rows
                           len_ref,              # (1, S, 1) int32 word counts
                           wih_ref, bih_ref,     # (E, 6H), (1, 6H): [fwd | bwd]
                           whhf_ref, bhhf_ref,   # (H, 3H), (1, 3H)
                           whhb_ref, bhhb_ref,   # (H, 3H), (1, 3H)
                           ww_ref, bw_ref, uw_ref,   # (2H, A), (1, A), (1, A)
                           ws_ref, bs_ref, us_ref,   # (2H, A), (1, A), (1, A)
                           wo_ref, bo_ref,           # (2H, C), (1, C)
                           out_ref):                 # (1, C) f32 probabilities
    f32, bf16 = jnp.float32, jnp.bfloat16
    TS, _ = emb_ref.shape
    S = len_ref.shape[1]
    T = TS // S
    H = whhf_ref.shape[0]
    H3 = 3 * H
    NEG = -1e30

    # ---- validity mask built in-kernel from lengths: valid3[t, s, 0] = t < len[s]
    lens = len_ref[...]                                             # (1, S, 1) int32
    t_iota = jax.lax.broadcasted_iota(jnp.int32, (T, S, 1), 0)
    valid3 = (t_iota < lens).astype(f32)                            # (T, S, 1)

    # ---- hoisted BiGRU input projection: one matmul for all timesteps, both dirs
    wih = wih_ref[...].astype(bf16)                                 # (E, 6H)
    gi_all = jnp.dot(emb_ref[...].astype(bf16), wih,
                     preferred_element_type=f32) + bih_ref[...]     # (T*S, 6H)
    gi_f3 = gi_all[:, 0:H3].reshape(T, S, H3)                       # (T, S, 3H) fwd
    gi_b3 = gi_all[:, H3:2 * H3].reshape(T, S, H3)                  # (T, S, 3H) bwd

    whh_f = whhf_ref[...].astype(bf16)
    whh_b = whhb_ref[...].astype(bf16)
    bhh_f = bhhf_ref[...]
    bhh_b = bhhb_ref[...]

    def gru_gates(gi, gh, h_prev):
        # PyTorch GRU: r,z,n gate order; b_hh of the n-gate stays inside r*(...)
        r = jax.nn.sigmoid(gi[:, 0:H] + gh[:, 0:H])
        z = jax.nn.sigmoid(gi[:, H:2 * H] + gh[:, H:2 * H])
        n = jnp.tanh(gi[:, 2 * H:3 * H] + r * gh[:, 2 * H:3 * H])
        return (1.0 - z) * n + z * h_prev

    hf = jnp.zeros((S, H), f32)
    hb = jnp.zeros((S, H), f32)
    outs_f = [None] * T
    outs_b = [None] * T
    # Interleaved fwd/bwd recurrence, fully unrolled (T static & tiny): two
    # independent dependency chains per iteration so MXU/EUP/VPU latencies overlap.
    for i in range(T):
        tb = T - 1 - i
        m_f = valid3[i]                                             # (S, 1)
        m_b = valid3[tb]                                            # (S, 1)
        gh_f = jnp.dot(hf.astype(bf16), whh_f,
                       preferred_element_type=f32) + bhh_f          # (S, 3H)
        gh_b = jnp.dot(hb.astype(bf16), whh_b,
                       preferred_element_type=f32) + bhh_b
        hf_new = gru_gates(gi_f3[i], gh_f, hf)
        hb_new = gru_gates(gi_b3[tb], gh_b, hb)
        hf = m_f * hf_new + (1.0 - m_f) * hf    # pack_padded: state frozen past length
        hb = m_b * hb_new + (1.0 - m_b) * hb
        outs_f[i] = m_f * hf                    # pad_packed: zeros at padded steps
        outs_b[tb] = m_b * hb

    hf_flat = jnp.concatenate(outs_f, axis=0)                       # (T*S, H) t-major
    hb_flat = jnp.concatenate(outs_b, axis=0)                       # (T*S, H)
    hf_tsd = hf_flat.reshape(T, S, H)
    hb_tsd = hb_flat.reshape(T, S, H)

    # ---- word-level attention, batched over all (sentence, timestep) rows.
    # h = [h_fwd | h_bwd]; the lane-dim concat is avoided by splitting w_* rows.
    ww_f = ww_ref[0:H, :].astype(bf16)
    ww_b = ww_ref[H:2 * H, :].astype(bf16)
    u = jnp.tanh(jnp.dot(hf_flat.astype(bf16), ww_f, preferred_element_type=f32)
                 + jnp.dot(hb_flat.astype(bf16), ww_b, preferred_element_type=f32)
                 + bw_ref[...])                                     # (T*S, A)
    # N=1 score matmul -> VPU sum-of-products instead of a wasted MXU pass
    sc = jnp.sum(u * uw_ref[...], axis=1, keepdims=True)            # (T*S, 1)
    sc3 = sc.reshape(T, S, 1)
    sc3 = jnp.where(valid3 > 0.0, sc3, NEG)
    sc3 = sc3 - jnp.max(sc3, axis=0, keepdims=True)
    e = jnp.exp(sc3) * valid3
    den = jnp.sum(e, axis=0, keepdims=True)                         # (1, S, 1)
    # epsilon guard against zero-length sentences; approx recip runs on the EUP
    alpha3 = e * pl.reciprocal(den + 1e-30, approx=True)            # (T, S, 1)
    sv_f = jnp.sum(alpha3 * hf_tsd, axis=0)                         # (S, H)
    sv_b = jnp.sum(alpha3 * hb_tsd, axis=0)                         # (S, H)

    # ---- sentence-level attention
    ws_f = ws_ref[0:H, :].astype(bf16)
    ws_b = ws_ref[H:2 * H, :].astype(bf16)
    u2 = jnp.tanh(jnp.dot(sv_f.astype(bf16), ws_f, preferred_element_type=f32)
                  + jnp.dot(sv_b.astype(bf16), ws_b, preferred_element_type=f32)
                  + bs_ref[...])                                    # (S, A)
    sc2 = jnp.sum(u2 * us_ref[...], axis=1, keepdims=True)          # (S, 1)
    sc2 = sc2 - jnp.max(sc2, axis=0, keepdims=True)
    e2 = jnp.exp(sc2)
    alpha2 = e2 * pl.reciprocal(jnp.sum(e2, axis=0, keepdims=True) + 1e-30,
                                approx=True)                        # (S, 1)
    doc_f = jnp.sum(alpha2 * sv_f, axis=0, keepdims=True)           # (1, H)
    doc_b = jnp.sum(alpha2 * sv_b, axis=0, keepdims=True)           # (1, H)

    # ---- output Linear + softmax(dim=1)  (exact divide for the final probs)
    wo_f = wo_ref[0:H, :].astype(bf16)
    wo_b = wo_ref[H:2 * H, :].astype(bf16)
    logits = (jnp.dot(doc_f.astype(bf16), wo_f, preferred_element_type=f32)
              + jnp.dot(doc_b.astype(bf16), wo_b, preferred_element_type=f32)
              + bo_ref[...])                                        # (1, C)
    lg = logits - jnp.max(logits, axis=1, keepdims=True)
    el = jnp.exp(lg)
    out_ref[...] = el / jnp.sum(el, axis=1, keepdims=True)


# ----------------------------------------------------------------------------
# Wrapper
# ----------------------------------------------------------------------------
_VMEM_SPEC = pl.BlockSpec(memory_space=pltpu.MemorySpace.VMEM)


@jax.jit
def text_classifier_forward(embeddings, lengths, p):
    """embeddings: (S, T, E) zero-padded, lengths: (S,) int32.
       Returns (probs (1, C), predicted class index)."""
    S, T, E = embeddings.shape
    C = p["w_out"].shape[1]

    # time-major flattened rows (t*S + s) for the hoisted input projection
    emb_flat = jnp.transpose(embeddings, (1, 0, 2)).reshape(T * S, E)
    lens = lengths.astype(jnp.int32).reshape(1, S, 1)

    # fuse fwd/bwd input-projection weights so the hoist is a single matmul
    wih = jnp.concatenate([p["wih_f"], p["wih_b"]], axis=1)         # (E, 6H)
    bih = jnp.concatenate([p["bih_f"], p["bih_b"]], axis=1)         # (1, 6H)
    uw_row = p["u_word"].reshape(1, -1)                             # (1, A)
    us_row = p["u_sent"].reshape(1, -1)                             # (1, A)

    probs = pl.pallas_call(
        text_classifier_kernel,
        out_shape=jax.ShapeDtypeStruct((1, C), jnp.float32),
        in_specs=[_VMEM_SPEC] * 16,
        out_specs=_VMEM_SPEC,
    )(emb_flat, lens,
      wih, bih,
      p["whh_f"], p["bhh_f"],
      p["whh_b"], p["bhh_b"],
      p["w_word"], p["b_word"], uw_row,
      p["w_sent"], p["b_sent"], us_row,
      p["w_out"], p["b_out"])

    pred = jnp.argmax(probs, axis=1)[0]
    return probs, pred


# ----------------------------------------------------------------------------
# Pure-JAX reference (same math & bf16-operand policy) to validate the lowering
# ----------------------------------------------------------------------------
def reference_forward(embeddings, lengths, p):
    S, T, E = embeddings.shape
    H = p["whh_f"].shape[0]
    f32, bf16 = jnp.float32, jnp.bfloat16
    valid = (jnp.arange(T)[None, :] < lengths[:, None]).astype(f32)   # (S, T)

    def dot(a, b):
        return jnp.dot(a.astype(bf16), b.astype(bf16), preferred_element_type=f32)

    def cell(x, h, wih, whh, bih, bhh):
        gi = dot(x, wih) + bih
        gh = dot(h, whh) + bhh
        r = jax.nn.sigmoid(gi[:, :H] + gh[:, :H])
        z = jax.nn.sigmoid(gi[:, H:2 * H] + gh[:, H:2 * H])
        n = jnp.tanh(gi[:, 2 * H:] + r * gh[:, 2 * H:])
        return (1.0 - z) * n + z * h

    hf = jnp.zeros((S, H), f32)
    hb = jnp.zeros((S, H), f32)
    outs_f, outs_b = [], [None] * T
    for t in range(T):
        m = valid[:, t:t + 1]
        hf = m * cell(embeddings[:, t], hf, p["wih_f"], p["whh_f"], p["bih_f"], p["bhh_f"]) + (1 - m) * hf
        outs_f.append(m * hf)
    for t in range(T - 1, -1, -1):
        m = valid[:, t:t + 1]
        hb = m * cell(embeddings[:, t], hb, p["wih_b"], p["whh_b"], p["bih_b"], p["bhh_b"]) + (1 - m) * hb
        outs_b[t] = m * hb
    hiddens = jnp.concatenate([jnp.stack(outs_f, 1), jnp.stack(outs_b, 1)], axis=-1)  # (S,T,2H)

    sent = []
    for s in range(S):
        h_s = hiddens[s]
        m_s = valid[s][:, None]
        u = jnp.tanh(dot(h_s, p["w_word"]) + p["b_word"])
        sc = jnp.sum(u * p["u_word"].reshape(1, -1), axis=1, keepdims=True)
        sc = jnp.where(m_s > 0.0, sc, -1e30)
        sc = sc - sc.max(axis=0, keepdims=True)
        e = jnp.exp(sc) * m_s
        a = e / (e.sum(axis=0, keepdims=True) + 1e-30)
        sent.append(jnp.sum(a * h_s, axis=0, keepdims=True))
    sv = jnp.concatenate(sent, axis=0)
    u2 = jnp.tanh(dot(sv, p["w_sent"]) + p["b_sent"])
    sc2 = jnp.sum(u2 * p["u_sent"].reshape(1, -1), axis=1, keepdims=True)
    sc2 = sc2 - sc2.max(axis=0, keepdims=True)
    e2 = jnp.exp(sc2)
    a2 = e2 / e2.sum(axis=0, keepdims=True)
    doc = jnp.sum(a2 * sv, axis=0, keepdims=True)
    logits = dot(doc, p["w_out"]) + p["b_out"]
    return jax.nn.softmax(logits, axis=1)


# ----------------------------------------------------------------------------
# Deterministic parameter init (shapes implied by the module __init__)
# ----------------------------------------------------------------------------
def init_params(key, E, H, A, C):
    D = 2 * H
    ks = jax.random.split(key, 16)

    def u(k, shape, scale):
        return jax.random.uniform(k, shape, jnp.float32, -scale, scale)

    s_h, s_d, s_a = 1.0 / (H ** 0.5), 1.0 / (D ** 0.5), 1.0 / (A ** 0.5)
    return dict(
        # BiGRU (PyTorch gate order r,z,n; weights stored transposed)
        wih_f=u(ks[0], (E, 3 * H), s_h), whh_f=u(ks[1], (H, 3 * H), s_h),
        bih_f=u(ks[2], (1, 3 * H), s_h), bhh_f=u(ks[3], (1, 3 * H), s_h),
        wih_b=u(ks[4], (E, 3 * H), s_h), whh_b=u(ks[5], (H, 3 * H), s_h),
        bih_b=u(ks[6], (1, 3 * H), s_h), bhh_b=u(ks[7], (1, 3 * H), s_h),
        # HAN word-level attention
        w_word=u(ks[8], (D, A), s_d), b_word=u(ks[9], (1, A), s_d),
        u_word=u(ks[10], (A, 1), s_a),
        # HAN sentence-level attention
        w_sent=u(ks[11], (D, A), s_d), b_sent=u(ks[12], (1, A), s_d),
        u_sent=u(ks[13], (A, 1), s_a),
        # output Linear
        w_out=u(ks[14], (D, C), s_d), b_out=u(ks[15], (1, C), s_d),
    )


if __name__ == "__main__":
    # Small, module-consistent shapes:
    #   S sentences, T max words/sentence, E word2vec dim,
    #   H hidden1_dim, A hidden2_dim, C n_class
    S, T, E, H, A, C = 4, 8, 32, 32, 32, 2

    key = jax.random.PRNGKey(0)
    k_emb, k_par = jax.random.split(key)

    lengths = jnp.array([8, 5, 7, 3], dtype=jnp.int32)
    valid = (jnp.arange(T)[None, :] < lengths[:, None]).astype(jnp.float32)
    embeddings = jax.random.normal(k_emb, (S, T, E), jnp.float32) * valid[:, :, None]

    params = init_params(k_par, E, H, A, C)

    probs, pred = text_classifier_forward(embeddings, lengths, params)
    probs = jax.block_until_ready(probs)

    probs_ref = reference_forward(embeddings, lengths, params)
    if not bool(jnp.allclose(probs, probs_ref, rtol=2e-3, atol=2e-3)):
        raise AssertionError(f"Pallas output {probs} != reference {probs_ref}")

    print("KERNEL_OK")
</pallas_src>

<mosaic_0001>
module attributes {stable_mosaic.version = 11 : i64} {
  func.func @text_classifier_kernel(%arg0: memref<32x32xf32, #tpu.memory_space<vmem>>, %arg1: memref<1x4x1xi32, #tpu.memory_space<vmem>>, %arg2: memref<32x192xf32, #tpu.memory_space<vmem>>, %arg3: memref<1x192xf32, #tpu.memory_space<vmem>>, %arg4: memref<32x96xf32, #tpu.memory_space<vmem>>, %arg5: memref<1x96xf32, #tpu.memory_space<vmem>>, %arg6: memref<32x96xf32, #tpu.memory_space<vmem>>, %arg7: memref<1x96xf32, #tpu.memory_space<vmem>>, %arg8: memref<64x32xf32, #tpu.memory_space<vmem>>, %arg9: memref<1x32xf32, #tpu.memory_space<vmem>>, %arg10: memref<1x32xf32, #tpu.memory_space<vmem>>, %arg11: memref<64x32xf32, #tpu.memory_space<vmem>>, %arg12: memref<1x32xf32, #tpu.memory_space<vmem>>, %arg13: memref<1x32xf32, #tpu.memory_space<vmem>>, %arg14: memref<64x2xf32, #tpu.memory_space<vmem>>, %arg15: memref<1x2xf32, #tpu.memory_space<vmem>>, %arg16: memref<1x2xf32, #tpu.memory_space<vmem>>) attributes {dimension_semantics = [], scalar_prefetch = 0 : i64, scratch_operands = 0 : i64, tpu.core_type = #tpu.core_type<tc>} {
    %c0 = arith.constant 0 : index
    %c0_0 = arith.constant 0 : index
    %c0_1 = arith.constant 0 : index
    %0 = vector.load %arg1[%c0, %c0_0, %c0_1] : memref<1x4x1xi32, #tpu.memory_space<vmem>>, vector<1x4x1xi32>
    %1 = tpu.iota {dimensions = array<i32: 0>} : vector<8x4x1xi32>
    %2 = vector.broadcast %0 : vector<1x4x1xi32> to vector<8x4x1xi32>
    %3 = arith.cmpi slt, %1, %2 : vector<8x4x1xi32>
    %4 = arith.extui %3 : vector<8x4x1xi1> to vector<8x4x1xi32>
    %5 = arith.sitofp %4 : vector<8x4x1xi32> to vector<8x4x1xf32>
    %c0_2 = arith.constant 0 : index
    %c0_3 = arith.constant 0 : index
    %6 = vector.load %arg2[%c0_2, %c0_3] : memref<32x192xf32, #tpu.memory_space<vmem>>, vector<32x192xf32>
    %7 = arith.truncf %6 : vector<32x192xf32> to vector<32x192xbf16>
    %c0_4 = arith.constant 0 : index
    %c0_5 = arith.constant 0 : index
    %8 = vector.load %arg0[%c0_4, %c0_5] : memref<32x32xf32, #tpu.memory_space<vmem>>, vector<32x32xf32>
    %9 = arith.truncf %8 : vector<32x32xf32> to vector<32x32xbf16>
    %cst = arith.constant dense<0.000000e+00> : vector<32x192xf32>
    %10 = tpu.matmul %9, %7, %cst {dimension_numbers = #tpu.dot_dimension_numbers<[1], [0], [0], [1], [0, 0, 1, 1], [], []>} : vector<32x32xbf16>, vector<32x192xbf16>, vector<32x192xf32> -> vector<32x192xf32>
    %c0_6 = arith.constant 0 : index
    %c0_7 = arith.constant 0 : index
    %11 = vector.load %arg3[%c0_6, %c0_7] : memref<1x192xf32, #tpu.memory_space<vmem>>, vector<1x192xf32>
    %12 = vector.broadcast %11 : vector<1x192xf32> to vector<32x192xf32>
    %13 = arith.addf %10, %12 : vector<32x192xf32>
    %14 = vector.extract_strided_slice %13 {offsets = [0, 0], sizes = [32, 96], strides = [1, 1]} : vector<32x192xf32> to vector<32x96xf32>
    %15 = vector.shape_cast %14 : vector<32x96xf32> to vector<8x4x96xf32>
    %16 = vector.extract_strided_slice %13 {offsets = [0, 96], sizes = [32, 96], strides = [1, 1]} : vector<32x192xf32> to vector<32x96xf32>
    %17 = vector.shape_cast %16 : vector<32x96xf32> to vector<8x4x96xf32>
    %c0_8 = arith.constant 0 : index
    %c0_9 = arith.constant 0 : index
    %18 = vector.load %arg4[%c0_8, %c0_9] : memref<32x96xf32, #tpu.memory_space<vmem>>, vector<32x96xf32>
    %19 = arith.truncf %18 : vector<32x96xf32> to vector<32x96xbf16>
    %c0_10 = arith.constant 0 : index
    %c0_11 = arith.constant 0 : index
    %20 = vector.load %arg6[%c0_10, %c0_11] : memref<32x96xf32, #tpu.memory_space<vmem>>, vector<32x96xf32>
    %21 = arith.truncf %20 : vector<32x96xf32> to vector<32x96xbf16>
    %c0_12 = arith.constant 0 : index
    %c0_13 = arith.constant 0 : index
    %22 = vector.load %arg5[%c0_12, %c0_13] : memref<1x96xf32, #tpu.memory_space<vmem>>, vector<1x96xf32>
    %c0_14 = arith.constant 0 : index
    %c0_15 = arith.constant 0 : index
    %23 = vector.load %arg7[%c0_14, %c0_15] : memref<1x96xf32, #tpu.memory_space<vmem>>, vector<1x96xf32>
    %cst_16 = arith.constant 0.000000e+00 : f32
    %24 = vector.broadcast %cst_16 : f32 to vector<4x32xf32>
    %cst_17 = arith.constant 0.000000e+00 : f32
    %25 = vector.broadcast %cst_17 : f32 to vector<4x32xf32>
    %26 = vector.extract_strided_slice %5 {offsets = [0, 0, 0], sizes = [1, 4, 1], strides = [1, 1, 1]} : vector<8x4x1xf32> to vector<1x4x1xf32>
    %27 = vector.shape_cast %26 : vector<1x4x1xf32> to vector<4x1xf32>
    %28 = vector.extract_strided_slice %5 {offsets = [7, 0, 0], sizes = [1, 4, 1], strides = [1, 1, 1]} : vector<8x4x1xf32> to vector<1x4x1xf32>
    %29 = vector.shape_cast %28 : vector<1x4x1xf32> to vector<4x1xf32>
    %30 = arith.truncf %24 : vector<4x32xf32> to vector<4x32xbf16>
    %cst_18 = arith.constant dense<0.000000e+00> : vector<4x96xf32>
    %31 = tpu.matmul %30, %19, %cst_18 {dimension_numbers = #tpu.dot_dimension_numbers<[1], [0], [0], [1], [0, 0, 1, 1], [], []>} : vector<4x32xbf16>, vector<32x96xbf16>, vector<4x96xf32> -> vector<4x96xf32>
    %32 = vector.broadcast %22 : vector<1x96xf32> to vector<4x96xf32>
    %33 = arith.addf %31, %32 : vector<4x96xf32>
    %34 = arith.truncf %25 : vector<4x32xf32> to vector<4x32xbf16>
    %cst_19 = arith.constant dense<0.000000e+00> : vector<4x96xf32>
    %35 = tpu.matmul %34, %21, %cst_19 {dimension_numbers = #tpu.dot_dimension_numbers<[1], [0], [0], [1], [0, 0, 1, 1], [], []>} : vector<4x32xbf16>, vector<32x96xbf16>, vector<4x96xf32> -> vector<4x96xf32>
    %36 = vector.broadcast %23 : vector<1x96xf32> to vector<4x96xf32>
    %37 = arith.addf %35, %36 : vector<4x96xf32>
    %38 = vector.extract_strided_slice %15 {offsets = [0, 0, 0], sizes = [1, 4, 96], strides = [1, 1, 1]} : vector<8x4x96xf32> to vector<1x4x96xf32>
    %39 = vector.shape_cast %38 : vector<1x4x96xf32> to vector<4x96xf32>
    %40 = vector.extract_strided_slice %39 {offsets = [0, 0], sizes = [4, 32], strides = [1, 1]} : vector<4x96xf32> to vector<4x32xf32>
    %41 = vector.extract_strided_slice %33 {offsets = [0, 0], sizes = [4, 32], strides = [1, 1]} : vector<4x96xf32> to vector<4x32xf32>
    %42 = arith.addf %40, %41 : vector<4x32xf32>
    %43 = arith.negf %42 : vector<4x32xf32>
    %44 = math.exp %43 : vector<4x32xf32>
    %cst_20 = arith.constant 1.000000e+00 : f32
    %45 = vector.broadcast %cst_20 : f32 to vector<4x32xf32>
    %46 = arith.addf %45, %44 : vector<4x32xf32>
    %47 = arith.divf %45, %46 : vector<4x32xf32>
    %48 = vector.extract_strided_slice %39 {offsets = [0, 32], sizes = [4, 32], strides = [1, 1]} : vector<4x96xf32> to vector<4x32xf32>
    %49 = vector.extract_strided_slice %33 {offsets = [0, 32], sizes = [4, 32], strides = [1, 1]} : vector<4x96xf32> to vector<4x32xf32>
    %50 = arith.addf %48, %49 : vector<4x32xf32>
    %51 = arith.negf %50 : vector<4x32xf32>
    %52 = math.exp %51 : vector<4x32xf32>
    %cst_21 = arith.constant 1.000000e+00 : f32
    %53 = vector.broadcast %cst_21 : f32 to vector<4x32xf32>
    %54 = arith.addf %53, %52 : vector<4x32xf32>
    %55 = arith.divf %53, %54 : vector<4x32xf32>
    %56 = vector.extract_strided_slice %39 {offsets = [0, 64], sizes = [4, 32], strides = [1, 1]} : vector<4x96xf32> to vector<4x32xf32>
    %57 = vector.extract_strided_slice %33 {offsets = [0, 64], sizes = [4, 32], strides = [1, 1]} : vector<4x96xf32> to vector<4x32xf32>
    %58 = arith.mulf %47, %57 : vector<4x32xf32>
    %59 = arith.addf %56, %58 : vector<4x32xf32>
    %60 = math.tanh %59 : vector<4x32xf32>
    %cst_22 = arith.constant 1.000000e+00 : f32
    %61 = vector.broadcast %cst_22 : f32 to vector<4x32xf32>
    %62 = arith.subf %61, %55 : vector<4x32xf32>
    %63 = arith.mulf %62, %60 : vector<4x32xf32>
    %64 = arith.mulf %55, %24 : vector<4x32xf32>
    %65 = arith.addf %63, %64 : vector<4x32xf32>
    %66 = vector.extract_strided_slice %17 {offsets = [7, 0, 0], sizes = [1, 4, 96], strides = [1, 1, 1]} : vector<8x4x96xf32> to vector<1x4x96xf32>
    %67 = vector.shape_cast %66 : vector<1x4x96xf32> to vector<4x96xf32>
    %68 = vector.extract_strided_slice %67 {offsets = [0, 0], sizes = [4, 32], strides = [1, 1]} : vector<4x96xf32> to vector<4x32xf32>
    %69 = vector.extract_strided_slice %37 {offsets = [0, 0], sizes = [4, 32], strides = [1, 1]} : vector<4x96xf32> to vector<4x32xf32>
    %70 = arith.addf %68, %69 : vector<4x32xf32>
    %71 = arith.negf %70 : vector<4x32xf32>
    %72 = math.exp %71 : vector<4x32xf32>
    %cst_23 = arith.constant 1.000000e+00 : f32
    %73 = vector.broadcast %cst_23 : f32 to vector<4x32xf32>
    %74 = arith.addf %73, %72 : vector<4x32xf32>
    %75 = arith.divf %73, %74 : vector<4x32xf32>
    %76 = vector.extract_strided_slice %67 {offsets = [0, 32], sizes = [4, 32], strides = [1, 1]} : vector<4x96xf32> to vector<4x32xf32>
    %77 = vector.extract_strided_slice %37 {offsets = [0, 32], sizes = [4, 32], strides = [1, 1]} : vector<4x96xf32> to vector<4x32xf32>
    %78 = arith.addf %76, %77 : vector<4x32xf32>
    %79 = arith.negf %78 : vector<4x32xf32>
    %80 = math.exp %79 : vector<4x32xf32>
    %cst_24 = arith.constant 1.000000e+00 : f32
    %81 = vector.broadcast %cst_24 : f32 to vector<4x32xf32>
    %82 = arith.addf %81, %80 : vector<4x32xf32>
    %83 = arith.divf %81, %82 : vector<4x32xf32>
    %84 = vector.extract_strided_slice %67 {offsets = [0, 64], sizes = [4, 32], strides = [1, 1]} : vector<4x96xf32> to vector<4x32xf32>
    %85 = vector.extract_strided_slice %37 {offsets = [0, 64], sizes = [4, 32], strides = [1, 1]} : vector<4x96xf32> to vector<4x32xf32>
    %86 = arith.mulf %75, %85 : vector<4x32xf32>
    %87 = arith.addf %84, %86 : vector<4x32xf32>
    %88 = math.tanh %87 : vector<4x32xf32>
    %cst_25 = arith.constant 1.000000e+00 : f32
    %89 = vector.broadcast %cst_25 : f32 to vector<4x32xf32>
    %90 = arith.subf %89, %83 : vector<4x32xf32>
    %91 = arith.mulf %90, %88 : vector<4x32xf32>
    %92 = arith.mulf %83, %25 : vector<4x32xf32>
    %93 = arith.addf %91, %92 : vector<4x32xf32>
    %94 = vector.broadcast %27 : vector<4x1xf32> to vector<4x32xf32>
    %95 = arith.mulf %94, %65 : vector<4x32xf32>
    %cst_26 = arith.constant 1.000000e+00 : f32
    %96 = vector.broadcast %cst_26 : f32 to vector<4x1xf32>
    %97 = arith.subf %96, %27 : vector<4x1xf32>
    %98 = vector.broadcast %97 : vector<4x1xf32> to vector<4x32xf32>
    %99 = arith.mulf %98, %24 : vector<4x32xf32>
    %100 = arith.addf %95, %99 : vector<4x32xf32>
    %101 = vector.broadcast %29 : vector<4x1xf32> to vector<4x32xf32>
    %102 = arith.mulf %101, %93 : vector<4x32xf32>
    %cst_27 = arith.constant 1.000000e+00 : f32
    %103 = vector.broadcast %cst_27 : f32 to vector<4x1xf32>
    %104 = arith.subf %103, %29 : vector<4x1xf32>
    %105 = vector.broadcast %104 : vector<4x1xf32> to vector<4x32xf32>
    %106 = arith.mulf %105, %25 : vector<4x32xf32>
    %107 = arith.addf %102, %106 : vector<4x32xf32>
    %108 = vector.broadcast %27 : vector<4x1xf32> to vector<4x32xf32>
    %109 = arith.mulf %108, %100 : vector<4x32xf32>
    %110 = vector.broadcast %29 : vector<4x1xf32> to vector<4x32xf32>
    %111 = arith.mulf %110, %107 : vector<4x32xf32>
    %112 = vector.extract_strided_slice %5 {offsets = [1, 0, 0], sizes = [1, 4, 1], strides = [1, 1, 1]} : vector<8x4x1xf32> to vector<1x4x1xf32>
    %113 = vector.shape_cast %112 : vector<1x4x1xf32> to vector<4x1xf32>
    %114 = vector.extract_strided_slice %5 {offsets = [6, 0, 0], sizes = [1, 4, 1], strides = [1, 1, 1]} : vector<8x4x1xf32> to vector<1x4x1xf32>
    %115 = vector.shape_cast %114 : vector<1x4x1xf32> to vector<4x1xf32>
    %116 = arith.truncf %100 : vector<4x32xf32> to vector<4x32xbf16>
    %cst_28 = arith.constant dense<0.000000e+00> : vector<4x96xf32>
    %117 = tpu.matmul %116, %19, %cst_28 {dimension_numbers = #tpu.dot_dimension_numbers<[1], [0], [0], [1], [0, 0, 1, 1], [], []>} : vector<4x32xbf16>, vector<32x96xbf16>, vector<4x96xf32> -> vector<4x96xf32>
    %118 = vector.broadcast %22 : vector<1x96xf32> to vector<4x96xf32>
    %119 = arith.addf %117, %118 : vector<4x96xf32>
    %120 = arith.truncf %107 : vector<4x32xf32> to vector<4x32xbf16>
    %cst_29 = arith.constant dense<0.000000e+00> : vector<4x96xf32>
    %121 = tpu.matmul %120, %21, %cst_29 {dimension_numbers = #tpu.dot_dimension_numbers<[1], [0], [0], [1], [0, 0, 1, 1], [], []>} : vector<4x32xbf16>, vector<32x96xbf16>, vector<4x96xf32> -> vector<4x96xf32>
    %122 = vector.broadcast %23 : vector<1x96xf32> to vector<4x96xf32>
    %123 = arith.addf %121, %122 : vector<4x96xf32>
    %124 = vector.extract_strided_slice %15 {offsets = [1, 0, 0], sizes = [1, 4, 96], strides = [1, 1, 1]} : vector<8x4x96xf32> to vector<1x4x96xf32>
    %125 = vector.shape_cast %124 : vector<1x4x96xf32> to vector<4x96xf32>
    %126 = vector.extract_strided_slice %125 {offsets = [0, 0], sizes = [4, 32], strides = [1, 1]} : vector<4x96xf32> to vector<4x32xf32>
    %127 = vector.extract_strided_slice %119 {offsets = [0, 0], sizes = [4, 32], strides = [1, 1]} : vector<4x96xf32> to vector<4x32xf32>
    %128 = arith.addf %126, %127 : vector<4x32xf32>
    %129 = arith.negf %128 : vector<4x32xf32>
    %130 = math.exp %129 : vector<4x32xf32>
    %cst_30 = arith.constant 1.000000e+00 : f32
    %131 = vector.broadcast %cst_30 : f32 to vector<4x32xf32>
    %132 = arith.addf %131, %130 : vector<4x32xf32>
    %133 = arith.divf %131, %132 : vector<4x32xf32>
    %134 = vector.extract_strided_slice %125 {offsets = [0, 32], sizes = [4, 32], strides = [1, 1]} : vector<4x96xf32> to vector<4x32xf32>
    %135 = vector.extract_strided_slice %119 {offsets = [0, 32], sizes = [4, 32], strides = [1, 1]} : vector<4x96xf32> to vector<4x32xf32>
    %136 = arith.addf %134, %135 : vector<4x32xf32>
    %137 = arith.negf %136 : vector<4x32xf32>
    %138 = math.exp %137 : vector<4x32xf32>
    %cst_31 = arith.constant 1.000000e+00 : f32
    %139 = vector.broadcast %cst_31 : f32 to vector<4x32xf32>
    %140 = arith.addf %139, %138 : vector<4x32xf32>
    %141 = arith.divf %139, %140 : vector<4x32xf32>
    %142 = vector.extract_strided_slice %125 {offsets = [0, 64], sizes = [4, 32], strides = [1, 1]} : vector<4x96xf32> to vector<4x32xf32>
    %143 = vector.extract_strided_slice %119 {offsets = [0, 64], sizes = [4, 32], strides = [1, 1]} : vector<4x96xf32> to vector<4x32xf32>
    %144 = arith.mulf %133, %143 : vector<4x32xf32>
    %145 = arith.addf %142, %144 : vector<4x32xf32>
    %146 = math.tanh %145 : vector<4x32xf32>
    %cst_32 = arith.constant 1.000000e+00 : f32
    %147 = vector.broadcast %cst_32 : f32 to vector<4x32xf32>
    %148 = arith.subf %147, %141 : vector<4x32xf32>
    %149 = arith.mulf %148, %146 : vector<4x32xf32>
    %150 = arith.mulf %141, %100 : vector<4x32xf32>
    %151 = arith.addf %149, %150 : vector<4x32xf32>
    %152 = vector.extract_strided_slice %17 {offsets = [6, 0, 0], sizes = [1, 4, 96], strides = [1, 1, 1]} : vector<8x4x96xf32> to vector<1x4x96xf32>
    %153 = vector.shape_cast %152 : vector<1x4x96xf32> to vector<4x96xf32>
    %154 = vector.extract_strided_slice %153 {offsets = [0, 0], sizes = [4, 32], strides = [1, 1]} : vector<4x96xf32> to vector<4x32xf32>
    %155 = vector.extract_strided_slice %123 {offsets = [0, 0], sizes = [4, 32], strides = [1, 1]} : vector<4x96xf32> to vector<4x32xf32>
    %156 = arith.addf %154, %155 : vector<4x32xf32>
    %157 = arith.negf %156 : vector<4x32xf32>
    %158 = math.exp %157 : vector<4x32xf32>
    %cst_33 = arith.constant 1.000000e+00 : f32
    %159 = vector.broadcast %cst_33 : f32 to vector<4x32xf32>
    %160 = arith.addf %159, %158 : vector<4x32xf32>
    %161 = arith.divf %159, %160 : vector<4x32xf32>
    %162 = vector.extract_strided_slice %153 {offsets = [0, 32], sizes = [4, 32], strides = [1, 1]} : vector<4x96xf32> to vector<4x32xf32>
    %163 = vector.extract_strided_slice %123 {offsets = [0, 32], sizes = [4, 32], strides = [1, 1]} : vector<4x96xf32> to vector<4x32xf32>
    %164 = arith.addf %162, %163 : vector<4x32xf32>
    %165 = arith.negf %164 : vector<4x32xf32>
    %166 = math.exp %165 : vector<4x32xf32>
    %cst_34 = arith.constant 1.000000e+00 : f32
    %167 = vector.broadcast %cst_34 : f32 to vector<4x32xf32>
    %168 = arith.addf %167, %166 : vector<4x32xf32>
    %169 = arith.divf %167, %168 : vector<4x32xf32>
    %170 = vector.extract_strided_slice %153 {offsets = [0, 64], sizes = [4, 32], strides = [1, 1]} : vector<4x96xf32> to vector<4x32xf32>
    %171 = vector.extract_strided_slice %123 {offsets = [0, 64], sizes = [4, 32], strides = [1, 1]} : vector<4x96xf32> to vector<4x32xf32>
    %172 = arith.mulf %161, %171 : vector<4x32xf32>
    %173 = arith.addf %170, %172 : vector<4x32xf32>
    %174 = math.tanh %173 : vector<4x32xf32>
    %cst_35 = arith.constant 1.000000e+00 : f32
    %175 = vector.broadcast %cst_35 : f32 to vector<4x32xf32>
    %176 = arith.subf %175, %169 : vector<4x32xf32>
    %177 = arith.mulf %176, %174 : vector<4x32xf32>
    %178 = arith.mulf %169, %107 : vector<4x32xf32>
    %179 = arith.addf %177, %178 : vector<4x32xf32>
    %180 = vector.broadcast %113 : vector<4x1xf32> to vector<4x32xf32>
    %181 = arith.mulf %180, %151 : vector<4x32xf32>
    %cst_36 = arith.constant 1.000000e+00 : f32
    %182 = vector.broadcast %cst_36 : f32 to vector<4x1xf32>
    %183 = arith.subf %182, %113 : vector<4x1xf32>
    %184 = vector.broadcast %183 : vector<4x1xf32> to vector<4x32xf32>
    %185 = arith.mulf %184, %100 : vector<4x32xf32>
    %186 = arith.addf %181, %185 : vector<4x32xf32>
    %187 = vector.broadcast %115 : vector<4x1xf32> to vector<4x32xf32>
    %188 = arith.mulf %187, %179 : vector<4x32xf32>
    %cst_37 = arith.constant 1.000000e+00 : f32
    %189 = vector.broadcast %cst_37 : f32 to vector<4x1xf32>
    %190 = arith.subf %189, %115 : vector<4x1xf32>
    %191 = vector.broadcast %190 : vector<4x1xf32> to vector<4x32xf32>
    %192 = arith.mulf %191, %107 : vector<4x32xf32>
    %193 = arith.addf %188, %192 : vector<4x32xf32>
    %194 = vector.broadcast %113 : vector<4x1xf32> to vector<4x32xf32>
    %195 = arith.mulf %194, %186 : vector<4x32xf32>
    %196 = vector.broadcast %115 : vector<4x1xf32> to vector<4x32xf32>
    %197 = arith.mulf %196, %193 : vector<4x32xf32>
    %198 = vector.extract_strided_slice %5 {offsets = [2, 0, 0], sizes = [1, 4, 1], strides = [1, 1, 1]} : vector<8x4x1xf32> to vector<1x4x1xf32>
    %199 = vector.shape_cast %198 : vector<1x4x1xf32> to vector<4x1xf32>
    %200 = vector.extract_strided_slice %5 {offsets = [5, 0, 0], sizes = [1, 4, 1], strides = [1, 1, 1]} : vector<8x4x1xf32> to vector<1x4x1xf32>
    %201 = vector.shape_cast %200 : vector<1x4x1xf32> to vector<4x1xf32>
    %202 = arith.truncf %186 : vector<4x32xf32> to vector<4x32xbf16>
    %cst_38 = arith.constant dense<0.000000e+00> : vector<4x96xf32>
    %203 = tpu.matmul %202, %19, %cst_38 {dimension_numbers = #tpu.dot_dimension_numbers<[1], [0], [0], [1], [0, 0, 1, 1], [], []>} : vector<4x32xbf16>, vector<32x96xbf16>, vector<4x96xf32> -> vector<4x96xf32>
    %204 = vector.broadcast %22 : vector<1x96xf32> to vector<4x96xf32>
    %205 = arith.addf %203, %204 : vector<4x96xf32>
    %206 = arith.truncf %193 : vector<4x32xf32> to vector<4x32xbf16>
    %cst_39 = arith.constant dense<0.000000e+00> : vector<4x96xf32>
    %207 = tpu.matmul %206, %21, %cst_39 {dimension_numbers = #tpu.dot_dimension_numbers<[1], [0], [0], [1], [0, 0, 1, 1], [], []>} : vector<4x32xbf16>, vector<32x96xbf16>, vector<4x96xf32> -> vector<4x96xf32>
    %208 = vector.broadcast %23 : vector<1x96xf32> to vector<4x96xf32>
    %209 = arith.addf %207, %208 : vector<4x96xf32>
    %210 = vector.extract_strided_slice %15 {offsets = [2, 0, 0], sizes = [1, 4, 96], strides = [1, 1, 1]} : vector<8x4x96xf32> to vector<1x4x96xf32>
    %211 = vector.shape_cast %210 : vector<1x4x96xf32> to vector<4x96xf32>
    %212 = vector.extract_strided_slice %211 {offsets = [0, 0], sizes = [4, 32], strides = [1, 1]} : vector<4x96xf32> to vector<4x32xf32>
    %213 = vector.extract_strided_slice %205 {offsets = [0, 0], sizes = [4, 32], strides = [1, 1]} : vector<4x96xf32> to vector<4x32xf32>
    %214 = arith.addf %212, %213 : vector<4x32xf32>
    %215 = arith.negf %214 : vector<4x32xf32>
    %216 = math.exp %215 : vector<4x32xf32>
    %cst_40 = arith.constant 1.000000e+00 : f32
    %217 = vector.broadcast %cst_40 : f32 to vector<4x32xf32>
    %218 = arith.addf %217, %216 : vector<4x32xf32>
    %219 = arith.divf %217, %218 : vector<4x32xf32>
    %220 = vector.extract_strided_slice %211 {offsets = [0, 32], sizes = [4, 32], strides = [1, 1]} : vector<4x96xf32> to vector<4x32xf32>
    %221 = vector.extract_strided_slice %205 {offsets = [0, 32], sizes = [4, 32], strides = [1, 1]} : vector<4x96xf32> to vector<4x32xf32>
    %222 = arith.addf %220, %221 : vector<4x32xf32>
    %223 = arith.negf %222 : vector<4x32xf32>
    %224 = math.exp %223 : vector<4x32xf32>
    %cst_41 = arith.constant 1.000000e+00 : f32
    %225 = vector.broadcast %cst_41 : f32 to vector<4x32xf32>
    %226 = arith.addf %225, %224 : vector<4x32xf32>
    %227 = arith.divf %225, %226 : vector<4x32xf32>
    %228 = vector.extract_strided_slice %211 {offsets = [0, 64], sizes = [4, 32], strides = [1, 1]} : vector<4x96xf32> to vector<4x32xf32>
    %229 = vector.extract_strided_slice %205 {offsets = [0, 64], sizes = [4, 32], strides = [1, 1]} : vector<4x96xf32> to vector<4x32xf32>
    %230 = arith.mulf %219, %229 : vector<4x32xf32>
    %231 = arith.addf %228, %230 : vector<4x32xf32>
    %232 = math.tanh %231 : vector<4x32xf32>
    %cst_42 = arith.constant 1.000000e+00 : f32
    %233 = vector.broadcast %cst_42 : f32 to vector<4x32xf32>
    %234 = arith.subf %233, %227 : vector<4x32xf32>
    %235 = arith.mulf %234, %232 : vector<4x32xf32>
    %236 = arith.mulf %227, %186 : vector<4x32xf32>
    %237 = arith.addf %235, %236 : vector<4x32xf32>
    %238 = vector.extract_strided_slice %17 {offsets = [5, 0, 0], sizes = [1, 4, 96], strides = [1, 1, 1]} : vector<8x4x96xf32> to vector<1x4x96xf32>
    %239 = vector.shape_cast %238 : vector<1x4x96xf32> to vector<4x96xf32>
    %240 = vector.extract_strided_slice %239 {offsets = [0, 0], sizes = [4, 32], strides = [1, 1]} : vector<4x96xf32> to vector<4x32xf32>
    %241 = vector.extract_strided_slice %209 {offsets = [0, 0], sizes = [4, 32], strides = [1, 1]} : vector<4x96xf32> to vector<4x32xf32>
    %242 = arith.addf %240, %241 : vector<4x32xf32>
    %243 = arith.negf %242 : vector<4x32xf32>
    %244 = math.exp %243 : vector<4x32xf32>
    %cst_43 = arith.constant 1.000000e+00 : f32
    %245 = vector.broadcast %cst_43 : f32 to vector<4x32xf32>
    %246 = arith.addf %245, %244 : vector<4x32xf32>
    %247 = arith.divf %245, %246 : vector<4x32xf32>
    %248 = vector.extract_strided_slice %239 {offsets = [0, 32], sizes = [4, 32], strides = [1, 1]} : vector<4x96xf32> to vector<4x32xf32>
    %249 = vector.extract_strided_slice %209 {offsets = [0, 32], sizes = [4, 32], strides = [1, 1]} : vector<4x96xf32> to vector<4x32xf32>
    %250 = arith.addf %248, %249 : vector<4x32xf32>
    %251 = arith.negf %250 : vector<4x32xf32>
    %252 = math.exp %251 : vector<4x32xf32>
    %cst_44 = arith.constant 1.000000e+00 : f32
    %253 = vector.broadcast %cst_44 : f32 to vector<4x32xf32>
    %254 = arith.addf %253, %252 : vector<4x32xf32>
    %255 = arith.divf %253, %254 : vector<4x32xf32>
    %256 = vector.extract_strided_slice %239 {offsets = [0, 64], sizes = [4, 32], strides = [1, 1]} : vector<4x96xf32> to vector<4x32xf32>
    %257 = vector.extract_strided_slice %209 {offsets = [0, 64], sizes = [4, 32], strides = [1, 1]} : vector<4x96xf32> to vector<4x32xf32>
    %258 = arith.mulf %247, %257 : vector<4x32xf32>
    %259 = arith.addf %256, %258 : vector<4x32xf32>
    %260 = math.tanh %259 : vector<4x32xf32>
    %cst_45 = arith.constant 1.000000e+00 : f32
    %261 = vector.broadcast %cst_45 : f32 to vector<4x32xf32>
    %262 = arith.subf %261, %255 : vector<4x32xf32>
    %263 = arith.mulf %262, %260 : vector<4x32xf32>
    %264 = arith.mulf %255, %193 : vector<4x32xf32>
    %265 = arith.addf %263, %264 : vector<4x32xf32>
    %266 = vector.broadcast %199 : vector<4x1xf32> to vector<4x32xf32>
    %267 = arith.mulf %266, %237 : vector<4x32xf32>
    %cst_46 = arith.constant 1.000000e+00 : f32
    %268 = vector.broadcast %cst_46 : f32 to vector<4x1xf32>
    %269 = arith.subf %268, %199 : vector<4x1xf32>
    %270 = vector.broadcast %269 : vector<4x1xf32> to vector<4x32xf32>
    %271 = arith.mulf %270, %186 : vector<4x32xf32>
    %272 = arith.addf %267, %271 : vector<4x32xf32>
    %273 = vector.broadcast %201 : vector<4x1xf32> to vector<4x32xf32>
    %274 = arith.mulf %273, %265 : vector<4x32xf32>
    %cst_47 = arith.constant 1.000000e+00 : f32
    %275 = vector.broadcast %cst_47 : f32 to vector<4x1xf32>
    %276 = arith.subf %275, %201 : vector<4x1xf32>
    %277 = vector.broadcast %276 : vector<4x1xf32> to vector<4x32xf32>
    %278 = arith.mulf %277, %193 : vector<4x32xf32>
    %279 = arith.addf %274, %278 : vector<4x32xf32>
    %280 = vector.broadcast %199 : vector<4x1xf32> to vector<4x32xf32>
    %281 = arith.mulf %280, %272 : vector<4x32xf32>
    %282 = vector.broadcast %201 : vector<4x1xf32> to vector<4x32xf32>
    %283 = arith.mulf %282, %279 : vector<4x32xf32>
    %284 = vector.extract_strided_slice %5 {offsets = [3, 0, 0], sizes = [1, 4, 1], strides = [1, 1, 1]} : vector<8x4x1xf32> to vector<1x4x1xf32>
    %285 = vector.shape_cast %284 : vector<1x4x1xf32> to vector<4x1xf32>
    %286 = vector.extract_strided_slice %5 {offsets = [4, 0, 0], sizes = [1, 4, 1], strides = [1, 1, 1]} : vector<8x4x1xf32> to vector<1x4x1xf32>
    %287 = vector.shape_cast %286 : vector<1x4x1xf32> to vector<4x1xf32>
    %288 = arith.truncf %272 : vector<4x32xf32> to vector<4x32xbf16>
    %cst_48 = arith.constant dense<0.000000e+00> : vector<4x96xf32>
    %289 = tpu.matmul %288, %19, %cst_48 {dimension_numbers = #tpu.dot_dimension_numbers<[1], [0], [0], [1], [0, 0, 1, 1], [], []>} : vector<4x32xbf16>, vector<32x96xbf16>, vector<4x96xf32> -> vector<4x96xf32>
    %290 = vector.broadcast %22 : vector<1x96xf32> to vector<4x96xf32>
    %291 = arith.addf %289, %290 : vector<4x96xf32>
    %292 = arith.truncf %279 : vector<4x32xf32> to vector<4x32xbf16>
    %cst_49 = arith.constant dense<0.000000e+00> : vector<4x96xf32>
    %293 = tpu.matmul %292, %21, %cst_49 {dimension_numbers = #tpu.dot_dimension_numbers<[1], [0], [0], [1], [0, 0, 1, 1], [], []>} : vector<4x32xbf16>, vector<32x96xbf16>, vector<4x96xf32> -> vector<4x96xf32>
    %294 = vector.broadcast %23 : vector<1x96xf32> to vector<4x96xf32>
    %295 = arith.addf %293, %294 : vector<4x96xf32>
    %296 = vector.extract_strided_slice %15 {offsets = [3, 0, 0], sizes = [1, 4, 96], strides = [1, 1, 1]} : vector<8x4x96xf32> to vector<1x4x96xf32>
    %297 = vector.shape_cast %296 : vector<1x4x96xf32> to vector<4x96xf32>
    %298 = vector.extract_strided_slice %297 {offsets = [0, 0], sizes = [4, 32], strides = [1, 1]} : vector<4x96xf32> to vector<4x32xf32>
    %299 = vector.extract_strided_slice %291 {offsets = [0, 0], sizes = [4, 32], strides = [1, 1]} : vector<4x96xf32> to vector<4x32xf32>
    %300 = arith.addf %298, %299 : vector<4x32xf32>
    %301 = arith.negf %300 : vector<4x32xf32>
    %302 = math.exp %301 : vector<4x32xf32>
    %cst_50 = arith.constant 1.000000e+00 : f32
    %303 = vector.broadcast %cst_50 : f32 to vector<4x32xf32>
    %304 = arith.addf %303, %302 : vector<4x32xf32>
    %305 = arith.divf %303, %304 : vector<4x32xf32>
    %306 = vector.extract_strided_slice %297 {offsets = [0, 32], sizes = [4, 32], strides = [1, 1]} : vector<4x96xf32> to vector<4x32xf32>
    %307 = vector.extract_strided_slice %291 {offsets = [0, 32], sizes = [4, 32], strides = [1, 1]} : vector<4x96xf32> to vector<4x32xf32>
    %308 = arith.addf %306, %307 : vector<4x32xf32>
    %309 = arith.negf %308 : vector<4x32xf32>
    %310 = math.exp %309 : vector<4x32xf32>
    %cst_51 = arith.constant 1.000000e+00 : f32
    %311 = vector.broadcast %cst_51 : f32 to vector<4x32xf32>
    %312 = arith.addf %311, %310 : vector<4x32xf32>
    %313 = arith.divf %311, %312 : vector<4x32xf32>
    %314 = vector.extract_strided_slice %297 {offsets = [0, 64], sizes = [4, 32], strides = [1, 1]} : vector<4x96xf32> to vector<4x32xf32>
    %315 = vector.extract_strided_slice %291 {offsets = [0, 64], sizes = [4, 32], strides = [1, 1]} : vector<4x96xf32> to vector<4x32xf32>
    %316 = arith.mulf %305, %315 : vector<4x32xf32>
    %317 = arith.addf %314, %316 : vector<4x32xf32>
    %318 = math.tanh %317 : vector<4x32xf32>
    %cst_52 = arith.constant 1.000000e+00 : f32
    %319 = vector.broadcast %cst_52 : f32 to vector<4x32xf32>
    %320 = arith.subf %319, %313 : vector<4x32xf32>
    %321 = arith.mulf %320, %318 : vector<4x32xf32>
    %322 = arith.mulf %313, %272 : vector<4x32xf32>
    %323 = arith.addf %321, %322 : vector<4x32xf32>
    %324 = vector.extract_strided_slice %17 {offsets = [4, 0, 0], sizes = [1, 4, 96], strides = [1, 1, 1]} : vector<8x4x96xf32> to vector<1x4x96xf32>
    %325 = vector.shape_cast %324 : vector<1x4x96xf32> to vector<4x96xf32>
    %326 = vector.extract_strided_slice %325 {offsets = [0, 0], sizes = [4, 32], strides = [1, 1]} : vector<4x96xf32> to vector<4x32xf32>
    %327 = vector.extract_strided_slice %295 {offsets = [0, 0], sizes = [4, 32], strides = [1, 1]} : vector<4x96xf32> to vector<4x32xf32>
    %328 = arith.addf %326, %327 : vector<4x32xf32>
    %329 = arith.negf %328 : vector<4x32xf32>
    %330 = math.exp %329 : vector<4x32xf32>
    %cst_53 = arith.constant 1.000000e+00 : f32
    %331 = vector.broadcast %cst_53 : f32 to vector<4x32xf32>
    %332 = arith.addf %331, %330 : vector<4x32xf32>
    %333 = arith.divf %331, %332 : vector<4x32xf32>
    %334 = vector.extract_strided_slice %325 {offsets = [0, 32], sizes = [4, 32], strides = [1, 1]} : vector<4x96xf32> to vector<4x32xf32>
    %335 = vector.extract_strided_slice %295 {offsets = [0, 32], sizes = [4, 32], strides = [1, 1]} : vector<4x96xf32> to vector<4x32xf32>
    %336 = arith.addf %334, %335 : vector<4x32xf32>
    %337 = arith.negf %336 : vector<4x32xf32>
    %338 = math.exp %337 : vector<4x32xf32>
    %cst_54 = arith.constant 1.000000e+00 : f32
    %339 = vector.broadcast %cst_54 : f32 to vector<4x32xf32>
    %340 = arith.addf %339, %338 : vector<4x32xf32>
    %341 = arith.divf %339, %340 : vector<4x32xf32>
    %342 = vector.extract_strided_slice %325 {offsets = [0, 64], sizes = [4, 32], strides = [1, 1]} : vector<4x96xf32> to vector<4x32xf32>
    %343 = vector.extract_strided_slice %295 {offsets = [0, 64], sizes = [4, 32], strides = [1, 1]} : vector<4x96xf32> to vector<4x32xf32>
    %344 = arith.mulf %333, %343 : vector<4x32xf32>
    %345 = arith.addf %342, %344 : vector<4x32xf32>
    %346 = math.tanh %345 : vector<4x32xf32>
    %cst_55 = arith.constant 1.000000e+00 : f32
    %347 = vector.broadcast %cst_55 : f32 to vector<4x32xf32>
    %348 = arith.subf %347, %341 : vector<4x32xf32>
    %349 = arith.mulf %348, %346 : vector<4x32xf32>
    %350 = arith.mulf %341, %279 : vector<4x32xf32>
    %351 = arith.addf %349, %350 : vector<4x32xf32>
    %352 = vector.broadcast %285 : vector<4x1xf32> to vector<4x32xf32>
    %353 = arith.mulf %352, %323 : vector<4x32xf32>
    %cst_56 = arith.constant 1.000000e+00 : f32
    %354 = vector.broadcast %cst_56 : f32 to vector<4x1xf32>
    %355 = arith.subf %354, %285 : vector<4x1xf32>
    %356 = vector.broadcast %355 : vector<4x1xf32> to vector<4x32xf32>
    %357 = arith.mulf %356, %272 : vector<4x32xf32>
    %358 = arith.addf %353, %357 : vector<4x32xf32>
    %359 = vector.broadcast %287 : vector<4x1xf32> to vector<4x32xf32>
    %360 = arith.mulf %359, %351 : vector<4x32xf32>
    %cst_57 = arith.constant 1.000000e+00 : f32
    %361 = vector.broadcast %cst_57 : f32 to vector<4x1xf32>
    %362 = arith.subf %361, %287 : vector<4x1xf32>
    %363 = vector.broadcast %362 : vector<4x1xf32> to vector<4x32xf32>
    %364 = arith.mulf %363, %279 : vector<4x32xf32>
    %365 = arith.addf %360, %364 : vector<4x32xf32>
    %366 = vector.broadcast %285 : vector<4x1xf32> to vector<4x32xf32>
    %367 = arith.mulf %366, %358 : vector<4x32xf32>
    %368 = vector.broadcast %287 : vector<4x1xf32> to vector<4x32xf32>
    %369 = arith.mulf %368, %365 : vector<4x32xf32>
    %370 = vector.extract_strided_slice %5 {offsets = [4, 0, 0], sizes = [1, 4, 1], strides = [1, 1, 1]} : vector<8x4x1xf32> to vector<1x4x1xf32>
    %371 = vector.shape_cast %370 : vector<1x4x1xf32> to vector<4x1xf32>
    %372 = vector.extract_strided_slice %5 {offsets = [3, 0, 0], sizes = [1, 4, 1], strides = [1, 1, 1]} : vector<8x4x1xf32> to vector<1x4x1xf32>
    %373 = vector.shape_cast %372 : vector<1x4x1xf32> to vector<4x1xf32>
    %374 = arith.truncf %358 : vector<4x32xf32> to vector<4x32xbf16>
    %cst_58 = arith.constant dense<0.000000e+00> : vector<4x96xf32>
    %375 = tpu.matmul %374, %19, %cst_58 {dimension_numbers = #tpu.dot_dimension_numbers<[1], [0], [0], [1], [0, 0, 1, 1], [], []>} : vector<4x32xbf16>, vector<32x96xbf16>, vector<4x96xf32> -> vector<4x96xf32>
    %376 = vector.broadcast %22 : vector<1x96xf32> to vector<4x96xf32>
    %377 = arith.addf %375, %376 : vector<4x96xf32>
    %378 = arith.truncf %365 : vector<4x32xf32> to vector<4x32xbf16>
    %cst_59 = arith.constant dense<0.000000e+00> : vector<4x96xf32>
    %379 = tpu.matmul %378, %21, %cst_59 {dimension_numbers = #tpu.dot_dimension_numbers<[1], [0], [0], [1], [0, 0, 1, 1], [], []>} : vector<4x32xbf16>, vector<32x96xbf16>, vector<4x96xf32> -> vector<4x96xf32>
    %380 = vector.broadcast %23 : vector<1x96xf32> to vector<4x96xf32>
    %381 = arith.addf %379, %380 : vector<4x96xf32>
    %382 = vector.extract_strided_slice %15 {offsets = [4, 0, 0], sizes = [1, 4, 96], strides = [1, 1, 1]} : vector<8x4x96xf32> to vector<1x4x96xf32>
    %383 = vector.shape_cast %382 : vector<1x4x96xf32> to vector<4x96xf32>
    %384 = vector.extract_strided_slice %383 {offsets = [0, 0], sizes = [4, 32], strides = [1, 1]} : vector<4x96xf32> to vector<4x32xf32>
    %385 = vector.extract_strided_slice %377 {offsets = [0, 0], sizes = [4, 32], strides = [1, 1]} : vector<4x96xf32> to vector<4x32xf32>
    %386 = arith.addf %384, %385 : vector<4x32xf32>
    %387 = arith.negf %386 : vector<4x32xf32>
    %388 = math.exp %387 : vector<4x32xf32>
    %cst_60 = arith.constant 1.000000e+00 : f32
    %389 = vector.broadcast %cst_60 : f32 to vector<4x32xf32>
    %390 = arith.addf %389, %388 : vector<4x32xf32>
    %391 = arith.divf %389, %390 : vector<4x32xf32>
    %392 = vector.extract_strided_slice %383 {offsets = [0, 32], sizes = [4, 32], strides = [1, 1]} : vector<4x96xf32> to vector<4x32xf32>
    %393 = vector.extract_strided_slice %377 {offsets = [0, 32], sizes = [4, 32], strides = [1, 1]} : vector<4x96xf32> to vector<4x32xf32>
    %394 = arith.addf %392, %393 : vector<4x32xf32>
    %395 = arith.negf %394 : vector<4x32xf32>
    %396 = math.exp %395 : vector<4x32xf32>
    %cst_61 = arith.constant 1.000000e+00 : f32
    %397 = vector.broadcast %cst_61 : f32 to vector<4x32xf32>
    %398 = arith.addf %397, %396 : vector<4x32xf32>
    %399 = arith.divf %397, %398 : vector<4x32xf32>
    %400 = vector.extract_strided_slice %383 {offsets = [0, 64], sizes = [4, 32], strides = [1, 1]} : vector<4x96xf32> to vector<4x32xf32>
    %401 = vector.extract_strided_slice %377 {offsets = [0, 64], sizes = [4, 32], strides = [1, 1]} : vector<4x96xf32> to vector<4x32xf32>
    %402 = arith.mulf %391, %401 : vector<4x32xf32>
    %403 = arith.addf %400, %402 : vector<4x32xf32>
    %404 = math.tanh %403 : vector<4x32xf32>
    %cst_62 = arith.constant 1.000000e+00 : f32
    %405 = vector.broadcast %cst_62 : f32 to vector<4x32xf32>
    %406 = arith.subf %405, %399 : vector<4x32xf32>
    %407 = arith.mulf %406, %404 : vector<4x32xf32>
    %408 = arith.mulf %399, %358 : vector<4x32xf32>
    %409 = arith.addf %407, %408 : vector<4x32xf32>
    %410 = vector.extract_strided_slice %17 {offsets = [3, 0, 0], sizes = [1, 4, 96], strides = [1, 1, 1]} : vector<8x4x96xf32> to vector<1x4x96xf32>
    %411 = vector.shape_cast %410 : vector<1x4x96xf32> to vector<4x96xf32>
    %412 = vector.extract_strided_slice %411 {offsets = [0, 0], sizes = [4, 32], strides = [1, 1]} : vector<4x96xf32> to vector<4x32xf32>
    %413 = vector.extract_strided_slice %381 {offsets = [0, 0], sizes = [4, 32], strides = [1, 1]} : vector<4x96xf32> to vector<4x32xf32>
    %414 = arith.addf %412, %413 : vector<4x32xf32>
    %415 = arith.negf %414 : vector<4x32xf32>
    %416 = math.exp %415 : vector<4x32xf32>
    %cst_63 = arith.constant 1.000000e+00 : f32
    %417 = vector.broadcast %cst_63 : f32 to vector<4x32xf32>
    %418 = arith.addf %417, %416 : vector<4x32xf32>
    %419 = arith.divf %417, %418 : vector<4x32xf32>
    %420 = vector.extract_strided_slice %411 {offsets = [0, 32], sizes = [4, 32], strides = [1, 1]} : vector<4x96xf32> to vector<4x32xf32>
    %421 = vector.extract_strided_slice %381 {offsets = [0, 32], sizes = [4, 32], strides = [1, 1]} : vector<4x96xf32> to vector<4x32xf32>
    %422 = arith.addf %420, %421 : vector<4x32xf32>
    %423 = arith.negf %422 : vector<4x32xf32>
    %424 = math.exp %423 : vector<4x32xf32>
    %cst_64 = arith.constant 1.000000e+00 : f32
    %425 = vector.broadcast %cst_64 : f32 to vector<4x32xf32>
    %426 = arith.addf %425, %424 : vector<4x32xf32>
    %427 = arith.divf %425, %426 : vector<4x32xf32>
    %428 = vector.extract_strided_slice %411 {offsets = [0, 64], sizes = [4, 32], strides = [1, 1]} : vector<4x96xf32> to vector<4x32xf32>
    %429 = vector.extract_strided_slice %381 {offsets = [0, 64], sizes = [4, 32], strides = [1, 1]} : vector<4x96xf32> to vector<4x32xf32>
    %430 = arith.mulf %419, %429 : vector<4x32xf32>
    %431 = arith.addf %428, %430 : vector<4x32xf32>
    %432 = math.tanh %431 : vector<4x32xf32>
    %cst_65 = arith.constant 1.000000e+00 : f32
    %433 = vector.broadcast %cst_65 : f32 to vector<4x32xf32>
    %434 = arith.subf %433, %427 : vector<4x32xf32>
    %435 = arith.mulf %434, %432 : vector<4x32xf32>
    %436 = arith.mulf %427, %365 : vector<4x32xf32>
    %437 = arith.addf %435, %436 : vector<4x32xf32>
    %438 = vector.broadcast %371 : vector<4x1xf32> to vector<4x32xf32>
    %439 = arith.mulf %438, %409 : vector<4x32xf32>
    %cst_66 = arith.constant 1.000000e+00 : f32
    %440 = vector.broadcast %cst_66 : f32 to vector<4x1xf32>
    %441 = arith.subf %440, %371 : vector<4x1xf32>
    %442 = vector.broadcast %441 : vector<4x1xf32> to vector<4x32xf32>
    %443 = arith.mulf %442, %358 : vector<4x32xf32>
    %444 = arith.addf %439, %443 : vector<4x32xf32>
    %445 = vector.broadcast %373 : vector<4x1xf32> to vector<4x32xf32>
    %446 = arith.mulf %445, %437 : vector<4x32xf32>
    %cst_67 = arith.constant 1.000000e+00 : f32
    %447 = vector.broadcast %cst_67 : f32 to vector<4x1xf32>
    %448 = arith.subf %447, %373 : vector<4x1xf32>
    %449 = vector.broadcast %448 : vector<4x1xf32> to vector<4x32xf32>
    %450 = arith.mulf %449, %365 : vector<4x32xf32>
    %451 = arith.addf %446, %450 : vector<4x32xf32>
    %452 = vector.broadcast %371 : vector<4x1xf32> to vector<4x32xf32>
    %453 = arith.mulf %452, %444 : vector<4x32xf32>
    %454 = vector.broadcast %373 : vector<4x1xf32> to vector<4x32xf32>
    %455 = arith.mulf %454, %451 : vector<4x32xf32>
    %456 = vector.extract_strided_slice %5 {offsets = [5, 0, 0], sizes = [1, 4, 1], strides = [1, 1, 1]} : vector<8x4x1xf32> to vector<1x4x1xf32>
    %457 = vector.shape_cast %456 : vector<1x4x1xf32> to vector<4x1xf32>
    %458 = vector.extract_strided_slice %5 {offsets = [2, 0, 0], sizes = [1, 4, 1], strides = [1, 1, 1]} : vector<8x4x1xf32> to vector<1x4x1xf32>
    %459 = vector.shape_cast %458 : vector<1x4x1xf32> to vector<4x1xf32>
    %460 = arith.truncf %444 : vector<4x32xf32> to vector<4x32xbf16>
    %cst_68 = arith.constant dense<0.000000e+00> : vector<4x96xf32>
    %461 = tpu.matmul %460, %19, %cst_68 {dimension_numbers = #tpu.dot_dimension_numbers<[1], [0], [0], [1], [0, 0, 1, 1], [], []>} : vector<4x32xbf16>, vector<32x96xbf16>, vector<4x96xf32> -> vector<4x96xf32>
    %462 = vector.broadcast %22 : vector<1x96xf32> to vector<4x96xf32>
    %463 = arith.addf %461, %462 : vector<4x96xf32>
    %464 = arith.truncf %451 : vector<4x32xf32> to vector<4x32xbf16>
    %cst_69 = arith.constant dense<0.000000e+00> : vector<4x96xf32>
    %465 = tpu.matmul %464, %21, %cst_69 {dimension_numbers = #tpu.dot_dimension_numbers<[1], [0], [0], [1], [0, 0, 1, 1], [], []>} : vector<4x32xbf16>, vector<32x96xbf16>, vector<4x96xf32> -> vector<4x96xf32>
    %466 = vector.broadcast %23 : vector<1x96xf32> to vector<4x96xf32>
    %467 = arith.addf %465, %466 : vector<4x96xf32>
    %468 = vector.extract_strided_slice %15 {offsets = [5, 0, 0], sizes = [1, 4, 96], strides = [1, 1, 1]} : vector<8x4x96xf32> to vector<1x4x96xf32>
    %469 = vector.shape_cast %468 : vector<1x4x96xf32> to vector<4x96xf32>
    %470 = vector.extract_strided_slice %469 {offsets = [0, 0], sizes = [4, 32], strides = [1, 1]} : vector<4x96xf32> to vector<4x32xf32>
    %471 = vector.extract_strided_slice %463 {offsets = [0, 0], sizes = [4, 32], strides = [1, 1]} : vector<4x96xf32> to vector<4x32xf32>
    %472 = arith.addf %470, %471 : vector<4x32xf32>
    %473 = arith.negf %472 : vector<4x32xf32>
    %474 = math.exp %473 : vector<4x32xf32>
    %cst_70 = arith.constant 1.000000e+00 : f32
    %475 = vector.broadcast %cst_70 : f32 to vector<4x32xf32>
    %476 = arith.addf %475, %474 : vector<4x32xf32>
    %477 = arith.divf %475, %476 : vector<4x32xf32>
    %478 = vector.extract_strided_slice %469 {offsets = [0, 32], sizes = [4, 32], strides = [1, 1]} : vector<4x96xf32> to vector<4x32xf32>
    %479 = vector.extract_strided_slice %463 {offsets = [0, 32], sizes = [4, 32], strides = [1, 1]} : vector<4x96xf32> to vector<4x32xf32>
    %480 = arith.addf %478, %479 : vector<4x32xf32>
    %481 = arith.negf %480 : vector<4x32xf32>
    %482 = math.exp %481 : vector<4x32xf32>
    %cst_71 = arith.constant 1.000000e+00 : f32
    %483 = vector.broadcast %cst_71 : f32 to vector<4x32xf32>
    %484 = arith.addf %483, %482 : vector<4x32xf32>
    %485 = arith.divf %483, %484 : vector<4x32xf32>
    %486 = vector.extract_strided_slice %469 {offsets = [0, 64], sizes = [4, 32], strides = [1, 1]} : vector<4x96xf32> to vector<4x32xf32>
    %487 = vector.extract_strided_slice %463 {offsets = [0, 64], sizes = [4, 32], strides = [1, 1]} : vector<4x96xf32> to vector<4x32xf32>
    %488 = arith.mulf %477, %487 : vector<4x32xf32>
    %489 = arith.addf %486, %488 : vector<4x32xf32>
    %490 = math.tanh %489 : vector<4x32xf32>
    %cst_72 = arith.constant 1.000000e+00 : f32
    %491 = vector.broadcast %cst_72 : f32 to vector<4x32xf32>
    %492 = arith.subf %491, %485 : vector<4x32xf32>
    %493 = arith.mulf %492, %490 : vector<4x32xf32>
    %494 = arith.mulf %485, %444 : vector<4x32xf32>
    %495 = arith.addf %493, %494 : vector<4x32xf32>
    %496 = vector.extract_strided_slice %17 {offsets = [2, 0, 0], sizes = [1, 4, 96], strides = [1, 1, 1]} : vector<8x4x96xf32> to vector<1x4x96xf32>
    %497 = vector.shape_cast %496 : vector<1x4x96xf32> to vector<4x96xf32>
    %498 = vector.extract_strided_slice %497 {offsets = [0, 0], sizes = [4, 32], strides = [1, 1]} : vector<4x96xf32> to vector<4x32xf32>
    %499 = vector.extract_strided_slice %467 {offsets = [0, 0], sizes = [4, 32], strides = [1, 1]} : vector<4x96xf32> to vector<4x32xf32>
    %500 = arith.addf %498, %499 : vector<4x32xf32>
    %501 = arith.negf %500 : vector<4x32xf32>
    %502 = math.exp %501 : vector<4x32xf32>
    %cst_73 = arith.constant 1.000000e+00 : f32
    %503 = vector.broadcast %cst_73 : f32 to vector<4x32xf32>
    %504 = arith.addf %503, %502 : vector<4x32xf32>
    %505 = arith.divf %503, %504 : vector<4x32xf32>
    %506 = vector.extract_strided_slice %497 {offsets = [0, 32], sizes = [4, 32], strides = [1, 1]} : vector<4x96xf32> to vector<4x32xf32>
    %507 = vector.extract_strided_slice %467 {offsets = [0, 32], sizes = [4, 32], strides = [1, 1]} : vector<4x96xf32> to vector<4x32xf32>
    %508 = arith.addf %506, %507 : vector<4x32xf32>
    %509 = arith.negf %508 : vector<4x32xf32>
    %510 = math.exp %509 : vector<4x32xf32>
    %cst_74 = arith.constant 1.000000e+00 : f32
    %511 = vector.broadcast %cst_74 : f32 to vector<4x32xf32>
    %512 = arith.addf %511, %510 : vector<4x32xf32>
    %513 = arith.divf %511, %512 : vector<4x32xf32>
    %514 = vector.extract_strided_slice %497 {offsets = [0, 64], sizes = [4, 32], strides = [1, 1]} : vector<4x96xf32> to vector<4x32xf32>
    %515 = vector.extract_strided_slice %467 {offsets = [0, 64], sizes = [4, 32], strides = [1, 1]} : vector<4x96xf32> to vector<4x32xf32>
    %516 = arith.mulf %505, %515 : vector<4x32xf32>
    %517 = arith.addf %514, %516 : vector<4x32xf32>
    %518 = math.tanh %517 : vector<4x32xf32>
    %cst_75 = arith.constant 1.000000e+00 : f32
    %519 = vector.broadcast %cst_75 : f32 to vector<4x32xf32>
    %520 = arith.subf %519, %513 : vector<4x32xf32>
    %521 = arith.mulf %520, %518 : vector<4x32xf32>
    %522 = arith.mulf %513, %451 : vector<4x32xf32>
    %523 = arith.addf %521, %522 : vector<4x32xf32>
    %524 = vector.broadcast %457 : vector<4x1xf32> to vector<4x32xf32>
    %525 = arith.mulf %524, %495 : vector<4x32xf32>
    %cst_76 = arith.constant 1.000000e+00 : f32
    %526 = vector.broadcast %cst_76 : f32 to vector<4x1xf32>
    %527 = arith.subf %526, %457 : vector<4x1xf32>
    %528 = vector.broadcast %527 : vector<4x1xf32> to vector<4x32xf32>
    %529 = arith.mulf %528, %444 : vector<4x32xf32>
    %530 = arith.addf %525, %529 : vector<4x32xf32>
    %531 = vector.broadcast %459 : vector<4x1xf32> to vector<4x32xf32>
    %532 = arith.mulf %531, %523 : vector<4x32xf32>
    %cst_77 = arith.constant 1.000000e+00 : f32
    %533 = vector.broadcast %cst_77 : f32 to vector<4x1xf32>
    %534 = arith.subf %533, %459 : vector<4x1xf32>
    %535 = vector.broadcast %534 : vector<4x1xf32> to vector<4x32xf32>
    %536 = arith.mulf %535, %451 : vector<4x32xf32>
    %537 = arith.addf %532, %536 : vector<4x32xf32>
    %538 = vector.broadcast %457 : vector<4x1xf32> to vector<4x32xf32>
    %539 = arith.mulf %538, %530 : vector<4x32xf32>
    %540 = vector.broadcast %459 : vector<4x1xf32> to vector<4x32xf32>
    %541 = arith.mulf %540, %537 : vector<4x32xf32>
    %542 = vector.extract_strided_slice %5 {offsets = [6, 0, 0], sizes = [1, 4, 1], strides = [1, 1, 1]} : vector<8x4x1xf32> to vector<1x4x1xf32>
    %543 = vector.shape_cast %542 : vector<1x4x1xf32> to vector<4x1xf32>
    %544 = vector.extract_strided_slice %5 {offsets = [1, 0, 0], sizes = [1, 4, 1], strides = [1, 1, 1]} : vector<8x4x1xf32> to vector<1x4x1xf32>
    %545 = vector.shape_cast %544 : vector<1x4x1xf32> to vector<4x1xf32>
    %546 = arith.truncf %530 : vector<4x32xf32> to vector<4x32xbf16>
    %cst_78 = arith.constant dense<0.000000e+00> : vector<4x96xf32>
    %547 = tpu.matmul %546, %19, %cst_78 {dimension_numbers = #tpu.dot_dimension_numbers<[1], [0], [0], [1], [0, 0, 1, 1], [], []>} : vector<4x32xbf16>, vector<32x96xbf16>, vector<4x96xf32> -> vector<4x96xf32>
    %548 = vector.broadcast %22 : vector<1x96xf32> to vector<4x96xf32>
    %549 = arith.addf %547, %548 : vector<4x96xf32>
    %550 = arith.truncf %537 : vector<4x32xf32> to vector<4x32xbf16>
    %cst_79 = arith.constant dense<0.000000e+00> : vector<4x96xf32>
    %551 = tpu.matmul %550, %21, %cst_79 {dimension_numbers = #tpu.dot_dimension_numbers<[1], [0], [0], [1], [0, 0, 1, 1], [], []>} : vector<4x32xbf16>, vector<32x96xbf16>, vector<4x96xf32> -> vector<4x96xf32>
    %552 = vector.broadcast %23 : vector<1x96xf32> to vector<4x96xf32>
    %553 = arith.addf %551, %552 : vector<4x96xf32>
    %554 = vector.extract_strided_slice %15 {offsets = [6, 0, 0], sizes = [1, 4, 96], strides = [1, 1, 1]} : vector<8x4x96xf32> to vector<1x4x96xf32>
    %555 = vector.shape_cast %554 : vector<1x4x96xf32> to vector<4x96xf32>
    %556 = vector.extract_strided_slice %555 {offsets = [0, 0], sizes = [4, 32], strides = [1, 1]} : vector<4x96xf32> to vector<4x32xf32>
    %557 = vector.extract_strided_slice %549 {offsets = [0, 0], sizes = [4, 32], strides = [1, 1]} : vector<4x96xf32> to vector<4x32xf32>
    %558 = arith.addf %556, %557 : vector<4x32xf32>
    %559 = arith.negf %558 : vector<4x32xf32>
    %560 = math.exp %559 : vector<4x32xf32>
    %cst_80 = arith.constant 1.000000e+00 : f32
    %561 = vector.broadcast %cst_80 : f32 to vector<4x32xf32>
    %562 = arith.addf %561, %560 : vector<4x32xf32>
    %563 = arith.divf %561, %562 : vector<4x32xf32>
    %564 = vector.extract_strided_slice %555 {offsets = [0, 32], sizes = [4, 32], strides = [1, 1]} : vector<4x96xf32> to vector<4x32xf32>
    %565 = vector.extract_strided_slice %549 {offsets = [0, 32], sizes = [4, 32], strides = [1, 1]} : vector<4x96xf32> to vector<4x32xf32>
    %566 = arith.addf %564, %565 : vector<4x32xf32>
    %567 = arith.negf %566 : vector<4x32xf32>
    %568 = math.exp %567 : vector<4x32xf32>
    %cst_81 = arith.constant 1.000000e+00 : f32
    %569 = vector.broadcast %cst_81 : f32 to vector<4x32xf32>
    %570 = arith.addf %569, %568 : vector<4x32xf32>
    %571 = arith.divf %569, %570 : vector<4x32xf32>
    %572 = vector.extract_strided_slice %555 {offsets = [0, 64], sizes = [4, 32], strides = [1, 1]} : vector<4x96xf32> to vector<4x32xf32>
    %573 = vector.extract_strided_slice %549 {offsets = [0, 64], sizes = [4, 32], strides = [1, 1]} : vector<4x96xf32> to vector<4x32xf32>
    %574 = arith.mulf %563, %573 : vector<4x32xf32>
    %575 = arith.addf %572, %574 : vector<4x32xf32>
    %576 = math.tanh %575 : vector<4x32xf32>
    %cst_82 = arith.constant 1.000000e+00 : f32
    %577 = vector.broadcast %cst_82 : f32 to vector<4x32xf32>
    %578 = arith.subf %577, %571 : vector<4x32xf32>
    %579 = arith.mulf %578, %576 : vector<4x32xf32>
    %580 = arith.mulf %571, %530 : vector<4x32xf32>
    %581 = arith.addf %579, %580 : vector<4x32xf32>
    %582 = vector.extract_strided_slice %17 {offsets = [1, 0, 0], sizes = [1, 4, 96], strides = [1, 1, 1]} : vector<8x4x96xf32> to vector<1x4x96xf32>
    %583 = vector.shape_cast %582 : vector<1x4x96xf32> to vector<4x96xf32>
    %584 = vector.extract_strided_slice %583 {offsets = [0, 0], sizes = [4, 32], strides = [1, 1]} : vector<4x96xf32> to vector<4x32xf32>
    %585 = vector.extract_strided_slice %553 {offsets = [0, 0], sizes = [4, 32], strides = [1, 1]} : vector<4x96xf32> to vector<4x32xf32>
    %586 = arith.addf %584, %585 : vector<4x32xf32>
    %587 = arith.negf %586 : vector<4x32xf32>
    %588 = math.exp %587 : vector<4x32xf32>
    %cst_83 = arith.constant 1.000000e+00 : f32
    %589 = vector.broadcast %cst_83 : f32 to vector<4x32xf32>
    %590 = arith.addf %589, %588 : vector<4x32xf32>
    %591 = arith.divf %589, %590 : vector<4x32xf32>
    %592 = vector.extract_strided_slice %583 {offsets = [0, 32], sizes = [4, 32], strides = [1, 1]} : vector<4x96xf32> to vector<4x32xf32>
    %593 = vector.extract_strided_slice %553 {offsets = [0, 32], sizes = [4, 32], strides = [1, 1]} : vector<4x96xf32> to vector<4x32xf32>
    %594 = arith.addf %592, %593 : vector<4x32xf32>
    %595 = arith.negf %594 : vector<4x32xf32>
    %596 = math.exp %595 : vector<4x32xf32>
    %cst_84 = arith.constant 1.000000e+00 : f32
    %597 = vector.broadcast %cst_84 : f32 to vector<4x32xf32>
    %598 = arith.addf %597, %596 : vector<4x32xf32>
    %599 = arith.divf %597, %598 : vector<4x32xf32>
    %600 = vector.extract_strided_slice %583 {offsets = [0, 64], sizes = [4, 32], strides = [1, 1]} : vector<4x96xf32> to vector<4x32xf32>
    %601 = vector.extract_strided_slice %553 {offsets = [0, 64], sizes = [4, 32], strides = [1, 1]} : vector<4x96xf32> to vector<4x32xf32>
    %602 = arith.mulf %591, %601 : vector<4x32xf32>
    %603 = arith.addf %600, %602 : vector<4x32xf32>
    %604 = math.tanh %603 : vector<4x32xf32>
    %cst_85 = arith.constant 1.000000e+00 : f32
    %605 = vector.broadcast %cst_85 : f32 to vector<4x32xf32>
    %606 = arith.subf %605, %599 : vector<4x32xf32>
    %607 = arith.mulf %606, %604 : vector<4x32xf32>
    %608 = arith.mulf %599, %537 : vector<4x32xf32>
    %609 = arith.addf %607, %608 : vector<4x32xf32>
    %610 = vector.broadcast %543 : vector<4x1xf32> to vector<4x32xf32>
    %611 = arith.mulf %610, %581 : vector<4x32xf32>
    %cst_86 = arith.constant 1.000000e+00 : f32
    %612 = vector.broadcast %cst_86 : f32 to vector<4x1xf32>
    %613 = arith.subf %612, %543 : vector<4x1xf32>
    %614 = vector.broadcast %613 : vector<4x1xf32> to vector<4x32xf32>
    %615 = arith.mulf %614, %530 : vector<4x32xf32>
    %616 = arith.addf %611, %615 : vector<4x32xf32>
    %617 = vector.broadcast %545 : vector<4x1xf32> to vector<4x32xf32>
    %618 = arith.mulf %617, %609 : vector<4x32xf32>
    %cst_87 = arith.constant 1.000000e+00 : f32
    %619 = vector.broadcast %cst_87 : f32 to vector<4x1xf32>
    %620 = arith.subf %619, %545 : vector<4x1xf32>
    %621 = vector.broadcast %620 : vector<4x1xf32> to vector<4x32xf32>
    %622 = arith.mulf %621, %537 : vector<4x32xf32>
    %623 = arith.addf %618, %622 : vector<4x32xf32>
    %624 = vector.broadcast %543 : vector<4x1xf32> to vector<4x32xf32>
    %625 = arith.mulf %624, %616 : vector<4x32xf32>
    %626 = vector.broadcast %545 : vector<4x1xf32> to vector<4x32xf32>
    %627 = arith.mulf %626, %623 : vector<4x32xf32>
    %628 = vector.extract_strided_slice %5 {offsets = [7, 0, 0], sizes = [1, 4, 1], strides = [1, 1, 1]} : vector<8x4x1xf32> to vector<1x4x1xf32>
    %629 = vector.shape_cast %628 : vector<1x4x1xf32> to vector<4x1xf32>
    %630 = vector.extract_strided_slice %5 {offsets = [0, 0, 0], sizes = [1, 4, 1], strides = [1, 1, 1]} : vector<8x4x1xf32> to vector<1x4x1xf32>
    %631 = vector.shape_cast %630 : vector<1x4x1xf32> to vector<4x1xf32>
    %632 = arith.truncf %616 : vector<4x32xf32> to vector<4x32xbf16>
    %cst_88 = arith.constant dense<0.000000e+00> : vector<4x96xf32>
    %633 = tpu.matmul %632, %19, %cst_88 {dimension_numbers = #tpu.dot_dimension_numbers<[1], [0], [0], [1], [0, 0, 1, 1], [], []>} : vector<4x32xbf16>, vector<32x96xbf16>, vector<4x96xf32> -> vector<4x96xf32>
    %634 = vector.broadcast %22 : vector<1x96xf32> to vector<4x96xf32>
    %635 = arith.addf %633, %634 : vector<4x96xf32>
    %636 = arith.truncf %623 : vector<4x32xf32> to vector<4x32xbf16>
    %cst_89 = arith.constant dense<0.000000e+00> : vector<4x96xf32>
    %637 = tpu.matmul %636, %21, %cst_89 {dimension_numbers = #tpu.dot_dimension_numbers<[1], [0], [0], [1], [0, 0, 1, 1], [], []>} : vector<4x32xbf16>, vector<32x96xbf16>, vector<4x96xf32> -> vector<4x96xf32>
    %638 = vector.broadcast %23 : vector<1x96xf32> to vector<4x96xf32>
    %639 = arith.addf %637, %638 : vector<4x96xf32>
    %640 = vector.extract_strided_slice %15 {offsets = [7, 0, 0], sizes = [1, 4, 96], strides = [1, 1, 1]} : vector<8x4x96xf32> to vector<1x4x96xf32>
    %641 = vector.shape_cast %640 : vector<1x4x96xf32> to vector<4x96xf32>
    %642 = vector.extract_strided_slice %641 {offsets = [0, 0], sizes = [4, 32], strides = [1, 1]} : vector<4x96xf32> to vector<4x32xf32>
    %643 = vector.extract_strided_slice %635 {offsets = [0, 0], sizes = [4, 32], strides = [1, 1]} : vector<4x96xf32> to vector<4x32xf32>
    %644 = arith.addf %642, %643 : vector<4x32xf32>
    %645 = arith.negf %644 : vector<4x32xf32>
    %646 = math.exp %645 : vector<4x32xf32>
    %cst_90 = arith.constant 1.000000e+00 : f32
    %647 = vector.broadcast %cst_90 : f32 to vector<4x32xf32>
    %648 = arith.addf %647, %646 : vector<4x32xf32>
    %649 = arith.divf %647, %648 : vector<4x32xf32>
    %650 = vector.extract_strided_slice %641 {offsets = [0, 32], sizes = [4, 32], strides = [1, 1]} : vector<4x96xf32> to vector<4x32xf32>
    %651 = vector.extract_strided_slice %635 {offsets = [0, 32], sizes = [4, 32], strides = [1, 1]} : vector<4x96xf32> to vector<4x32xf32>
    %652 = arith.addf %650, %651 : vector<4x32xf32>
    %653 = arith.negf %652 : vector<4x32xf32>
    %654 = math.exp %653 : vector<4x32xf32>
    %cst_91 = arith.constant 1.000000e+00 : f32
    %655 = vector.broadcast %cst_91 : f32 to vector<4x32xf32>
    %656 = arith.addf %655, %654 : vector<4x32xf32>
    %657 = arith.divf %655, %656 : vector<4x32xf32>
    %658 = vector.extract_strided_slice %641 {offsets = [0, 64], sizes = [4, 32], strides = [1, 1]} : vector<4x96xf32> to vector<4x32xf32>
    %659 = vector.extract_strided_slice %635 {offsets = [0, 64], sizes = [4, 32], strides = [1, 1]} : vector<4x96xf32> to vector<4x32xf32>
    %660 = arith.mulf %649, %659 : vector<4x32xf32>
    %661 = arith.addf %658, %660 : vector<4x32xf32>
    %662 = math.tanh %661 : vector<4x32xf32>
    %cst_92 = arith.constant 1.000000e+00 : f32
    %663 = vector.broadcast %cst_92 : f32 to vector<4x32xf32>
    %664 = arith.subf %663, %657 : vector<4x32xf32>
    %665 = arith.mulf %664, %662 : vector<4x32xf32>
    %666 = arith.mulf %657, %616 : vector<4x32xf32>
    %667 = arith.addf %665, %666 : vector<4x32xf32>
    %668 = vector.extract_strided_slice %17 {offsets = [0, 0, 0], sizes = [1, 4, 96], strides = [1, 1, 1]} : vector<8x4x96xf32> to vector<1x4x96xf32>
    %669 = vector.shape_cast %668 : vector<1x4x96xf32> to vector<4x96xf32>
    %670 = vector.extract_strided_slice %669 {offsets = [0, 0], sizes = [4, 32], strides = [1, 1]} : vector<4x96xf32> to vector<4x32xf32>
    %671 = vector.extract_strided_slice %639 {offsets = [0, 0], sizes = [4, 32], strides = [1, 1]} : vector<4x96xf32> to vector<4x32xf32>
    %672 = arith.addf %670, %671 : vector<4x32xf32>
    %673 = arith.negf %672 : vector<4x32xf32>
    %674 = math.exp %673 : vector<4x32xf32>
    %cst_93 = arith.constant 1.000000e+00 : f32
    %675 = vector.broadcast %cst_93 : f32 to vector<4x32xf32>
    %676 = arith.addf %675, %674 : vector<4x32xf32>
    %677 = arith.divf %675, %676 : vector<4x32xf32>
    %678 = vector.extract_strided_slice %669 {offsets = [0, 32], sizes = [4, 32], strides = [1, 1]} : vector<4x96xf32> to vector<4x32xf32>
    %679 = vector.extract_strided_slice %639 {offsets = [0, 32], sizes = [4, 32], strides = [1, 1]} : vector<4x96xf32> to vector<4x32xf32>
    %680 = arith.addf %678, %679 : vector<4x32xf32>
    %681 = arith.negf %680 : vector<4x32xf32>
    %682 = math.exp %681 : vector<4x32xf32>
    %cst_94 = arith.constant 1.000000e+00 : f32
    %683 = vector.broadcast %cst_94 : f32 to vector<4x32xf32>
    %684 = arith.addf %683, %682 : vector<4x32xf32>
    %685 = arith.divf %683, %684 : vector<4x32xf32>
    %686 = vector.extract_strided_slice %669 {offsets = [0, 64], sizes = [4, 32], strides = [1, 1]} : vector<4x96xf32> to vector<4x32xf32>
    %687 = vector.extract_strided_slice %639 {offsets = [0, 64], sizes = [4, 32], strides = [1, 1]} : vector<4x96xf32> to vector<4x32xf32>
    %688 = arith.mulf %677, %687 : vector<4x32xf32>
    %689 = arith.addf %686, %688 : vector<4x32xf32>
    %690 = math.tanh %689 : vector<4x32xf32>
    %cst_95 = arith.constant 1.000000e+00 : f32
    %691 = vector.broadcast %cst_95 : f32 to vector<4x32xf32>
    %692 = arith.subf %691, %685 : vector<4x32xf32>
    %693 = arith.mulf %692, %690 : vector<4x32xf32>
    %694 = arith.mulf %685, %623 : vector<4x32xf32>
    %695 = arith.addf %693, %694 : vector<4x32xf32>
    %696 = vector.broadcast %629 : vector<4x1xf32> to vector<4x32xf32>
    %697 = arith.mulf %696, %667 : vector<4x32xf32>
    %cst_96 = arith.constant 1.000000e+00 : f32
    %698 = vector.broadcast %cst_96 : f32 to vector<4x1xf32>
    %699 = arith.subf %698, %629 : vector<4x1xf32>
    %700 = vector.broadcast %699 : vector<4x1xf32> to vector<4x32xf32>
    %701 = arith.mulf %700, %616 : vector<4x32xf32>
    %702 = arith.addf %697, %701 : vector<4x32xf32>
    %703 = vector.broadcast %631 : vector<4x1xf32> to vector<4x32xf32>
    %704 = arith.mulf %703, %695 : vector<4x32xf32>
    %cst_97 = arith.constant 1.000000e+00 : f32
    %705 = vector.broadcast %cst_97 : f32 to vector<4x1xf32>
    %706 = arith.subf %705, %631 : vector<4x1xf32>
    %707 = vector.broadcast %706 : vector<4x1xf32> to vector<4x32xf32>
    %708 = arith.mulf %707, %623 : vector<4x32xf32>
    %709 = arith.addf %704, %708 : vector<4x32xf32>
    %710 = vector.broadcast %629 : vector<4x1xf32> to vector<4x32xf32>
    %711 = arith.mulf %710, %702 : vector<4x32xf32>
    %712 = vector.broadcast %631 : vector<4x1xf32> to vector<4x32xf32>
    %713 = arith.mulf %712, %709 : vector<4x32xf32>
    %714 = tpu.concatenate %109, %195, %281, %367, %453, %539, %625, %711 in 0 : vector<4x32xf32>, vector<4x32xf32>, vector<4x32xf32>, vector<4x32xf32>, vector<4x32xf32>, vector<4x32xf32>, vector<4x32xf32>, vector<4x32xf32> -> vector<32x32xf32>
    %715 = tpu.concatenate %713, %627, %541, %455, %369, %283, %197, %111 in 0 : vector<4x32xf32>, vector<4x32xf32>, vector<4x32xf32>, vector<4x32xf32>, vector<4x32xf32>, vector<4x32xf32>, vector<4x32xf32>, vector<4x32xf32> -> vector<32x32xf32>
    %716 = vector.shape_cast %714 : vector<32x32xf32> to vector<8x4x32xf32>
    %717 = vector.shape_cast %715 : vector<32x32xf32> to vector<8x4x32xf32>
    %c0_98 = arith.constant 0 : index
    %c0_99 = arith.constant 0 : index
    %718 = vector.load %arg8[%c0_98, %c0_99] : memref<64x32xf32, #tpu.memory_space<vmem>>, vector<32x32xf32>
    %719 = arith.truncf %718 : vector<32x32xf32> to vector<32x32xbf16>
    %c32 = arith.constant 32 : index
    %c0_100 = arith.constant 0 : index
    %720 = vector.load %arg8[%c32, %c0_100] : memref<64x32xf32, #tpu.memory_space<vmem>>, vector<32x32xf32>
    %721 = arith.truncf %720 : vector<32x32xf32> to vector<32x32xbf16>
    %722 = arith.truncf %714 : vector<32x32xf32> to vector<32x32xbf16>
    %cst_101 = arith.constant dense<0.000000e+00> : vector<32x32xf32>
    %723 = tpu.matmul %722, %719, %cst_101 {dimension_numbers = #tpu.dot_dimension_numbers<[1], [0], [0], [1], [0, 0, 1, 1], [], []>} : vector<32x32xbf16>, vector<32x32xbf16>, vector<32x32xf32> -> vector<32x32xf32>
    %724 = arith.truncf %715 : vector<32x32xf32> to vector<32x32xbf16>
    %cst_102 = arith.constant dense<0.000000e+00> : vector<32x32xf32>
    %725 = tpu.matmul %724, %721, %cst_102 {dimension_numbers = #tpu.dot_dimension_numbers<[1], [0], [0], [1], [0, 0, 1, 1], [], []>} : vector<32x32xbf16>, vector<32x32xbf16>, vector<32x32xf32> -> vector<32x32xf32>
    %726 = arith.addf %723, %725 : vector<32x32xf32>
    %c0_103 = arith.constant 0 : index
    %c0_104 = arith.constant 0 : index
    %727 = vector.load %arg9[%c0_103, %c0_104] : memref<1x32xf32, #tpu.memory_space<vmem>>, vector<1x32xf32>
    %728 = vector.broadcast %727 : vector<1x32xf32> to vector<32x32xf32>
    %729 = arith.addf %726, %728 : vector<32x32xf32>
    %730 = math.tanh %729 : vector<32x32xf32>
    %c0_105 = arith.constant 0 : index
    %c0_106 = arith.constant 0 : index
    %731 = vector.load %arg10[%c0_105, %c0_106] : memref<1x32xf32, #tpu.memory_space<vmem>>, vector<1x32xf32>
    %732 = vector.broadcast %731 : vector<1x32xf32> to vector<32x32xf32>
    %733 = arith.mulf %730, %732 : vector<32x32xf32>
    %cst_107 = arith.constant dense<0.000000e+00> : vector<32xf32>
    %734 = vector.multi_reduction <add>, %733, %cst_107 [1] : vector<32x32xf32> to vector<32xf32>
    %735 = vector.shape_cast %734 : vector<32xf32> to vector<32x1xf32>
    %736 = vector.shape_cast %735 : vector<32x1xf32> to vector<8x4x1xf32>
    %cst_108 = arith.constant 0.000000e+00 : f32
    %737 = vector.broadcast %cst_108 : f32 to vector<8x4x1xf32>
    %738 = arith.cmpf ogt, %5, %737 : vector<8x4x1xf32>
    %cst_109 = arith.constant -1.000000e+30 : f32
    %739 = vector.broadcast %cst_109 : f32 to vector<8x4x1xf32>
    %740 = arith.select %738, %736, %739 : vector<8x4x1xi1>, vector<8x4x1xf32>
    %cst_110 = arith.constant dense<0xFF800000> : vector<4x1xf32>
    %741 = vector.multi_reduction <maximumf>, %740, %cst_110 [0] : vector<8x4x1xf32> to vector<4x1xf32>
    %742 = vector.shape_cast %741 : vector<4x1xf32> to vector<1x4x1xf32>
    %743 = vector.broadcast %742 : vector<1x4x1xf32> to vector<8x4x1xf32>
    %744 = arith.subf %740, %743 : vector<8x4x1xf32>
    %745 = math.exp %744 : vector<8x4x1xf32>
    %746 = arith.mulf %745, %5 : vector<8x4x1xf32>
    %cst_111 = arith.constant dense<0.000000e+00> : vector<4x1xf32>
    %747 = vector.multi_reduction <add>, %746, %cst_111 [0] : vector<8x4x1xf32> to vector<4x1xf32>
    %748 = vector.shape_cast %747 : vector<4x1xf32> to vector<1x4x1xf32>
    %cst_112 = arith.constant 1.000000e-30 : f32
    %749 = vector.broadcast %cst_112 : f32 to vector<1x4x1xf32>
    %750 = arith.addf %748, %749 : vector<1x4x1xf32>
    %751 = tpu.reciprocal %750 {approx = true} : vector<1x4x1xf32> -> vector<1x4x1xf32>
    %752 = vector.broadcast %751 : vector<1x4x1xf32> to vector<8x4x1xf32>
    %753 = arith.mulf %746, %752 : vector<8x4x1xf32>
    %754 = vector.broadcast %753 : vector<8x4x1xf32> to vector<8x4x32xf32>
    %755 = arith.mulf %754, %716 : vector<8x4x32xf32>
    %cst_113 = arith.constant dense<0.000000e+00> : vector<4x32xf32>
    %756 = vector.multi_reduction <add>, %755, %cst_113 [0] : vector<8x4x32xf32> to vector<4x32xf32>
    %757 = vector.broadcast %753 : vector<8x4x1xf32> to vector<8x4x32xf32>
    %758 = arith.mulf %757, %717 : vector<8x4x32xf32>
    %cst_114 = arith.constant dense<0.000000e+00> : vector<4x32xf32>
    %759 = vector.multi_reduction <add>, %758, %cst_114 [0] : vector<8x4x32xf32> to vector<4x32xf32>
    %c0_115 = arith.constant 0 : index
    %c0_116 = arith.constant 0 : index
    %760 = vector.load %arg11[%c0_115, %c0_116] : memref<64x32xf32, #tpu.memory_space<vmem>>, vector<32x32xf32>
    %761 = arith.truncf %760 : vector<32x32xf32> to vector<32x32xbf16>
    %c32_117 = arith.constant 32 : index
    %c0_118 = arith.constant 0 : index
    %762 = vector.load %arg11[%c32_117, %c0_118] : memref<64x32xf32, #tpu.memory_space<vmem>>, vector<32x32xf32>
    %763 = arith.truncf %762 : vector<32x32xf32> to vector<32x32xbf16>
    %764 = arith.truncf %756 : vector<4x32xf32> to vector<4x32xbf16>
    %cst_119 = arith.constant dense<0.000000e+00> : vector<4x32xf32>
    %765 = tpu.matmul %764, %761, %cst_119 {dimension_numbers = #tpu.dot_dimension_numbers<[1], [0], [0], [1], [0, 0, 1, 1], [], []>} : vector<4x32xbf16>, vector<32x32xbf16>, vector<4x32xf32> -> vector<4x32xf32>
    %766 = arith.truncf %759 : vector<4x32xf32> to vector<4x32xbf16>
    %cst_120 = arith.constant dense<0.000000e+00> : vector<4x32xf32>
    %767 = tpu.matmul %766, %763, %cst_120 {dimension_numbers = #tpu.dot_dimension_numbers<[1], [0], [0], [1], [0, 0, 1, 1], [], []>} : vector<4x32xbf16>, vector<32x32xbf16>, vector<4x32xf32> -> vector<4x32xf32>
    %768 = arith.addf %765, %767 : vector<4x32xf32>
    %c0_121 = arith.constant 0 : index
    %c0_122 = arith.constant 0 : index
    %769 = vector.load %arg12[%c0_121, %c0_122] : memref<1x32xf32, #tpu.memory_space<vmem>>, vector<1x32xf32>
    %770 = vector.broadcast %769 : vector<1x32xf32> to vector<4x32xf32>
    %771 = arith.addf %768, %770 : vector<4x32xf32>
    %772 = math.tanh %771 : vector<4x32xf32>
    %c0_123 = arith.constant 0 : index
    %c0_124 = arith.constant 0 : index
    %773 = vector.load %arg13[%c0_123, %c0_124] : memref<1x32xf32, #tpu.memory_space<vmem>>, vector<1x32xf32>
    %774 = vector.broadcast %773 : vector<1x32xf32> to vector<4x32xf32>
    %775 = arith.mulf %772, %774 : vector<4x32xf32>
    %cst_125 = arith.constant dense<0.000000e+00> : vector<4xf32>
    %776 = vector.multi_reduction <add>, %775, %cst_125 [1] : vector<4x32xf32> to vector<4xf32>
    %777 = vector.shape_cast %776 : vector<4xf32> to vector<4x1xf32>
    %cst_126 = arith.constant dense<0xFF800000> : vector<1xf32>
    %778 = vector.multi_reduction <maximumf>, %777, %cst_126 [0] : vector<4x1xf32> to vector<1xf32>
    %779 = vector.shape_cast %778 : vector<1xf32> to vector<1x1xf32>
    %780 = vector.broadcast %779 : vector<1x1xf32> to vector<4x1xf32>
    %781 = arith.subf %777, %780 : vector<4x1xf32>
    %782 = math.exp %781 : vector<4x1xf32>
    %cst_127 = arith.constant dense<0.000000e+00> : vector<1xf32>
    %783 = vector.multi_reduction <add>, %782, %cst_127 [0] : vector<4x1xf32> to vector<1xf32>
    %784 = vector.shape_cast %783 : vector<1xf32> to vector<1x1xf32>
    %cst_128 = arith.constant 1.000000e-30 : f32
    %785 = vector.broadcast %cst_128 : f32 to vector<1x1xf32>
    %786 = arith.addf %784, %785 : vector<1x1xf32>
    %787 = tpu.reciprocal %786 {approx = true} : vector<1x1xf32> -> vector<1x1xf32>
    %788 = vector.broadcast %787 : vector<1x1xf32> to vector<4x1xf32>
    %789 = arith.mulf %782, %788 : vector<4x1xf32>
    %790 = vector.broadcast %789 : vector<4x1xf32> to vector<4x32xf32>
    %791 = arith.mulf %790, %756 : vector<4x32xf32>
    %cst_129 = arith.constant dense<0.000000e+00> : vector<32xf32>
    %792 = vector.multi_reduction <add>, %791, %cst_129 [0] : vector<4x32xf32> to vector<32xf32>
    %793 = vector.shape_cast %792 : vector<32xf32> to vector<1x32xf32>
    %794 = vector.broadcast %789 : vector<4x1xf32> to vector<4x32xf32>
    %795 = arith.mulf %794, %759 : vector<4x32xf32>
    %cst_130 = arith.constant dense<0.000000e+00> : vector<32xf32>
    %796 = vector.multi_reduction <add>, %795, %cst_130 [0] : vector<4x32xf32> to vector<32xf32>
    %797 = vector.shape_cast %796 : vector<32xf32> to vector<1x32xf32>
    %c0_131 = arith.constant 0 : index
    %c0_132 = arith.constant 0 : index
    %798 = vector.load %arg14[%c0_131, %c0_132] : memref<64x2xf32, #tpu.memory_space<vmem>>, vector<32x2xf32>
    %799 = arith.truncf %798 : vector<32x2xf32> to vector<32x2xbf16>
    %c32_133 = arith.constant 32 : index
    %c0_134 = arith.constant 0 : index
    %800 = vector.load %arg14[%c32_133, %c0_134] : memref<64x2xf32, #tpu.memory_space<vmem>>, vector<32x2xf32>
    %801 = arith.truncf %800 : vector<32x2xf32> to vector<32x2xbf16>
    %802 = arith.truncf %793 : vector<1x32xf32> to vector<1x32xbf16>
    %cst_135 = arith.constant dense<0.000000e+00> : vector<1x2xf32>
    %803 = tpu.matmul %802, %799, %cst_135 {dimension_numbers = #tpu.dot_dimension_numbers<[1], [0], [0], [1], [0, 0, 1, 1], [], []>} : vector<1x32xbf16>, vector<32x2xbf16>, vector<1x2xf32> -> vector<1x2xf32>
    %804 = arith.truncf %797 : vector<1x32xf32> to vector<1x32xbf16>
    %cst_136 = arith.constant dense<0.000000e+00> : vector<1x2xf32>
    %805 = tpu.matmul %804, %801, %cst_136 {dimension_numbers = #tpu.dot_dimension_numbers<[1], [0], [0], [1], [0, 0, 1, 1], [], []>} : vector<1x32xbf16>, vector<32x2xbf16>, vector<1x2xf32> -> vector<1x2xf32>
    %806 = arith.addf %803, %805 : vector<1x2xf32>
    %c0_137 = arith.constant 0 : index
    %c0_138 = arith.constant 0 : index
    %807 = vector.load %arg15[%c0_137, %c0_138] : memref<1x2xf32, #tpu.memory_space<vmem>>, vector<1x2xf32>
    %808 = arith.addf %806, %807 : vector<1x2xf32>
    %cst_139 = arith.constant dense<0xFF800000> : vector<1xf32>
    %809 = vector.multi_reduction <maximumf>, %808, %cst_139 [1] : vector<1x2xf32> to vector<1xf32>
    %810 = vector.shape_cast %809 : vector<1xf32> to vector<1x1xf32>
    %811 = vector.broadcast %810 : vector<1x1xf32> to vector<1x2xf32>
    %812 = arith.subf %808, %811 : vector<1x2xf32>
    %813 = math.exp %812 : vector<1x2xf32>
    %cst_140 = arith.constant dense<0.000000e+00> : vector<1xf32>
    %814 = vector.multi_reduction <add>, %813, %cst_140 [1] : vector<1x2xf32> to vector<1xf32>
    %815 = vector.shape_cast %814 : vector<1xf32> to vector<1x1xf32>
    %816 = vector.broadcast %815 : vector<1x1xf32> to vector<1x2xf32>
    %817 = arith.divf %813, %816 : vector<1x2xf32>
    %c0_141 = arith.constant 0 : index
    %c0_142 = arith.constant 0 : index
    %818 = vector.load %arg16[%c0_141, %c0_142] : memref<1x2xf32, #tpu.memory_space<vmem>>, vector<1x2xf32>
    tpu.vector_store %arg16[%c0_141, %c0_142], %817 {strides = array<i32>} : memref<1x2xf32, #tpu.memory_space<vmem>>, vector<1x2xf32>,
    return
  }
}

</mosaic_0001>

<bundles_post_ra>
// kernel: text_classifier_forward.1
= control target key start
LH: loop header
LB: loop body
LE: loop exit
PB: predicated region body
PF: predicated region fallthrough
CT: control target
= control target key end

     0   :  { %v2876_v0 = vmov 0.0   ;;  %vm2877_vm0 = vmmov 0   ;;  %v2878_v8 = vmov 0   ;;  %vm109_vm1 = vcmask 261120   ;;  %s2879_s21 = smov 64   ;;  %s3821_s2 = inlined_call_operand.vmem [shape: f32[32,192], index: 2, kind: input, shape index: {}]   ;;  %s3822_s4 = inlined_call_operand.vmem [shape: f32[32,96], index: 4, kind: input, shape index: {}]   ;;  %s3823_s0 = inlined_call_operand.vmem [shape: f32[32,32], index: 0, kind: input, shape index: {}]   ;;  %s3824_s5 = inlined_call_operand.vmem [shape: f32[1,96], index: 5, kind: input, shape index: {}]   ;;  %s3825_s3 = inlined_call_operand.vmem [shape: f32[1,192], index: 3, kind: input, shape index: {}]   ;;  %s3826_s1 = inlined_call_operand.vmem [shape: s32[1,4,1], index: 1, kind: input, shape index: {}]   ;;  %s3827_s6 = inlined_call_operand.vmem [shape: f32[32,96], index: 6, kind: input, shape index: {}]   ;;  %s3828_s7 = inlined_call_operand.vmem [shape: f32[1,96], index: 7, kind: input, shape index: {}]   ;;  %s3829_s8 = inlined_call_operand.vmem [shape: f32[64,32], index: 8, kind: input, shape index: {}]   ;;  %s3830_s9 = inlined_call_operand.vmem [shape: f32[1,32], index: 9, kind: input, shape index: {}]   ;;  %s3831_s10 = inlined_call_operand.vmem [shape: f32[1,32], index: 10, kind: input, shape index: {}]   ;;  %s3832_s11 = inlined_call_operand.vmem [shape: f32[64,32], index: 11, kind: input, shape index: {}]   ;;  %s3833_s12 = inlined_call_operand.vmem [shape: f32[1,32], index: 12, kind: input, shape index: {}]   ;;  %s3834_s13 = inlined_call_operand.vmem [shape: f32[1,32], index: 13, kind: input, shape index: {}]   ;;  %s3835_s14 = inlined_call_operand.vmem [shape: f32[64,2], index: 14, kind: input, shape index: {}]   ;;  %s3836_s15 = inlined_call_operand.vmem [shape: f32[1,2], index: 15, kind: input, shape index: {}]   ;;  %s3837_s16 = inlined_call_operand.vmem [shape: f32[1,2], index: 16, kind: output, shape index: {}]  }
   0x1   :  { %3839 = sst [smem:[#allocation2_spill]] %s3821_s2  ;;  %2520 = vmatprep.subr.bf16.mxu1 %v2876_v0  ;;  %v201_v3 = vld [vmem:[%s3822_s4] sm:$0xff]  ;;  %2524 = vmatprep.mubr.msk.bf16.mxu1 %vm2877_vm0, %v2876_v0  ;;  %v202_v5 = vld [vmem:[%s3822_s4 + $0x8] sm:$0xff]  ;;  %v203_v13 = vld [vmem:[%s3822_s4 + $0x10] sm:$0xff]  ;;  %v99_v33 = vlaneseq  ;;  %vm1662_vm10 = vcmask 1043456   ;;  %vm1955_vm15 = vcmask 3072  }
   0x2   :  { %s3840_s23 = sld [smem:[#allocation2_spill]]  ;;  %148 = vmatprep.mubr.bf16.mxu0 %v2878_v8  ;;  %2708 = vset.pattern.permute.xlu1 %v2878_v8  ;;  %v2992_v9 = vpack.c.bf16 %v202_v5, %v201_v3  ;;  %v204_v15 = vld [vmem:[%s3822_s4 + $0x18] sm:$0xff]  ;;  %v91_v20 = vld [vmem:[%s3823_s0] sm:$0xff]  ;;  %v92_v21 = vld [vmem:[%s3823_s0 + $0x8] sm:$0xff] }
   0x3   :  { %2709 = vset.pattern.permute.xlu0 %v2878_v8  ;;  %v3014_v18 = vpack.c.bf16 %v204_v15, %v203_v13  ;;  %v95_v22 = vpack.c.bf16 %v92_v21, %v91_v20  ;;  %v3038_v23 = vld [vmem:[%s3824_s5] ss:$0 sm:$0xff]  ;;  %v3048_v34 = vshrl.u32 %v99_v33, 7  ;;  %v93_v51 = vld [vmem:[%s3823_s0 + $0x10] sm:$0xff]  ;;  %v94_v52 = vld [vmem:[%s3823_s0 + $0x18] sm:$0xff] }
   0x4   :  { %2521 = vmatpush3.bf16.msra.mxu1 %v2992_v9  ;;  %v3054_v36 = vld [vmem:[%s3825_s3] sm:$0x3]  ;;  %v96_v53 = vpack.c.bf16 %v94_v52, %v93_v51  ;;  %v208_v57 = vld [vmem:[%s3827_s6 + $0x8] sm:$0xff]  ;;  %v209_v58 = vld [vmem:[%s3827_s6 + $0x10] sm:$0xff] }
   0x5   :  { %2522 = vmatprep.subr.bf16.mxu1 %v2876_v0  ;;  %v101_v35 = vsub.s32 0, %v3048_v34  ;;  %v3067_v46 = vld [vmem:[%s3826_s1] sm:$0xf]  ;;  %s2880_s1 = smov 96   ;;  %v210_v61 = vld [vmem:[%s3827_s6 + $0x18] sm:$0xff] }
   0x6   :  { %vm55_vm2 = vcmp.gt.s32.totalorder %v3067_v46, 0  ;;  %v207_v56 = vld [vmem:[%s3827_s6] sm:$0xff]  ;;  %vm56_vm3 = vcmp.gt.s32.totalorder %v3067_v46, 1  ;;  %s2881_s6 = smov 32   ;;  %vm62_vm4 = vcmp.gt.s32.totalorder %v3067_v46, 7  ;;  %vm57_vm5 = vcmp.gt.s32.totalorder %v3067_v46, 2 }
   0x7   :  { %v3057_v37 = vrot.slane %v3054_v36, %v101_v35  ;;  %v3071_v47 = vsel %vm55_vm2, 1.0, %v2876_v0  ;;  %v3095_v60 = vpack.c.bf16 %v208_v57, %v207_v56  ;;  %vm61_vm6 = vcmp.gt.s32.totalorder %v3067_v46, 6 }
   0x8   :  { %v80_v1 = vld [vmem:[%s3840_s23 + $0x8] sm:$0xff]  ;;  %v82_v2 = vld [vmem:[%s3840_s23 + $0x18] sm:$0xff]  ;;  %v79_v6 = vld [vmem:[%s3840_s23] sm:$0xff]  ;;  %2523 = vmatpush3.bf16.msra.mxu1 %v3014_v18  ;;  %v384_v48 = vsub.f32 1.0, %v3071_v47  ;;  %vm60_vm7 = vcmp.gt.s32.totalorder %v3067_v46, 5  ;;  %vm58_vm8 = vcmp.gt.s32.totalorder %v3067_v46, 3 }
   0x9   :  { %v88_v4 = vpack.c.bf16 %v82_v2, %v80_v1  ;;  %v81_v7 = vld [vmem:[%s3840_s23 + $0x10] sm:$0xff]  ;;  %v84_v11 = vld [vmem:[%s3840_s23 + $0x28] sm:$0xff]  ;;  %v86_v12 = vld [vmem:[%s3840_s23 + $0x38] sm:$0xff]  ;;  %2528 = vmatprep.subr.bf16.mxu1 %v2876_v0  ;;  %v3101_v1 = vpack.c.bf16 %v210_v61, %v209_v58  ;;  %vm59_vm9 = vcmp.gt.s32.totalorder %v3067_v46, 4  ;;  %vm1939_vm11 = vcmp.gt.f32.partialorder %v3071_v47, 0.0 }
   0xa   :  { %v87_v10 = vpack.c.bf16 %v81_v7, %v79_v6  ;;  %v90_v14 = vpack.c.bf16 %v86_v12, %v84_v11  ;;  %v83_v16 = vld [vmem:[%s3840_s23 + $0x20] sm:$0xff]  ;;  %v85_v17 = vld [vmem:[%s3840_s23 + $0x30] sm:$0xff] }
   0xb   :  { %116 = vmatprep.subr.bf16.mxu0 %v88_v4  ;;  %v89_v19 = vpack.c.bf16 %v85_v17, %v83_v16  ;;  %2525 = vmatmul.mubr.bf16.vlgmr.msra.gmra.mrb[0].mxu1 %v2878_v8 }
   0xc   :  { %117 = vmatpush1.bf16.msra.mxu0 %v87_v10  ;;  %2532 = vmatprep.mubr.msk.bf16.mxu1 %vm2877_vm0, %v2876_v0 }
   0xd   :  { %118 = vmatprep.subr.bf16.mxu0 %v90_v14  ;;  %2529 = vmatpush3.bf16.msra.mxu1 %v3095_v60 }
   0xe   :  { %2530 = vmatprep.subr.bf16.mxu1 %v2876_v0 }
  0x10   :  { %119 = vmatpush1.bf16.msra.mxu0 %v89_v19 }
  0x11   :  { %2536 = vmatprep.subr.bf16.mxu0 %v2876_v0  ;;  %2531 = vmatpush3.bf16.msra.mxu1 %v3101_v1 }
  0x12   :  { %2544 = vmatprep.subr.bf16.mxu1 %v2876_v0 }
  0x13   :  { %2398 = vmatmul.mubr.msk.bf16.vlgmr.msra.gmra.mrb[0].mxu0 %vm109_vm1, %v95_v22 }
  0x14   :  { %2537 = vmatpush3.bf16.msra.mxu0 %v2992_v9  ;;  %158 = vmatprep.mubr.bf16.mxu0 %v2878_v8 }
  0x15   :  { %2538 = vmatprep.subr.bf16.mxu0 %v2876_v0  ;;  %2533 = vmatmul.mubr.bf16.vlgmr.msra.gmra.mrb[4].mxu1 %v2878_v8 }
  0x16   :  { %2545 = vmatpush3.bf16.msra.mxu1 %v3095_v60  ;;  %2548 = vmatprep.mubr.msk.bf16.mxu1 %vm2877_vm0, %v2876_v0 }
  0x17   :  { %2546 = vmatprep.subr.bf16.mxu1 %v2876_v0 }
  0x18   :  { %2539 = vmatpush3.bf16.msra.mxu0 %v3014_v18 }
  0x19   :  { %2552 = vmatprep.subr.bf16.mxu0 %v2876_v0 }
  0x1a   :  { %2547 = vmatpush3.bf16.msra.mxu1 %v3101_v1 }
  0x1b   :  { %2399 = vmatmul.mubr.msk.bf16.gmra.mrb[4].mxu0 %vm109_vm1, %v96_v53  ;;  %2560 = vmatprep.subr.bf16.mxu1 %v2876_v0 }
  0x1c   :  { %2540 = vmatprep.mubr.msk.bf16.mxu0 %vm2877_vm0, %v2876_v0 }
  0xde   :  { %v258_v24 = vpop.f32.mrb[0].mxu1 }
  0xdf   :  { %v259_v26 = vadd.f32 %v3038_v23, %v258_v24  ;;  %v2526_v27 = vpop.f32.mrb[1].mxu1 }
  0xe0   :  { %v261_v29 = vpop.f32.mrb[2].mxu1 }
  0xe1   :  { %318 = vrot.lane.b32.xlu0 %v259_v26, %s2879_s21  ;;  %v2527_v31 = vpop.f32.mrb[3].mxu1 }
  0xe6   :  { %v150_v25 = vpop.f32.mrb[0].mxu0 }
  0xe7   :  { %v3041_v28 = vpop.f32.mrb[1].mxu0  ;;  %v3060_v38 = vadd.f32 %v150_v25, %v3057_v37 }
  0xe8   :  { %v3043_v30 = vpop.f32.mrb[2].mxu0  ;;  %v304_v16 = vpop.f32.mrb[4].mxu1 }
  0xe9   :  { %v3046_v32 = vpop.f32.mrb[3].mxu0  ;;  %v310_v39 = vadd.f32 %v259_v26, %v3060_v38  ;;  %v2534_v20 = vpop.f32.mrb[5].mxu1  ;;  %v173_v26 = vcombine.high %v3060_v38, %v3060_v38 }
  0xea   :  { %v307_v22 = vpop.f32.mrb[6].mxu1 }
  0xeb   :  { %v2402_v40 = vmul.f32 -1.442695, %v310_v39  ;;  %v2535_v25 = vpop.f32.mrb[7].mxu1 }
  0xed   :  { %2710 = vpow2.f32 %v2402_v40 }
  0xee   :  { %v3114_v3 = vpop.f32.mrb[4].mxu0 }
  0xef   :  { %v3116_v4 = vpop.f32.mrb[5].mxu0 }
  0xf0   :  { %v164_v5 = vpop.f32.mrb[6].mxu0 }
  0xf1   :  { %v166_v6 = vpop.f32.mrb[7].mxu0 }
  0xf7   :  { %v2711_v41 = vpop.eup %2710 }
  0xf8   :  { %v314_v42 = vadd.f32 1.0, %v2711_v41  ;;  %v3142_v41 = vsel %vm56_vm3, 1.0, %v2876_v0 }
  0xf9   :  { %vm1940_vm12 = vcmp.gt.f32.partialorder %v3142_v41, 0.0 }
  0xfa   :  { %2712 = vrcp.f32 %v314_v42  ;;  %v105_v42 = vsub.s32 1, %v3048_v34 }
 0x104   :  { %v2713_v43 = vpop.eup %2712 }
 0x105   :  { %v328_v55 = vsub.f32 1.0, %v2713_v43  ;;  %v334_v62 = vmul.f32 0.0, %v2713_v43 }
 0x153   :  { %v319_v44 = vpop.permute.xlu0 %318 }
 0x154   :  { %v321_v45 = vmul.f32 %v2713_v43, %v319_v44  ;;  %v574_v43 = vsub.f32 1.0, %v3142_v41  ;;  %v3151_v44 = vld [vmem:[%s3828_s7] ss:$0 sm:$0xff] }
 0x156   :  { %323 = vrot.lane.b32.xlu0 %v321_v45, %s2879_s21  ;;  %v3154_v45 = vrot.slane %v3054_v36, %v105_v42  ;;  %v3169_v36 = vsel %vm62_vm4, 1.0, %v2876_v0 }
 0x157   :  { %v398_v22 = vsub.f32 1.0, %v3169_v36 }
 0x15a   :  { %387 = vperm.xlu0 %2709, %v384_v48   ;;  %v305_v48 = vadd.f32 %v3151_v44, %v304_v16 }
 0x1c8   :  { %v324_v49 = vpop.permute.xlu0 %323 }
 0x1c9   :  { %v326_v50 = vadd.f32 %v324_v49, %v3060_v38  ;;  %v3158_v49 = vadd.f32 %v164_v5, %v3057_v37 }
 0x1cb   :  { %2714 = vtanh.f32 %v326_v50  ;;  %v3161_v50 = vadd.f32 %v166_v6, %v3154_v45 }
 0x1cd   :  { %v192_v51 = vcombine.high %v3158_v49, %v3161_v50 }
 0x1d5   :  { %v2715_v54 = vpop.eup %2714 }
 0x1d6   :  { %330 = vrot.lane.b32.xlu1 %v2715_v54, %s2880_s1 }
 0x1d9   :  { %v3120_v8 = vpop.permute.xlu0 %387 }
 0x1da   :  { %376 = vperm.xlu1 %2708, %v3071_v47   ;;  %v390_v10 = vmul.f32 0.0, %v3120_v8 }
 0x248   :  { %v331_v59 = vpop.permute.xlu1 %330 }
 0x249   :  { %v333_v63 = vmul.f32 %v331_v59, %v328_v55 }
 0x24b   :  { %v335_v2 = vadd.f32 %v334_v62, %v333_v63 }
 0x24d   :  { %380 = vrot.lane.b32.xlu1 %v335_v2, %s2880_s1 }
 0x259   :  { %v3118_v7 = vpop.permute.xlu1 %376 }
 0x2bf   :  { %v381_v11 = vpop.permute.xlu1 %380 }
 0x2c0   :  { %v383_v12 = vmul.f32 %v381_v11, %v3118_v7 }
 0x2c2   :  { %v3124_v13 = vadd.f32 %v390_v10, %v383_v12 }
 0x2c4   :  { %v408_v14 = vpack.c.bf16 %v3124_v13, %v3124_v13 }
 0x2c6   :  { %2541 = vmatmul.mubr.msk.bf16.vlgmr.msra.gmra.mrb[8].mxu0 %vm109_vm1, %v408_v14 }
 0x2c7   :  { %2553 = vmatpush3.bf16.msra.mxu0 %v2992_v9  ;;  %2556 = vmatprep.mubr.msk.bf16.mxu0 %vm2877_vm0, %v2876_v0 }
 0x2c8   :  { %2554 = vmatprep.subr.bf16.mxu0 %v2876_v0 }
 0x2cb   :  { %2555 = vmatpush3.bf16.msra.mxu0 %v3014_v18 }
 0x2cc   :  { %2568 = vmatprep.subr.bf16.mxu0 %v2876_v0 }
 0x399   :  { %v446_v15 = vpop.f32.mrb[8].mxu0 }
 0x39a   :  { %v447_v17 = vadd.f32 %v3038_v23, %v446_v15  ;;  %v2542_v19 = vpop.f32.mrb[9].mxu0 }
 0x39b   :  { %v449_v21 = vpop.f32.mrb[10].mxu0 }
 0x39c   :  { %504 = vrot.lane.b32.xlu1 %v447_v17, %s2879_s21  ;;  %v2543_v24 = vpop.f32.mrb[11].mxu0  ;;  %v496_v27 = vadd.f32 %v447_v17, %v173_v26 }
 0x39d   :  { %v347_v24 = vrot.slane %v192_v51, 4 }
 0x39e   :  { %v2407_v29 = vmul.f32 -1.442695, %v496_v27 }
 0x3a0   :  { %2716 = vpow2.f32 %v2407_v29 }
 0x3aa   :  { %v2717_v31 = vpop.eup %2716 }
 0x3ab   :  { %v500_v33 = vadd.f32 1.0, %v2717_v31 }
 0x3ad   :  { %2718 = vrcp.f32 %v500_v33 }
 0x3b7   :  { %v2719_v35 = vpop.eup %2718 }
 0x3b8   :  { %v514_v56 = vsub.f32 1.0, %v2719_v35 }
 0x40e   :  { %v505_v39 = vpop.permute.xlu1 %504 }
 0x40f   :  { %v507_v40 = vmul.f32 %v2719_v35, %v505_v39 }
 0x411   :  { %509 = vrot.lane.b32.xlu0 %v507_v40, %s2879_s21 }
 0x415   :  { %521 = vrot.lane.b32.xlu0 %v3124_v13, %s2881_s6 }
 0x419   :  { %577 = vperm.xlu0 %2709, %v574_v43  }
 0x41d   :  { %337 = vrot.lane.b32.xlu0 %v305_v48, %s2880_s1 }
 0x421   :  { %360 = vrot.lane.b32.xlu0 %v192_v51, %s2880_s1 }
 0x425   :  { %394 = vperm.xlu0 %2709, %v3169_v36  }
 0x483   :  { %v510_v52 = vpop.permute.xlu0 %509 }
 0x484   :  { %v512_v53 = vadd.f32 %v510_v52, %v173_v26 }
 0x486   :  { %2720 = vtanh.f32 %v512_v53 }
 0x487   :  { %v522_v55 = vpop.permute.xlu0 %521 }
 0x488   :  { %v524_v58 = vmul.f32 %v2719_v35, %v522_v55 }
 0x490   :  { %v2721_v54 = vpop.eup %2720 }
 0x491   :  { %516 = vrot.lane.b32.xlu1 %v2721_v54, %s2880_s1 }
 0x495   :  { %566 = vperm.xlu1 %2708, %v3142_v41  }
 0x498   :  { %v3176_v62 = vpop.permute.xlu0 %577 }
 0x499   :  { %v580_v14 = vmul.f32 %v3176_v62, %v3124_v13 }
 0x49c   :  { %v338_v63 = vpop.permute.xlu0 %337 }
 0x49d   :  { %v340_v2 = vadd.f32 %v338_v63, %v192_v51  ;;  %v349_v25 = vadd.f32 %v347_v24, %v338_v63 }
 0x49f   :  { %v2403_v5 = vmul.f32 -1.442695, %v340_v2  ;;  %v2404_v26 = vmul.f32 -1.442695, %v349_v25 }
 0x4a0   :  { %v361_v31 = vpop.permute.xlu0 %360 }
 0x4a1   :  { %2722 = vpow2.f32 %v2403_v5  ;;  %v362_v33 = vrot.slane %v361_v31, 4  ;;  %v3235_v31 = vsel %vm61_vm6, 1.0, %v2876_v0  ;;  %vm2076_vm6 = vcmask 257024  }
 0x4a2   :  { %vm1945_vm4 = vcmp.gt.f32.partialorder %v3235_v31, 0.0 }
 0x4a4   :  { %v3196_v54 = vpop.permute.xlu0 %394 }
 0x4ab   :  { %v2723_v6 = vpop.eup %2722 }
 0x4ac   :  { %v344_v10 = vadd.f32 1.0, %v2723_v6  ;;  %v3217_v6 = vadd.f32 %v3043_v30, %v3057_v37  ;;  %v3225_v30 = vsel %vm57_vm5, 1.0, %v2876_v0  ;;  %vm1946_vm5 = vcmp.gt.f32.partialorder %v3169_v36, 0.0 }
 0x4ad   :  { %vm1941_vm2 = vcmp.gt.f32.partialorder %v3225_v30, 0.0 }
 0x4ae   :  { %2724 = vrcp.f32 %v344_v10 }
 0x4af   :  { %2726 = vpow2.f32 %v2404_v26 }
 0x4b8   :  { %v2725_v17 = vpop.eup %2724 }
 0x4b9   :  { %v2727_v27 = vpop.eup %2726 }
 0x4ba   :  { %v353_v29 = vadd.f32 1.0, %v2727_v27  ;;  %v764_v27 = vsub.f32 1.0, %v3225_v30 }
 0x4bc   :  { %2728 = vrcp.f32 %v353_v29  ;;  %v191_v29 = vcombine.low %v3158_v49, %v3161_v50 }
 0x4c6   :  { %v2729_v40 = vpop.eup %2728 }
 0x4c7   :  { %v370_v42 = vsub.f32 1.0, %v2729_v40  ;;  %v372_v52 = vmul.f32 0.0, %v2729_v40 }
 0x503   :  { %v517_v57 = vpop.permute.xlu1 %516 }
 0x504   :  { %v519_v59 = vmul.f32 %v517_v57, %v514_v56 }
 0x506   :  { %v525_v61 = vadd.f32 %v524_v58, %v519_v59 }
 0x508   :  { %570 = vrot.lane.b32.xlu1 %v525_v61, %s2880_s1 }
 0x50c   :  { %356 = vrot.lane.b32.xlu1 %v305_v48, %s2881_s6 }
 0x514   :  { %v3178_v11 = vpop.permute.xlu1 %566 }
 0x57a   :  { %v571_v12 = vpop.permute.xlu1 %570 }
 0x57b   :  { %v573_v15 = vmul.f32 %v571_v12, %v3178_v11 }
 0x57d   :  { %v3183_v16 = vadd.f32 %v580_v14, %v573_v15 }
 0x57e   :  { %v357_v19 = vpop.permute.xlu1 %356 }
 0x57f   :  { %v598_v20 = vpack.c.bf16 %v3183_v16, %v3183_v16  ;;  %v359_v21 = vmul.f32 %v2725_v17, %v357_v19 }
 0x581   :  { %2557 = vmatmul.mubr.msk.bf16.vlgmr.msra.gmra.mrb[12].mxu0 %vm109_vm1, %v598_v20  ;;  %365 = vrot.lane.b32.xlu1 %v359_v21, %s2881_s6 }
 0x582   :  { %2569 = vmatpush3.bf16.msra.mxu0 %v2992_v9  ;;  %2572 = vmatprep.mubr.msk.bf16.mxu0 %vm2877_vm0, %v2876_v0 }
 0x583   :  { %2570 = vmatprep.subr.bf16.mxu0 %v2876_v0 }
 0x585   :  { %401 = vperm.xlu1 %2708, %v398_v22  }
 0x586   :  { %2571 = vmatpush3.bf16.msra.mxu0 %v3014_v18 }
 0x587   :  { %2584 = vmatprep.subr.bf16.mxu0 %v2876_v0 }
 0x5f3   :  { %v366_v35 = vpop.permute.xlu1 %365 }
 0x5f4   :  { %v368_v39 = vadd.f32 %v366_v35, %v362_v33 }
 0x5f6   :  { %2730 = vtanh.f32 %v368_v39 }
 0x600   :  { %v2731_v43 = vpop.eup %2730 }
 0x601   :  { %v371_v48 = vmul.f32 %v2731_v43, %v370_v42 }
 0x603   :  { %v373_v53 = vadd.f32 %v372_v52, %v371_v48 }
 0x604   :  { %v3198_v51 = vpop.permute.xlu1 %401 }
 0x605   :  { %v397_v55 = vmul.f32 %v3196_v54, %v373_v53  ;;  %v404_v56 = vmul.f32 0.0, %v3198_v51 }
 0x607   :  { %v3202_v57 = vadd.f32 %v404_v56, %v397_v55 }
 0x609   :  { %v452_v58 = vpack.c.bf16 %v3202_v57, %v3202_v57 }
 0x60b   :  { %2549 = vmatmul.mubr.msk.bf16.vlgmr.msra.gmra.mrb[8].mxu1 %vm109_vm1, %v452_v58 }
 0x60c   :  { %2561 = vmatpush3.bf16.msra.mxu1 %v3095_v60  ;;  %2564 = vmatprep.mubr.msk.bf16.mxu1 %vm2877_vm0, %v2876_v0 }
 0x60d   :  { %2562 = vmatprep.subr.bf16.mxu1 %v2876_v0 }
 0x610   :  { %2563 = vmatpush3.bf16.msra.mxu1 %v3101_v1 }
 0x611   :  { %2576 = vmatprep.subr.bf16.mxu1 %v2876_v0 }
 0x654   :  { %v636_v59 = vpop.f32.mrb[12].mxu0 }
 0x655   :  { %v637_v61 = vadd.f32 %v3038_v23, %v636_v59  ;;  %v2558_v63 = vpop.f32.mrb[13].mxu0 }
 0x656   :  { %v639_v2 = vpop.f32.mrb[14].mxu0 }
 0x657   :  { %694 = vrot.lane.b32.xlu0 %v637_v61, %s2879_s21  ;;  %v2559_v5 = vpop.f32.mrb[15].mxu0  ;;  %v686_v10 = vadd.f32 %v637_v61, %v3217_v6 }
 0x658   :  { %v588_v5 = vsub.f32 1.0, %v3235_v31 }
 0x659   :  { %v2412_v12 = vmul.f32 -1.442695, %v686_v10 }
 0x65b   :  { %2732 = vpow2.f32 %v2412_v12 }
 0x665   :  { %v2733_v14 = vpop.eup %2732 }
 0x666   :  { %v690_v15 = vadd.f32 1.0, %v2733_v14 }
 0x668   :  { %2734 = vrcp.f32 %v690_v15 }
 0x672   :  { %v2735_v17 = vpop.eup %2734 }
 0x673   :  { %v704_v40 = vsub.f32 1.0, %v2735_v17 }
 0x6c9   :  { %v695_v19 = vpop.permute.xlu0 %694 }
 0x6ca   :  { %v697_v20 = vmul.f32 %v2735_v17, %v695_v19  ;;  %v537_v19 = vrot.slane %v191_v29, 4 }
 0x6cc   :  { %699 = vrot.lane.b32.xlu1 %v697_v20, %s2879_s21 }
 0x6d0   :  { %711 = vrot.lane.b32.xlu1 %v3183_v16, %s2881_s6 }
 0x6de   :  { %v490_v21 = vpop.f32.mrb[8].mxu1 }
 0x6df   :  { %v491_v22 = vadd.f32 %v3151_v44, %v490_v21  ;;  %v2550_v24 = vpop.f32.mrb[9].mxu1 }
 0x6e0   :  { %v493_v25 = vpop.f32.mrb[10].mxu1 }
 0x6e1   :  { %v2551_v26 = vpop.f32.mrb[11].mxu1  ;;  %546 = vrot.lane.b32.xlu1 %v491_v22, %s2881_s6 }
 0x6e5   :  { %767 = vperm.xlu1 %2708, %v764_v27  }
 0x6e9   :  { %550 = vrot.lane.b32.xlu1 %v191_v29, %s2880_s1 }
 0x6ed   :  { %584 = vperm.xlu1 %2708, %v3235_v31  }
 0x73e   :  { %v700_v33 = vpop.permute.xlu1 %699 }
 0x73f   :  { %v702_v35 = vadd.f32 %v700_v33, %v3217_v6 }
 0x741   :  { %2736 = vtanh.f32 %v702_v35 }
 0x742   :  { %v712_v50 = vpop.permute.xlu1 %711 }
 0x743   :  { %v714_v43 = vmul.f32 %v2735_v17, %v712_v50 }
 0x74b   :  { %v2737_v39 = vpop.eup %2736 }
 0x74c   :  { %706 = vrot.lane.b32.xlu0 %v2737_v39, %s2880_s1 }
 0x750   :  { %527 = vrot.lane.b32.xlu0 %v491_v22, %s2880_s1 }
 0x753   :  { %v547_v63 = vpop.permute.xlu1 %546 }
 0x754   :  { %756 = vperm.xlu0 %2709, %v3225_v30  }
 0x764   :  { %v3247_v12 = vpop.permute.xlu1 %767 }
 0x765   :  { %v770_v15 = vmul.f32 %v3247_v12, %v3183_v16 }
 0x768   :  { %v551_v27 = vpop.permute.xlu1 %550 }
 0x7be   :  { %v707_v42 = vpop.permute.xlu0 %706 }
 0x7bf   :  { %v709_v48 = vmul.f32 %v707_v42, %v704_v40 }
 0x7c1   :  { %v715_v52 = vadd.f32 %v714_v43, %v709_v48 }
 0x7c2   :  { %v528_v53 = vpop.permute.xlu0 %527 }
 0x7c3   :  { %v530_v55 = vadd.f32 %v528_v53, %v191_v29  ;;  %760 = vrot.lane.b32.xlu0 %v715_v52, %s2880_s1  ;;  %v539_v21 = vadd.f32 %v537_v19, %v528_v53  ;;  %v552_v29 = vrot.slane %v551_v27, 4  ;;  %v3264_v52 = vpop.permute.xlu1 %584 }
 0x7c5   :  { %v2408_v56 = vmul.f32 -1.442695, %v530_v55  ;;  %v2409_v24 = vmul.f32 -1.442695, %v539_v21 }
 0x7c7   :  { %2738 = vpow2.f32 %v2408_v56 }
 0x7d1   :  { %v2739_v58 = vpop.eup %2738 }
 0x7d2   :  { %v534_v59 = vadd.f32 1.0, %v2739_v58 }
 0x7d3   :  { %v3245_v10 = vpop.permute.xlu0 %756 }
 0x7d4   :  { %2740 = vrcp.f32 %v534_v59 }
 0x7d5   :  { %2742 = vpow2.f32 %v2409_v24  ;;  %v174_v24 = vcombine.high %v3217_v6, %v3217_v6 }
 0x7de   :  { %v2741_v61 = vpop.eup %2740 }
 0x7df   :  { %v549_v2 = vmul.f32 %v2741_v61, %v547_v63  ;;  %v2743_v25 = vpop.eup %2742 }
 0x7e0   :  { %v543_v26 = vadd.f32 1.0, %v2743_v25 }
 0x7e1   :  { %555 = vrot.lane.b32.xlu0 %v549_v2, %s2881_s6 }
 0x7e2   :  { %2744 = vrcp.f32 %v543_v26 }
 0x7e5   :  { %591 = vperm.xlu0 %2709, %v588_v5  }
 0x7ec   :  { %v2745_v39 = vpop.eup %2744 }
 0x7ed   :  { %v560_v50 = vsub.f32 1.0, %v2745_v39  ;;  %v562_v42 = vmul.f32 %v2745_v39, %v3202_v57 }
 0x835   :  { %v761_v14 = vpop.permute.xlu0 %760 }
 0x836   :  { %v763_v17 = vmul.f32 %v761_v14, %v3245_v10 }
 0x838   :  { %v3252_v20 = vadd.f32 %v770_v15, %v763_v17 }
 0x83a   :  { %v788_v22 = vpack.c.bf16 %v3252_v20, %v3252_v20 }
 0x83c   :  { %2573 = vmatmul.mubr.msk.bf16.vlgmr.msra.gmra.mrb[16].mxu0 %vm109_vm1, %v788_v22 }
 0x83d   :  { %2585 = vmatpush3.bf16.msra.mxu0 %v2992_v9  ;;  %2588 = vmatprep.mubr.msk.bf16.mxu0 %vm2877_vm0, %v2876_v0 }
 0x83e   :  { %2586 = vmatprep.subr.bf16.mxu0 %v2876_v0 }
 0x841   :  { %2587 = vmatpush3.bf16.msra.mxu0 %v3014_v18 }
 0x842   :  { %2600 = vmatprep.subr.bf16.mxu0 %v2876_v0 }
 0x853   :  { %v556_v33 = vpop.permute.xlu0 %555 }
 0x854   :  { %v558_v35 = vadd.f32 %v556_v33, %v552_v29 }
 0x856   :  { %2746 = vtanh.f32 %v558_v35 }
 0x860   :  { %v2747_v40 = vpop.eup %2746 }
 0x861   :  { %v561_v43 = vmul.f32 %v2747_v40, %v560_v50  ;;  %v3294_v50 = vadd.f32 %v3114_v3, %v3057_v37  ;;  %v3298_v40 = vadd.f32 %v3116_v4, %v3154_v45  ;;  %v3304_v37 = vsel %vm60_vm7, 1.0, %v2876_v0 }
 0x862   :  { %v778_v4 = vsub.f32 1.0, %v3304_v37  ;;  %vm1944_vm14 = vcmp.gt.f32.partialorder %v3304_v37, 0.0 }
 0x863   :  { %v563_v48 = vadd.f32 %v562_v42, %v561_v43  ;;  %v190_v42 = vcombine.high %v3294_v50, %v3298_v40 }
 0x864   :  { %v3266_v53 = vpop.permute.xlu0 %591 }
 0x865   :  { %v587_v55 = vmul.f32 %v3264_v52, %v563_v48  ;;  %v594_v56 = vmul.f32 %v3266_v53, %v3202_v57 }
 0x867   :  { %v3271_v58 = vadd.f32 %v594_v56, %v587_v55 }
 0x869   :  { %v642_v59 = vpack.c.bf16 %v3271_v58, %v3271_v58 }
 0x86b   :  { %2565 = vmatmul.mubr.msk.bf16.vlgmr.msra.gmra.mrb[12].mxu1 %vm109_vm1, %v642_v59 }
 0x86c   :  { %2577 = vmatpush3.bf16.msra.mxu1 %v3095_v60  ;;  %2580 = vmatprep.mubr.msk.bf16.mxu1 %vm2877_vm0, %v2876_v0 }
 0x86d   :  { %2578 = vmatprep.subr.bf16.mxu1 %v2876_v0 }
 0x870   :  { %2579 = vmatpush3.bf16.msra.mxu1 %v3101_v1 }
 0x871   :  { %2592 = vmatprep.subr.bf16.mxu1 %v2876_v0 }
 0x90f   :  { %v826_v61 = vpop.f32.mrb[16].mxu0 }
 0x910   :  { %v827_v63 = vadd.f32 %v3038_v23, %v826_v61  ;;  %v2574_v2 = vpop.f32.mrb[17].mxu0 }
 0x911   :  { %v829_v5 = vpop.f32.mrb[18].mxu0  ;;  %v3310_v2 = vsel %vm58_vm8, 1.0, %v2876_v0 }
 0x912   :  { %884 = vrot.lane.b32.xlu1 %v827_v63, %s2879_s21  ;;  %v2575_v14 = vpop.f32.mrb[19].mxu0  ;;  %v876_v25 = vadd.f32 %v827_v63, %v174_v24  ;;  %v954_v5 = vsub.f32 1.0, %v3310_v2  ;;  %vm1942_vm3 = vcmp.gt.f32.partialorder %v3310_v2, 0.0 }
 0x914   :  { %v2417_v26 = vmul.f32 -1.442695, %v876_v25 }
 0x916   :  { %2748 = vpow2.f32 %v2417_v26 }
 0x920   :  { %v2749_v27 = vpop.eup %2748 }
 0x921   :  { %v880_v29 = vadd.f32 1.0, %v2749_v27 }
 0x923   :  { %2750 = vrcp.f32 %v880_v29 }
 0x92d   :  { %v2751_v33 = vpop.eup %2750 }
 0x92e   :  { %v894_v27 = vsub.f32 1.0, %v2751_v33 }
 0x93e   :  { %v680_v15 = vpop.f32.mrb[12].mxu1 }
 0x93f   :  { %v681_v17 = vadd.f32 %v3151_v44, %v680_v15  ;;  %v2566_v19 = vpop.f32.mrb[13].mxu1 }
 0x940   :  { %v683_v21 = vpop.f32.mrb[14].mxu1  ;;  %v727_v19 = vrot.slane %v190_v42, 4 }
 0x941   :  { %717 = vrot.lane.b32.xlu0 %v681_v17, %s2880_s1  ;;  %v2567_v22 = vpop.f32.mrb[15].mxu1 }
 0x945   :  { %736 = vrot.lane.b32.xlu0 %v681_v17, %s2881_s6 }
 0x949   :  { %901 = vrot.lane.b32.xlu0 %v3252_v20, %s2881_s6 }
 0x984   :  { %v885_v35 = vpop.permute.xlu1 %884 }
 0x985   :  { %v887_v39 = vmul.f32 %v2751_v33, %v885_v35 }
 0x987   :  { %889 = vrot.lane.b32.xlu1 %v887_v39, %s2879_s21 }
 0x9b3   :  { %v718_v43 = vpop.permute.xlu0 %717 }
 0x9b4   :  { %v720_v48 = vadd.f32 %v718_v43, %v190_v42  ;;  %v729_v21 = vadd.f32 %v727_v19, %v718_v43 }
 0x9b6   :  { %v2413_v55 = vmul.f32 -1.442695, %v720_v48  ;;  %v2414_v22 = vmul.f32 -1.442695, %v729_v21 }
 0x9b7   :  { %v737_v63 = vpop.permute.xlu0 %736 }
 0x9b8   :  { %2752 = vpow2.f32 %v2413_v55 }
 0x9bb   :  { %v902_v26 = vpop.permute.xlu0 %901 }
 0x9c2   :  { %v2753_v56 = vpop.eup %2752 }
 0x9c3   :  { %v724_v59 = vadd.f32 1.0, %v2753_v56 }
 0x9c5   :  { %2754 = vrcp.f32 %v724_v59 }
 0x9cf   :  { %v2755_v61 = vpop.eup %2754 }
 0x9d0   :  { %v739_v3 = vmul.f32 %v2755_v61, %v737_v63 }
 0x9d2   :  { %745 = vrot.lane.b32.xlu0 %v739_v3, %s2881_s6 }
 0x9d6   :  { %781 = vperm.xlu0 %2709, %v778_v4  }
 0x9da   :  { %957 = vperm.xlu0 %2709, %v954_v5  }
 0x9f9   :  { %v890_v14 = vpop.permute.xlu1 %889 }
 0x9fa   :  { %v892_v15 = vadd.f32 %v890_v14, %v174_v24  ;;  %v904_v24 = vmul.f32 %v2751_v33, %v902_v26 }
 0x9fc   :  { %2756 = vtanh.f32 %v892_v15 }
 0x9fd   :  { %2758 = vpow2.f32 %v2414_v22 }
 0xa06   :  { %v2757_v17 = vpop.eup %2756 }
 0xa07   :  { %896 = vrot.lane.b32.xlu1 %v2757_v17, %s2880_s1  ;;  %v2759_v25 = vpop.eup %2758 }
 0xa08   :  { %v733_v35 = vadd.f32 1.0, %v2759_v25 }
 0xa0a   :  { %2760 = vrcp.f32 %v733_v35 }
 0xa0b   :  { %740 = vrot.lane.b32.xlu1 %v190_v42, %s2880_s1 }
 0xa0f   :  { %774 = vperm.xlu1 %2708, %v3304_v37  }
 0xa13   :  { %946 = vperm.xlu1 %2708, %v3310_v2  }
 0xa14   :  { %v2761_v42 = vpop.eup %2760 }
 0xa15   :  { %v750_v43 = vsub.f32 1.0, %v2761_v42  ;;  %v752_v4 = vmul.f32 %v2761_v42, %v3271_v58  ;;  %v3363_v42 = vsel %vm59_vm9, 1.0, %v2876_v0 }
 0xa16   :  { %vm1943_vm13 = vcmp.gt.f32.partialorder %v3363_v42, 0.0 }
 0xa44   :  { %v746_v59 = vpop.permute.xlu0 %745 }
 0xa55   :  { %v3319_v5 = vpop.permute.xlu0 %781 }
 0xa56   :  { %v784_v15 = vmul.f32 %v3319_v5, %v3271_v58 }
 0xa59   :  { %v3339_v25 = vpop.permute.xlu0 %957 }
 0xa79   :  { %v897_v29 = vpop.permute.xlu1 %896 }
 0xa7a   :  { %v899_v39 = vmul.f32 %v897_v29, %v894_v27  ;;  %v960_v27 = vmul.f32 %v3339_v25, %v3252_v20 }
 0xa7c   :  { %v905_v48 = vadd.f32 %v904_v24, %v899_v39 }
 0xa7d   :  { %v741_v55 = vpop.permute.xlu1 %740 }
 0xa7e   :  { %v742_v56 = vrot.slane %v741_v55, 4  ;;  %950 = vrot.lane.b32.xlu1 %v905_v48, %s2880_s1 }
 0xa80   :  { %v748_v61 = vadd.f32 %v746_v59, %v742_v56 }
 0xa82   :  { %2762 = vtanh.f32 %v748_v61  ;;  %v189_v61 = vcombine.low %v3294_v50, %v3298_v40 }
 0xa8c   :  { %v2763_v63 = vpop.eup %2762 }
 0xa8d   :  { %v751_v3 = vmul.f32 %v2763_v63, %v750_v43 }
 0xa8e   :  { %v3321_v33 = vpop.permute.xlu1 %774 }
 0xa8f   :  { %v753_v14 = vadd.f32 %v752_v4, %v751_v3 }
 0xa91   :  { %v777_v17 = vmul.f32 %v3321_v33, %v753_v14 }
 0xa92   :  { %v3337_v22 = vpop.permute.xlu1 %946 }
 0xa93   :  { %v3326_v19 = vadd.f32 %v784_v15, %v777_v17 }
 0xa95   :  { %v832_v21 = vpack.c.bf16 %v3326_v19, %v3326_v19 }
 0xa97   :  { %2581 = vmatmul.mubr.msk.bf16.vlgmr.msra.gmra.mrb[16].mxu1 %vm109_vm1, %v832_v21 }
 0xa98   :  { %2593 = vmatpush3.bf16.msra.mxu1 %v3095_v60  ;;  %2596 = vmatprep.mubr.msk.bf16.mxu1 %vm2877_vm0, %v2876_v0 }
 0xa99   :  { %2594 = vmatprep.subr.bf16.mxu1 %v2876_v0 }
 0xa9c   :  { %2595 = vmatpush3.bf16.msra.mxu1 %v3101_v1 }
 0xa9d   :  { %2608 = vmatprep.subr.bf16.mxu1 %v2876_v0 }
 0xaf0   :  { %v951_v26 = vpop.permute.xlu1 %950 }
 0xaf1   :  { %v953_v29 = vmul.f32 %v951_v26, %v3337_v22 }
 0xaf3   :  { %v3344_v35 = vadd.f32 %v960_v27, %v953_v29 }
 0xaf5   :  { %v978_v24 = vpack.c.bf16 %v3344_v35, %v3344_v35 }
 0xaf7   :  { %2589 = vmatmul.mubr.msk.bf16.vlgmr.msra.gmra.mrb[20].mxu0 %vm109_vm1, %v978_v24  ;;  %v968_v24 = vsub.f32 1.0, %v3363_v42 }
 0xaf8   :  { %2601 = vmatpush3.bf16.msra.mxu0 %v2992_v9  ;;  %2604 = vmatprep.mubr.msk.bf16.mxu0 %vm2877_vm0, %v2876_v0 }
 0xaf9   :  { %2602 = vmatprep.subr.bf16.mxu0 %v2876_v0 }
 0xafc   :  { %2603 = vmatpush3.bf16.msra.mxu0 %v3014_v18 }
 0xafd   :  { %2616 = vmatprep.subr.bf16.mxu0 %v2876_v0 }
 0xb6a   :  { %v870_v39 = vpop.f32.mrb[16].mxu1 }
 0xb6b   :  { %v871_v48 = vadd.f32 %v3151_v44, %v870_v39  ;;  %v2582_v55 = vpop.f32.mrb[17].mxu1 }
 0xb6c   :  { %v873_v56 = vpop.f32.mrb[18].mxu1 }
 0xb6d   :  { %926 = vrot.lane.b32.xlu1 %v871_v48, %s2881_s6  ;;  %907 = vrot.lane.b32.xlu0 %v871_v48, %s2880_s1  ;;  %v2583_v59 = vpop.f32.mrb[19].mxu1 }
 0xb71   :  { %930 = vrot.lane.b32.xlu1 %v189_v61, %s2880_s1 }
 0xb75   :  { %964 = vperm.xlu1 %2708, %v3363_v42  }
 0xbca   :  { %v1016_v43 = vpop.f32.mrb[20].mxu0 }
 0xbcb   :  { %v1017_v63 = vadd.f32 %v3038_v23, %v1016_v43  ;;  %v2590_v3 = vpop.f32.mrb[21].mxu0 }
 0xbcc   :  { %v1019_v4 = vpop.f32.mrb[22].mxu0  ;;  %v917_v3 = vrot.slane %v189_v61, 4 }
 0xbcd   :  { %1074 = vrot.lane.b32.xlu0 %v1017_v63, %s2879_s21  ;;  %v2591_v14 = vpop.f32.mrb[23].mxu0  ;;  %v1066_v23 = vadd.f32 %v1017_v63, %v3294_v50 }
 0xbcf   :  { %v2422_v39 = vmul.f32 -1.442695, %v1066_v23 }
 0xbdf   :  { %v908_v15 = vpop.permute.xlu0 %907  ;;  %v927_v27 = vpop.permute.xlu1 %926 }
 0xbe0   :  { %v910_v17 = vadd.f32 %v908_v15, %v189_v61  ;;  %v919_v4 = vadd.f32 %v917_v3, %v908_v15 }
 0xbe2   :  { %v2418_v40 = vmul.f32 -1.442695, %v910_v17  ;;  %v2419_v14 = vmul.f32 -1.442695, %v919_v4 }
 0xbe3   :  { %v931_v63 = vpop.permute.xlu1 %930 }
 0xbe4   :  { %2764 = vpow2.f32 %v2418_v40 }
 0xbee   :  { %v2765_v46 = vpop.eup %2764 }
 0xbef   :  { %v914_v21 = vadd.f32 1.0, %v2765_v46  ;;  %v932_v46 = vrot.slane %v931_v63, 4 }
 0xbf1   :  { %2766 = vrcp.f32 %v914_v21 }
 0xbf2   :  { %2768 = vpow2.f32 %v2422_v39 }
 0xbfb   :  { %v2767_v26 = vpop.eup %2766 }
 0xbfc   :  { %v929_v29 = vmul.f32 %v2767_v26, %v927_v27  ;;  %v2769_v48 = vpop.eup %2768 }
 0xbfd   :  { %v1070_v55 = vadd.f32 1.0, %v2769_v48 }
 0xbfe   :  { %935 = vrot.lane.b32.xlu0 %v929_v29, %s2881_s6 }
 0xbff   :  { %2770 = vrcp.f32 %v1070_v55  ;;  %v3375_v55 = vpop.permute.xlu1 %964 }
 0xc00   :  { %2772 = vpow2.f32 %v2419_v14 }
 0xc02   :  { %971 = vperm.xlu0 %2709, %v968_v24  }
 0xc09   :  { %v2771_v56 = vpop.eup %2770 }
 0xc0a   :  { %v2773_v17 = vpop.eup %2772  ;;  %v1084_v63 = vsub.f32 1.0, %v2771_v56 }
 0xc0b   :  { %v923_v40 = vadd.f32 1.0, %v2773_v17 }
 0xc0d   :  { %2774 = vrcp.f32 %v923_v40 }
 0xc17   :  { %v2775_v27 = vpop.eup %2774 }
 0xc18   :  { %v940_v29 = vsub.f32 1.0, %v2775_v27  ;;  %v942_v23 = vmul.f32 %v2775_v27, %v3326_v19 }
 0xc3f   :  { %v1075_v59 = vpop.permute.xlu0 %1074 }
 0xc40   :  { %v1077_v43 = vmul.f32 %v2771_v56, %v1075_v59 }
 0xc42   :  { %1079 = vrot.lane.b32.xlu1 %v1077_v43, %s2879_s21 }
 0xc46   :  { %1091 = vrot.lane.b32.xlu1 %v3344_v35, %s2881_s6 }
 0xc70   :  { %v936_v21 = vpop.permute.xlu0 %935 }
 0xc71   :  { %v938_v26 = vadd.f32 %v936_v21, %v932_v46 }
 0xc73   :  { %2776 = vtanh.f32 %v938_v26 }
 0xc7d   :  { %v2777_v24 = vpop.eup %2776 }
 0xc7e   :  { %v941_v39 = vmul.f32 %v2777_v24, %v940_v29  ;;  %v3395_v24 = vadd.f32 %v3046_v32, %v3154_v45 }
 0xc80   :  { %v943_v48 = vadd.f32 %v942_v23, %v941_v39 }
 0xc81   :  { %v972_v61 = vpop.permute.xlu0 %971 }
 0xc82   :  { %v967_v15 = vmul.f32 %v3375_v55, %v943_v48  ;;  %v974_v59 = vmul.f32 %v972_v61, %v3326_v19 }
 0xc84   :  { %v3379_v43 = vadd.f32 %v974_v59, %v967_v15 }
 0xc86   :  { %v1022_v3 = vpack.c.bf16 %v3379_v43, %v3379_v43 }
 0xc88   :  { %2597 = vmatmul.mubr.msk.bf16.vlgmr.msra.gmra.mrb[20].mxu1 %vm109_vm1, %v1022_v3  ;;  %v1139_v3 = vmul.f32 %v972_v61, %v3344_v35 }
 0xc89   :  { %2609 = vmatpush3.bf16.msra.mxu1 %v3095_v60  ;;  %2612 = vmatprep.mubr.msk.bf16.mxu1 %vm2877_vm0, %v2876_v0 }
 0xc8a   :  { %2610 = vmatprep.subr.bf16.mxu1 %v2876_v0 }
 0xc8d   :  { %2611 = vmatpush3.bf16.msra.mxu1 %v3101_v1 }
 0xc8e   :  { %2624 = vmatprep.subr.bf16.mxu1 %v2876_v0 }
 0xcb4   :  { %v1080_v4 = vpop.permute.xlu1 %1079 }
 0xcb5   :  { %v1082_v14 = vadd.f32 %v1080_v4, %v3294_v50 }
 0xcb7   :  { %2778 = vtanh.f32 %v1082_v14 }
 0xcb8   :  { %v1092_v40 = vpop.permute.xlu1 %1091 }
 0xcb9   :  { %v1094_v21 = vmul.f32 %v2771_v56, %v1092_v40  ;;  %v188_v56 = vcombine.high %v3217_v6, %v3395_v24 }
 0xcc1   :  { %v2779_v17 = vpop.eup %2778 }
 0xcc2   :  { %1086 = vrot.lane.b32.xlu0 %v2779_v17, %s2880_s1 }
 0xd34   :  { %v1087_v46 = vpop.permute.xlu0 %1086 }
 0xd35   :  { %v1089_v26 = vmul.f32 %v1087_v46, %v1084_v63 }
 0xd37   :  { %v1095_v27 = vadd.f32 %v1094_v21, %v1089_v26 }
 0xd39   :  { %1135 = vrot.lane.b32.xlu0 %v1095_v27, %s2880_s1 }
 0xd5b   :  { %v1060_v29 = vpop.f32.mrb[20].mxu1 }
 0xd5c   :  { %v1061_v23 = vadd.f32 %v3151_v44, %v1060_v29  ;;  %v2598_v39 = vpop.f32.mrb[21].mxu1  ;;  %v1107_v29 = vrot.slane %v188_v56, 4 }
 0xd5d   :  { %v1063_v48 = vpop.f32.mrb[22].mxu1 }
 0xd5e   :  { %1097 = vrot.lane.b32.xlu1 %v1061_v23, %s2880_s1  ;;  %v2599_v15 = vpop.f32.mrb[23].mxu1  ;;  %1116 = vrot.lane.b32.xlu0 %v1061_v23, %s2881_s6 }
 0xd62   :  { %1120 = vrot.lane.b32.xlu1 %v188_v56, %s2880_s1 }
 0xdab   :  { %v1136_v59 = vpop.permute.xlu0 %1135 }
 0xdac   :  { %v1138_v32 = vmul.f32 %v1136_v59, %v3375_v55 }
 0xdae   :  { %v3405_v4 = vadd.f32 %v1139_v3, %v1138_v32 }
 0xdb0   :  { %v1146_v14 = vpack.c.bf16 %v3405_v4, %v3405_v4 }
 0xdb2   :  { %2605 = vmatmul.mubr.msk.bf16.vlgmr.msra.gmra.mrb[24].mxu0 %vm109_vm1, %v1146_v14 }
 0xdb3   :  { %2617 = vmatpush3.bf16.msra.mxu0 %v2992_v9  ;;  %2620 = vmatprep.mubr.msk.bf16.mxu0 %vm2877_vm0, %v2876_v0 }
 0xdb4   :  { %2618 = vmatprep.subr.bf16.mxu0 %v2876_v0 }
 0xdb7   :  { %2619 = vmatpush3.bf16.msra.mxu0 %v3014_v18 }
 0xdb8   :  { %2632 = vmatprep.subr.bf16.mxu0 %v2876_v0 }
 0xdd0   :  { %v1098_v61 = vpop.permute.xlu1 %1097  ;;  %v1117_v26 = vpop.permute.xlu0 %1116 }
 0xdd1   :  { %v1100_v17 = vadd.f32 %v1098_v61, %v188_v56  ;;  %v1109_v23 = vadd.f32 %v1107_v29, %v1098_v61  ;;  %v1142_v56 = vmul.f32 %v3379_v43, %v3339_v25 }
 0xdd3   :  { %v2423_v40 = vmul.f32 -1.442695, %v1100_v17  ;;  %v2424_v39 = vmul.f32 -1.442695, %v1109_v23  ;;  %v3435_v23 = vld [vmem:[%s3824_s5] ss:$0 sm:$0xff] }
 0xdd4   :  { %v1121_v59 = vpop.permute.xlu1 %1120 }
 0xdd5   :  { %2780 = vpow2.f32 %v2423_v40  ;;  %v1122_v3 = vrot.slane %v1121_v59, 4 }
 0xddf   :  { %v2781_v63 = vpop.eup %2780 }
 0xde0   :  { %v1104_v46 = vadd.f32 1.0, %v2781_v63 }
 0xde2   :  { %2782 = vrcp.f32 %v1104_v46 }
 0xde3   :  { %2784 = vpow2.f32 %v2424_v39 }
 0xdec   :  { %v2783_v21 = vpop.eup %2782 }
 0xded   :  { %v1119_v27 = vmul.f32 %v2783_v21, %v1117_v26  ;;  %v2785_v48 = vpop.eup %2784 }
 0xdee   :  { %v1113_v15 = vadd.f32 1.0, %v2785_v48 }
 0xdef   :  { %1125 = vrot.lane.b32.xlu0 %v1119_v27, %s2881_s6 }
 0xdf0   :  { %2786 = vrcp.f32 %v1113_v15 }
 0xdfa   :  { %v2787_v17 = vpop.eup %2786 }
 0xdfb   :  { %v1130_v40 = vsub.f32 1.0, %v2787_v17  ;;  %v1132_v21 = vmul.f32 %v2787_v17, %v3379_v43 }
 0xe61   :  { %v1126_v32 = vpop.permute.xlu0 %1125 }
 0xe62   :  { %v1128_v14 = vadd.f32 %v1126_v32, %v1122_v3  ;;  %v175_v3 = vcombine.high %v3294_v50, %v3294_v50 }
 0xe64   :  { %2788 = vtanh.f32 %v1128_v14 }
 0xe6e   :  { %v2789_v63 = vpop.eup %2788 }
 0xe6f   :  { %v1131_v46 = vmul.f32 %v2789_v63, %v1130_v40 }
 0xe71   :  { %v1133_v26 = vadd.f32 %v1132_v21, %v1131_v46 }
 0xe73   :  { %v1141_v61 = vmul.f32 %v1133_v26, %v3337_v22 }
 0xe75   :  { %v3421_v27 = vadd.f32 %v1142_v56, %v1141_v61 }
 0xe77   :  { %v1190_v29 = vpack.c.bf16 %v3421_v27, %v3421_v27 }
 0xe79   :  { %2613 = vmatmul.mubr.msk.bf16.vlgmr.msra.gmra.mrb[24].mxu1 %vm109_vm1, %v1190_v29 }
 0xe7a   :  { %2625 = vmatpush3.bf16.msra.mxu1 %v3095_v60  ;;  %2628 = vmatprep.mubr.msk.bf16.mxu1 %vm2877_vm0, %v2876_v0 }
 0xe7b   :  { %2626 = vmatprep.subr.bf16.mxu1 %v2876_v0 }
 0xe7e   :  { %2627 = vmatpush3.bf16.msra.mxu1 %v3101_v1 }
 0xe7f   :  { %2640 = vmatprep.subr.bf16.mxu1 %v2876_v0 }
 0xe85   :  { %v1184_v25 = vpop.f32.mrb[24].mxu0 }
 0xe86   :  { %v1185_v39 = vadd.f32 %v3435_v23, %v1184_v25  ;;  %v2606_v48 = vpop.f32.mrb[25].mxu0  ;;  %v187_v25 = vcombine.low %v3217_v6, %v3395_v24 }
 0xe87   :  { %v1187_v15 = vpop.f32.mrb[26].mxu0 }
 0xe88   :  { %1242 = vrot.lane.b32.xlu1 %v1185_v39, %s2879_s21  ;;  %v2607_v59 = vpop.f32.mrb[27].mxu0  ;;  %v1234_v32 = vadd.f32 %v1185_v39, %v175_v3 }
 0xe8a   :  { %v2427_v14 = vmul.f32 -1.442695, %v1234_v32 }
 0xe8c   :  { %2790 = vpow2.f32 %v2427_v14 }
 0xe96   :  { %v2791_v17 = vpop.eup %2790 }
 0xe97   :  { %v1238_v40 = vadd.f32 1.0, %v2791_v17 }
 0xe99   :  { %2792 = vrcp.f32 %v1238_v40 }
 0xea3   :  { %v2793_v63 = vpop.eup %2792 }
 0xea4   :  { %v1252_v32 = vsub.f32 1.0, %v2793_v63 }
 0xefa   :  { %v1243_v46 = vpop.permute.xlu1 %1242 }
 0xefb   :  { %v1245_v21 = vmul.f32 %v2793_v63, %v1243_v46 }
 0xefd   :  { %1247 = vrot.lane.b32.xlu0 %v1245_v21, %s2879_s21 }
 0xf01   :  { %1259 = vrot.lane.b32.xlu0 %v3405_v4, %s2881_s6 }
 0xf4c   :  { %v1228_v26 = vpop.f32.mrb[24].mxu1 }
 0xf4d   :  { %v1229_v56 = vadd.f32 %v3151_v44, %v1228_v26  ;;  %v2614_v61 = vpop.f32.mrb[25].mxu1 }
 0xf4e   :  { %v1231_v29 = vpop.f32.mrb[26].mxu1  ;;  %v1307_v61 = vmul.f32 %v3405_v4, %v3319_v5  ;;  %v1275_v5 = vrot.slane %v187_v25, 4 }
 0xf4f   :  { %v2615_v50 = vpop.f32.mrb[27].mxu1  ;;  %1265 = vrot.lane.b32.xlu0 %v1229_v56, %s2880_s1 }
 0xf53   :  { %1288 = vrot.lane.b32.xlu0 %v187_v25, %s2880_s1 }
 0xf6f   :  { %v1248_v39 = vpop.permute.xlu0 %1247 }
 0xf70   :  { %v1250_v48 = vadd.f32 %v1248_v39, %v175_v3 }
 0xf72   :  { %2794 = vtanh.f32 %v1250_v48 }
 0xf73   :  { %v1260_v59 = vpop.permute.xlu0 %1259 }
 0xf74   :  { %v1262_v44 = vmul.f32 %v2793_v63, %v1260_v59 }
 0xf7c   :  { %v2795_v15 = vpop.eup %2794 }
 0xf7d   :  { %1254 = vrot.lane.b32.xlu1 %v2795_v15, %s2880_s1 }
 0xfc1   :  { %v1266_v46 = vpop.permute.xlu0 %1265 }
 0xfc2   :  { %v1268_v6 = vadd.f32 %v1266_v46, %v187_v25  ;;  %v1277_v15 = vadd.f32 %v1275_v5, %v1266_v46 }
 0xfc4   :  { %v2428_v24 = vmul.f32 -1.442695, %v1268_v6  ;;  %v2429_v59 = vmul.f32 -1.442695, %v1277_v15 }
 0xfc6   :  { %2796 = vpow2.f32 %v2428_v24 }
 0xfd0   :  { %v2797_v21 = vpop.eup %2796 }
 0xfd1   :  { %v1272_v3 = vadd.f32 1.0, %v2797_v21 }
 0xfd3   :  { %2798 = vrcp.f32 %v1272_v3 }
 0xfd4   :  { %2800 = vpow2.f32 %v2429_v59 }
 0xfdd   :  { %v2799_v50 = vpop.eup %2798 }
 0xfef   :  { %v1255_v14 = vpop.permute.xlu1 %1254 }
 0xff0   :  { %v1257_v17 = vmul.f32 %v1255_v14, %v1252_v32  ;;  %v2801_v32 = vpop.eup %2800 }
 0xff1   :  { %v1281_v14 = vadd.f32 1.0, %v2801_v32 }
 0xff2   :  { %v1263_v40 = vadd.f32 %v1262_v44, %v1257_v17  ;;  %v1289_v44 = vpop.permute.xlu0 %1288 }
 0xff3   :  { %2802 = vrcp.f32 %v1281_v14  ;;  %v1290_v17 = vrot.slane %v1289_v44, 4 }
 0xff4   :  { %1303 = vrot.lane.b32.xlu1 %v1263_v40, %s2880_s1 }
 0xff8   :  { %1284 = vrot.lane.b32.xlu1 %v1229_v56, %s2881_s6 }
0x1066   :  { %v1304_v26 = vpop.permute.xlu1 %1303 }
0x1067   :  { %v1306_v29 = vmul.f32 %v1304_v26, %v3321_v33 }
0x1069   :  { %v3455_v63 = vadd.f32 %v1307_v61, %v1306_v29 }
0x106a   :  { %v1285_v39 = vpop.permute.xlu1 %1284 }
0x106b   :  { %v1314_v56 = vpack.c.bf16 %v3455_v63, %v3455_v63  ;;  %v1287_v48 = vmul.f32 %v2799_v50, %v1285_v39 }
0x106d   :  { %2621 = vmatmul.mubr.msk.bf16.vlgmr.msra.gmra.mrb[28].mxu0 %vm109_vm1, %v1314_v56  ;;  %1293 = vrot.lane.b32.xlu1 %v1287_v48, %s2881_s6 }
0x106e   :  { %2633 = vmatpush3.bf16.msra.mxu0 %v2992_v9  ;;  %2636 = vmatprep.mubr.msk.bf16.mxu0 %vm2877_vm0, %v2876_v0  ;;  %v2803_v9 = vpop.eup %2802 }
0x106f   :  { %2634 = vmatprep.subr.bf16.mxu0 %v2876_v0  ;;  %v1298_v24 = vsub.f32 1.0, %v2803_v9  ;;  %v1300_v26 = vmul.f32 %v2803_v9, %v3421_v27 }
0x1072   :  { %2635 = vmatpush3.bf16.msra.mxu0 %v3014_v18  ;;  %v1310_v18 = vmul.f32 %v3421_v27, %v3247_v12 }
0x10df   :  { %v1294_v40 = vpop.permute.xlu1 %1293 }
0x10e0   :  { %v1296_v6 = vadd.f32 %v1294_v40, %v1290_v17  ;;  %v3489_v17 = vadd.f32 %v3041_v28, %v3154_v45  ;;  %v3494_v40 = vld [vmem:[%s3828_s7] ss:$0 sm:$0xff] }
0x10e2   :  { %2804 = vtanh.f32 %v1296_v6 }
0x10ec   :  { %v2805_v21 = vpop.eup %2804 }
0x10ed   :  { %v1299_v3 = vmul.f32 %v2805_v21, %v1298_v24 }
0x10ef   :  { %v1301_v61 = vadd.f32 %v1300_v26, %v1299_v3  ;;  %v186_v3 = vcombine.high %v3060_v38, %v3489_v17 }
0x10f1   :  { %v1309_v25 = vmul.f32 %v1301_v61, %v3245_v10 }
0x10f3   :  { %v3470_v46 = vadd.f32 %v1310_v18, %v1309_v25 }
0x10f5   :  { %v1358_v29 = vpack.c.bf16 %v3470_v46, %v3470_v46 }
0x10f7   :  { %2629 = vmatmul.mubr.msk.bf16.vlgmr.msra.gmra.mrb[28].mxu1 %vm109_vm1, %v1358_v29 }
0x10f8   :  { %2641 = vmatpush3.bf16.msra.mxu1 %v3095_v60  ;;  %2644 = vmatprep.mubr.msk.bf16.mxu1 %vm2877_vm0, %v2876_v0 }
0x10f9   :  { %2642 = vmatprep.subr.bf16.mxu1 %v2876_v0 }
0x10fc   :  { %2643 = vmatpush3.bf16.msra.mxu1 %v3101_v1 }
0x10fd   :  { %2664 = vmatprep.subr.bf16.mxu1 %v2876_v0 }
0x1140   :  { %v1352_v12 = vpop.f32.mrb[28].mxu0 }
0x1141   :  { %v1353_v50 = vadd.f32 %v3435_v23, %v1352_v12  ;;  %v2622_v39 = vpop.f32.mrb[29].mxu0 }
0x1142   :  { %v1355_v56 = vpop.f32.mrb[30].mxu0 }
0x1143   :  { %1410 = vrot.lane.b32.xlu0 %v1353_v50, %s2879_s21  ;;  %v2623_v48 = vpop.f32.mrb[31].mxu0  ;;  %v1402_v5 = vadd.f32 %v1353_v50, %v3158_v49 }
0x1145   :  { %v2432_v60 = vmul.f32 -1.442695, %v1402_v5 }
0x1147   :  { %2806 = vpow2.f32 %v2432_v60 }
0x1151   :  { %v2807_v15 = vpop.eup %2806 }
0x1152   :  { %v1406_v59 = vadd.f32 1.0, %v2807_v15 }
0x1154   :  { %2808 = vrcp.f32 %v1406_v59 }
0x115e   :  { %v2809_v32 = vpop.eup %2808 }
0x115f   :  { %v1420_v18 = vsub.f32 1.0, %v2809_v32 }
0x11b5   :  { %v1411_v14 = vpop.permute.xlu0 %1410 }
0x11b6   :  { %v1413_v1 = vmul.f32 %v2809_v32, %v1411_v14 }
0x11b8   :  { %1415 = vrot.lane.b32.xlu1 %v1413_v1, %s2879_s21 }
0x11bc   :  { %1427 = vrot.lane.b32.xlu1 %v3455_v63, %s2881_s6 }
0x11ca   :  { %v1396_v44 = vpop.f32.mrb[28].mxu1 }
0x11cb   :  { %v1397_v6 = vadd.f32 %v3494_v40, %v1396_v44  ;;  %v2630_v9 = vpop.f32.mrb[29].mxu1 }
0x11cc   :  { %v1399_v24 = vpop.f32.mrb[30].mxu1 }
0x11cd   :  { %v2631_v21 = vpop.f32.mrb[31].mxu1  ;;  %1452 = vrot.lane.b32.xlu1 %v1397_v6, %s2881_s6 }
0x11d1   :  { %1456 = vrot.lane.b32.xlu1 %v186_v3, %s2880_s1 }
0x122a   :  { %v1416_v26 = vpop.permute.xlu1 %1415 }
0x122b   :  { %v1418_v28 = vadd.f32 %v1416_v26, %v3158_v49 }
0x122d   :  { %2810 = vtanh.f32 %v1418_v28 }
0x122e   :  { %v1428_v61 = vpop.permute.xlu1 %1427 }
0x122f   :  { %v1430_v29 = vmul.f32 %v2809_v32, %v1428_v61  ;;  %v1475_v32 = vmul.f32 %v3455_v63, %v3266_v53 }
0x1237   :  { %v2811_v45 = vpop.eup %2810 }
0x1238   :  { %1422 = vrot.lane.b32.xlu0 %v2811_v45, %s2880_s1 }
0x123c   :  { %1433 = vrot.lane.b32.xlu0 %v1397_v6, %s2880_s1  ;;  %v1443_v6 = vrot.slane %v186_v3, 4 }
0x123f   :  { %v1453_v59 = vpop.permute.xlu1 %1452 }
0x1243   :  { %v1457_v61 = vpop.permute.xlu1 %1456 }
0x12aa   :  { %v1423_v25 = vpop.permute.xlu0 %1422 }
0x12ab   :  { %v1425_v12 = vmul.f32 %v1423_v25, %v1420_v18  ;;  %v1458_v18 = vrot.slane %v1457_v61, 4 }
0x12ad   :  { %v1431_v50 = vadd.f32 %v1430_v29, %v1425_v12 }
0x12ae   :  { %v1434_v39 = vpop.permute.xlu0 %1433 }
0x12af   :  { %v1436_v56 = vadd.f32 %v1434_v39, %v186_v3  ;;  %1471 = vrot.lane.b32.xlu0 %v1431_v50, %s2880_s1  ;;  %v1445_v24 = vadd.f32 %v1443_v6, %v1434_v39 }
0x12b1   :  { %v2433_v48 = vmul.f32 -1.442695, %v1436_v56  ;;  %v2434_v26 = vmul.f32 -1.442695, %v1445_v24 }
0x12b3   :  { %2812 = vpow2.f32 %v2433_v48  ;;  %v1478_v48 = vmul.f32 %v3470_v46, %v3176_v62 }
0x12bd   :  { %v2813_v5 = vpop.eup %2812 }
0x12be   :  { %v1440_v60 = vadd.f32 1.0, %v2813_v5 }
0x12c0   :  { %2814 = vrcp.f32 %v1440_v60 }
0x12c1   :  { %2816 = vpow2.f32 %v2434_v26 }
0x12ca   :  { %v2815_v15 = vpop.eup %2814 }
0x12cb   :  { %v1455_v14 = vmul.f32 %v2815_v15, %v1453_v59  ;;  %v2817_v28 = vpop.eup %2816 }
0x12cc   :  { %v1449_v45 = vadd.f32 1.0, %v2817_v28  ;;  %v176_v28 = vcombine.high %v3158_v49, %v3158_v49  ;;  %v185_v49 = vcombine.low %v3060_v38, %v3489_v17  ;;  %v1713_v38 = vld [vmem:[%s3829_s8 + $0x20] sm:$0xff]  ;;  %v1714_v17 = vld [vmem:[%s3829_s8 + $0x28] sm:$0xff] }
0x12cd   :  { %1461 = vrot.lane.b32.xlu0 %v1455_v14, %s2881_s6 }
0x12ce   :  { %2818 = vrcp.f32 %v1449_v45 }
0x12d8   :  { %v2819_v29 = vpop.eup %2818 }
0x12d9   :  { %v1466_v3 = vsub.f32 1.0, %v2819_v29  ;;  %v1468_v50 = vmul.f32 %v2819_v29, %v3470_v46 }
0x1321   :  { %v1472_v1 = vpop.permute.xlu0 %1471 }
0x1322   :  { %v1474_v44 = vmul.f32 %v1472_v1, %v3264_v52 }
0x1324   :  { %v3509_v9 = vadd.f32 %v1475_v32, %v1474_v44 }
0x1326   :  { %v1482_v21 = vpack.c.bf16 %v3509_v9, %v3509_v9 }
0x1328   :  { %2637 = vmatmul.mubr.msk.bf16.vlgmr.msra.gmra.mrb[32].mxu0 %vm109_vm1, %v1482_v21 }
0x133f   :  { %v1462_v25 = vpop.permute.xlu0 %1461 }
0x1340   :  { %v1464_v53 = vadd.f32 %v1462_v25, %v1458_v18 }
0x1342   :  { %2820 = vtanh.f32 %v1464_v53 }
0x134c   :  { %v2821_v12 = vpop.eup %2820 }
0x134d   :  { %v1467_v39 = vmul.f32 %v2821_v12, %v1466_v3 }
0x134f   :  { %v1469_v56 = vadd.f32 %v1468_v50, %v1467_v39 }
0x1351   :  { %v1477_v5 = vmul.f32 %v1469_v56, %v3178_v11 }
0x1353   :  { %v3518_v60 = vadd.f32 %v1478_v48, %v1477_v5 }
0x1355   :  { %v1526_v15 = vpack.c.bf16 %v3518_v60, %v3518_v60 }
0x1357   :  { %2645 = vmatmul.mubr.msk.bf16.vlgmr.msra.gmra.mrb[32].mxu1 %vm109_vm1, %v1526_v15 }
0x1358   :  { %2668 = vmatprep.mubr.msk.bf16.mxu1 %vm2877_vm0, %v2876_v0 }
0x13fb   :  { %v1520_v59 = vpop.f32.mrb[32].mxu0 }
0x13fc   :  { %v1521_v14 = vadd.f32 %v3435_v23, %v1520_v59  ;;  %v2638_v1 = vpop.f32.mrb[33].mxu0 }
0x13fd   :  { %v1523_v32 = vpop.f32.mrb[34].mxu0  ;;  %v1715_v1 = vld [vmem:[%s3829_s8 + $0x30] sm:$0xff] }
0x13fe   :  { %1578 = vrot.lane.b32.xlu1 %v1521_v14, %s2879_s21  ;;  %v2639_v62 = vpop.f32.mrb[35].mxu0  ;;  %v1570_v45 = vadd.f32 %v1521_v14, %v176_v28  ;;  %v1717_v32 = vpack.c.bf16 %v1714_v17, %v1713_v38  ;;  %v976_v38 = vmul.f32 %v3344_v35, %v3337_v22  ;;  %v596_v17 = vmul.f32 %v3183_v16, %v3178_v11 }
0x13ff   :  { %v1716_v62 = vld [vmem:[%s3829_s8 + $0x38] sm:$0xff]  ;;  %v407_v35 = vmul.f32 %v3202_v57, %v3196_v54  ;;  %v977_v16 = vmul.f32 %v3379_v43, %v3375_v55 }
0x1400   :  { %v2437_v61 = vmul.f32 -1.442695, %v1570_v45  ;;  %2648 = vmatprep.subr.bf16.mxu0 %v1717_v32 }
0x1401   :  { %2649 = vmatpush3.bf16.msra.mxu0 %v1717_v32 }
0x1402   :  { %2822 = vpow2.f32 %v2437_v61 }
0x140c   :  { %v2823_v23 = vpop.eup %2822 }
0x140d   :  { %v1574_v18 = vadd.f32 1.0, %v2823_v23 }
0x140f   :  { %2824 = vrcp.f32 %v1574_v18 }
0x1419   :  { %v2825_v25 = vpop.eup %2824 }
0x141a   :  { %v1588_v18 = vsub.f32 1.0, %v2825_v25 }
0x142a   :  { %v1564_v44 = vpop.f32.mrb[32].mxu1 }
0x142b   :  { %v1565_v6 = vadd.f32 %v3494_v40, %v1564_v44  ;;  %v2646_v24 = vpop.f32.mrb[33].mxu1  ;;  %v1718_v44 = vpack.c.bf16 %v1716_v62, %v1715_v1  ;;  %v787_v1 = vmul.f32 %v3326_v19, %v3321_v33  ;;  %v1145_v62 = vmul.f32 %v3421_v27, %v3337_v22 }
0x142c   :  { %v1567_v21 = vpop.f32.mrb[34].mxu1  ;;  %v1708_v24 = vld [vmem:[%s3829_s8 + $0x8] sm:$0xff]  ;;  %v1313_v19 = vmul.f32 %v3470_v46, %v3245_v10  ;;  %v597_v22 = vmul.f32 %v3271_v58, %v3264_v52  ;;  %v1709_v46 = vld [vmem:[%s3829_s8 + $0x10] sm:$0xff]  ;;  %v1710_v58 = vld [vmem:[%s3829_s8 + $0x18] sm:$0xff] }
0x142d   :  { %1601 = vrot.lane.b32.xlu1 %v1565_v6, %s2880_s1  ;;  %v2647_v26 = vpop.f32.mrb[35].mxu1  ;;  %2650 = vmatprep.subr.bf16.mxu0 %v1718_v44  ;;  %v1674_v27 = vrot.slane %v787_v1, 4 }
0x142e   :  { %2651 = vmatpush3.bf16.msra.mxu0 %v1718_v44  ;;  %v1611_v26 = vrot.slane %v185_v49, 4  ;;  %v1481_v44 = vmul.f32 %v3518_v60, %v3178_v11 }
0x142f   :  { %v3588_v43 = vsel %vm1662_vm10, %v977_v16, %v1674_v27  ;;  %v2882_v27 = vmov 839922192  }
0x1430   :  { %v1668_v57 = vrot.slane %v1481_v44, 4 }
0x1470   :  { %v1579_v53 = vpop.permute.xlu1 %1578 }
0x1471   :  { %v1581_v29 = vmul.f32 %v2825_v25, %v1579_v53 }
0x1473   :  { %1583 = vrot.lane.b32.xlu0 %v1581_v29, %s2879_s21 }
0x1477   :  { %1620 = vrot.lane.b32.xlu0 %v1565_v6, %s2881_s6  ;;  %v1707_v6 = vld [vmem:[%s3829_s8] sm:$0xff] }
0x1478   :  { %v3558_v21 = vpack.c.bf16 %v1708_v24, %v1707_v6  ;;  %v1646_v6 = vmul.f32 %v3518_v60, %v3120_v8  ;;  %v1654_v24 = vrot.slane %v976_v38, 4  ;;  %v786_v8 = vmul.f32 %v3252_v20, %v3245_v10 }
0x147a   :  { %2656 = vmatprep.subr.bf16.mxu0 %v3558_v21 }
0x147b   :  { %1595 = vrot.lane.b32.xlu0 %v3509_v9, %s2881_s6 }
0x149f   :  { %v1602_v40 = vpop.permute.xlu1 %1601 }
0x14a0   :  { %v1604_v3 = vadd.f32 %v1602_v40, %v185_v49 }
0x14a2   :  { %v2438_v12 = vmul.f32 -1.442695, %v1604_v3 }
0x14a4   :  { %2826 = vpow2.f32 %v2438_v12 }
0x14ae   :  { %v2827_v50 = vpop.eup %2826 }
0x14af   :  { %v1608_v39 = vadd.f32 1.0, %v2827_v50 }
0x14b1   :  { %2828 = vrcp.f32 %v1608_v39 }
0x14bb   :  { %v2829_v5 = vpop.eup %2828 }
0x14e5   :  { %v1584_v56 = vpop.permute.xlu0 %1583 }
0x14e6   :  { %v1586_v48 = vadd.f32 %v1584_v56, %v176_v28  ;;  %v1613_v28 = vadd.f32 %v1611_v26, %v1602_v40 }
0x14e8   :  { %2830 = vtanh.f32 %v1586_v48  ;;  %v2439_v45 = vmul.f32 -1.442695, %v1613_v28  ;;  %v1651_v28 = vrot.slane %v596_v17, 4  ;;  %v2445_v17 = vld [vmem:[%s3831_s10] ss:$0 sm:$0xff] }
0x14e9   :  { %v1621_v15 = vpop.permute.xlu0 %1620 }
0x14ea   :  { %v1623_v59 = vmul.f32 %v2829_v5, %v1621_v15  ;;  %2832 = vpow2.f32 %v2439_v45  ;;  %v1677_v45 = vrot.slane %v407_v35, 4 }
0x14ec   :  { %1629 = vrot.lane.b32.xlu0 %v1623_v59, %s2881_s6 }
0x14ed   :  { %v1596_v23 = vpop.permute.xlu0 %1595 }
0x14ee   :  { %v1598_v3 = vmul.f32 %v2825_v25, %v1596_v23  ;;  %v3605_v23 = vsel %vm1662_vm10, %v786_v8, %v1654_v24  ;;  %v1876_v8 = vunpack.c.l.s4 %v2882_v27 }
0x14f2   :  { %v2831_v14 = vpop.eup %2830 }
0x14f3   :  { %1590 = vrot.lane.b32.xlu1 %v2831_v14, %s2880_s1 }
0x14f4   :  { %v2833_v61 = vpop.eup %2832 }
0x14f5   :  { %v1617_v29 = vadd.f32 1.0, %v2833_v61  ;;  %v406_v61 = vmul.f32 %v3124_v13, %v3118_v7  ;;  %v1712_v13 = vpack.c.bf16 %v1710_v58, %v1709_v46 }
0x14f7   :  { %1624 = vrot.lane.b32.xlu1 %v185_v49, %s2880_s1  ;;  %2834 = vrcp.f32 %v1617_v29 }
0x1501   :  { %v2835_v49 = vpop.eup %2834 }
0x1502   :  { %v1634_v40 = vsub.f32 1.0, %v2835_v49  ;;  %v1636_v59 = vmul.f32 %v2835_v49, %v3518_v60  ;;  %v1671_v60 = vrot.slane %v1145_v62, 4 }
0x1504   :  { %v3602_v20 = vsel %vm1662_vm10, %v1313_v19, %v1671_v60  ;;  %v1877_v60 = vunpack.c.0.s8 %v1876_v8 }
0x1506   :  { %v1880_v46 = vsub.s32 %v1877_v60, %v3048_v34 }
0x155e   :  { %v1630_v48 = vpop.permute.xlu0 %1629 }
0x1565   :  { %v1591_v53 = vpop.permute.xlu1 %1590 }
0x1566   :  { %v1593_v12 = vmul.f32 %v1591_v53, %v1588_v18  ;;  %v3610_v53 = vsel %vm1662_vm10, %v597_v22, %v1677_v45 }
0x1567   :  { %v1722_v29 = vpack.c.bf16 %v3610_v53, %v3588_v43 }
0x1568   :  { %v1599_v50 = vadd.f32 %v1598_v3, %v1593_v12 }
0x1569   :  { %v1625_v39 = vpop.permute.xlu1 %1624 }
0x156a   :  { %v1626_v56 = vrot.slane %v1625_v39, 4  ;;  %1639 = vrot.lane.b32.xlu1 %v1599_v50, %s2880_s1  ;;  %v1312_v50 = vmul.f32 %v3455_v63, %v3321_v33  ;;  %v1643_v39 = vmul.f32 %v3509_v9, %v3198_v51 }
0x156c   :  { %v1632_v5 = vadd.f32 %v1630_v48, %v1626_v56 }
0x156e   :  { %2836 = vtanh.f32 %v1632_v5  ;;  %v1657_v5 = vrot.slane %v1312_v50, 4 }
0x1578   :  { %v2837_v15 = vpop.eup %2836 }
0x1579   :  { %v1635_v14 = vmul.f32 %v2837_v15, %v1634_v40  ;;  %v1480_v40 = vmul.f32 %v3509_v9, %v3264_v52 }
0x157b   :  { %v1637_v25 = vadd.f32 %v1636_v59, %v1635_v14 }
0x157d   :  { %v1645_v32 = vmul.f32 %v1637_v25, %v3118_v7 }
0x157f   :  { %v1647_v26 = vadd.f32 %v1646_v6, %v1645_v32 }
0x1581   :  { %v1649_v11 = vmul.f32 %v1647_v26, %v3118_v7  ;;  %v3615_v7 = vsel %vm1662_vm10, %v406_v61, %v1651_v28 }
0x1582   :  { %v1719_v3 = vpack.c.bf16 %v3605_v23, %v3615_v7 }
0x1583   :  { %v3599_v10 = vsel %vm1662_vm10, %v1649_v11, %v1668_v57  ;;  %v2883_v11 = vmov 1985246804  }
0x1584   :  { %v1721_v18 = vpack.c.bf16 %v3602_v20, %v3599_v10  ;;  %v1883_v57 = vunpack.c.l.s4 %v2883_v11 }
0x1586   :  { %2652 = vmatprep.mubr.msk.bf16.mxu0 %vm109_vm1, %v1721_v18  ;;  %v1884_v45 = vunpack.c.0.s8 %v1883_v57 }
0x1587   :  { %2653 = vmatmul.mubr.msk.bf16.vlgmr.msra.gmra.mrb[36].mxu0 %vm109_vm1, %v1722_v29 }
0x1588   :  { %2660 = vmatprep.mubr.msk.bf16.mxu0 %vm109_vm1, %v1719_v3  ;;  %2657 = vmatpush3.bf16.msra.mxu0 %v3558_v21  ;;  %v1144_v21 = vmul.f32 %v3405_v4, %v3375_v55  ;;  %v1887_v58 = vsub.s32 %v1884_v45, %v3048_v34 }
0x1589   :  { %2658 = vmatprep.subr.bf16.mxu0 %v1712_v13 }
0x158a   :  { %v3635_v59 = vsel %vm1662_vm10, %v1144_v21, %v1657_v5 }
0x158c   :  { %2659 = vmatpush3.bf16.msra.mxu0 %v1712_v13 }
0x158d   :  { %2680 = vmatprep.subr.bf16.mxu0 %v2876_v0 }
0x15dc   :  { %v1640_v12 = vpop.permute.xlu1 %1639 }
0x15dd   :  { %v1642_v56 = vmul.f32 %v1640_v12, %v3196_v54 }
0x15df   :  { %v1644_v48 = vadd.f32 %v1643_v39, %v1642_v56 }
0x15e1   :  { %v1648_v49 = vmul.f32 %v1644_v48, %v3196_v54  ;;  %v2444_v54 = vld [vmem:[%s3830_s9] ss:$0 sm:$0xff] }
0x15e3   :  { %v1660_v15 = vrot.slane %v1648_v49, 4 }
0x15e5   :  { %v3638_v33 = vsel %vm1662_vm10, %v1480_v40, %v1660_v15 }
0x15e6   :  { %v1720_v51 = vpack.c.bf16 %v3638_v33, %v3635_v59 }
0x15e8   :  { %2661 = vmatmul.mubr.msk.bf16.vlgmr.msra.gmra.mrb[36].mxu0 %vm109_vm1, %v1720_v51 }
0x15e9   :  { %2684 = vmatprep.mubr.msk.bf16.mxu0 %vm2877_vm0, %v2876_v0 }
0x16bb   :  { %v2662_v52 = vpop.f32.mrb[36].mxu0 }
0x16bc   :  { %v1842_v55 = vadd.f32 %v2662_v52, %v2444_v54  ;;  %v1818_v4 = vpop.f32.mrb[37].mxu0 }
0x16bd   :  { %v1840_v63 = vadd.f32 %v2444_v54, %v1818_v4  ;;  %v2663_v9 = vpop.f32.mrb[38].mxu0 }
0x16be   :  { %2838 = vtanh.f32 %v1842_v55  ;;  %v1821_v14 = vpop.f32.mrb[39].mxu0  ;;  %v1843_v38 = vadd.f32 %v2663_v9, %v2444_v54 }
0x16bf   :  { %2840 = vtanh.f32 %v1840_v63  ;;  %v1841_v25 = vadd.f32 %v2444_v54, %v1821_v14 }
0x16c1   :  { %2842 = vtanh.f32 %v1841_v25 }
0x16c2   :  { %2844 = vtanh.f32 %v1843_v38 }
0x16c8   :  { %v2839_v1 = vpop.eup %2838 }
0x16c9   :  { %v2841_v32 = vpop.eup %2840  ;;  %v1857_v16 = vmul.f32 %v2839_v1, %v2445_v17 }
0x16ca   :  { %v1855_v62 = vmul.f32 %v2841_v32, %v2445_v17 }
0x16cb   :  { %v2843_v44 = vpop.eup %2842  ;;  %v1865_v26 = vsel %vm109_vm1, %v1857_v16, 0.0 }
0x16cc   :  { %v1859_v6 = vsel %vm109_vm1, %v1855_v62, 0.0  ;;  %v1856_v35 = vmul.f32 %v2843_v44, %v2445_v17  ;;  %v2845_v24 = vpop.eup %2844 }
0x16cd   :  { %1860 = vadd.xlane.f32.xlu0 %v1859_v6  ;;  %v1858_v28 = vmul.f32 %v2845_v24, %v2445_v17 }
0x16ce   :  { %v1862_v19 = vsel %vm109_vm1, %v1856_v35, 0.0 }
0x16cf   :  { %1863 = vadd.xlane.f32.xlu1 %v1862_v19  ;;  %v1868_v22 = vsel %vm109_vm1, %v1858_v28, 0.0 }
0x16d1   :  { %1866 = vadd.xlane.f32.xlu0 %v1865_v26 }
0x16d5   :  { %1869 = vadd.xlane.f32.xlu0 %v1868_v22 }
0x175a   :  { %v1861_v61 = vpop.xlane.xlu0 %1860 }
0x175b   :  { %v1881_v18 = vrot.slane %v1861_v61, %v1880_v46  ;;  %v1888_v13 = vrot.slane %v1861_v61, %v1887_v58 }
0x175c   :  { %v1864_v29 = vpop.xlane.xlu1 %1863 }
0x175d   :  { %v1895_v12 = vrot.slane %v1864_v29, %v1880_v46  ;;  %v1902_v50 = vrot.slane %v1864_v29, %v1887_v58  ;;  %v1947_v48 = vsel %vm1939_vm11, %v1881_v18, -1e+30  ;;  %v1948_v34 = vsel %vm1940_vm12, %v1888_v13, -1e+30 }
0x175e   :  { %v1867_v3 = vpop.xlane.xlu0 %1866  ;;  %v1956_v4 = vsel %vm1955_vm15, %v1947_v48, -inf  ;;  %v1957_v63 = vsel %vm1955_vm15, %v1948_v34, -inf }
0x175f   :  { %v1909_v39 = vrot.slane %v1867_v3, %v1880_v46  ;;  %v1916_v56 = vrot.slane %v1867_v3, %v1887_v58  ;;  %v1949_v51 = vsel %vm1941_vm2, %v1895_v12, -1e+30  ;;  %v1950_v54 = vsel %vm1942_vm3, %v1902_v50, -1e+30 }
0x1760   :  { %v1958_v17 = vsel %vm1955_vm15, %v1949_v51, -inf  ;;  %v1959_v1 = vsel %vm1955_vm15, %v1950_v54, -inf }
0x1761   :  { %v1951_v5 = vsel %vm1943_vm13, %v1909_v39, -1e+30  ;;  %v1952_v49 = vsel %vm1944_vm14, %v1916_v56, -1e+30 }
0x1762   :  { %v1960_v21 = vsel %vm1955_vm15, %v1951_v5, -inf  ;;  %v1962_v40 = vsel %vm1955_vm15, %v1952_v49, -inf  ;;  %v1870_v15 = vpop.xlane.xlu0 %1869 }
0x1763   :  { %v1923_v52 = vrot.slane %v1870_v15, %v1880_v46  ;;  %v1930_v55 = vrot.slane %v1870_v15, %v1887_v58  ;;  %v1961_v9 = vmax.f32 %v1956_v4, %v1960_v21  ;;  %v1963_v14 = vmax.f32 %v1957_v63, %v1962_v40 }
0x1765   :  { %v1953_v38 = vsel %vm1945_vm4, %v1923_v52, -1e+30  ;;  %v1954_v25 = vsel %vm1946_vm5, %v1930_v55, -1e+30  ;;  %v1968_v35 = vmax.f32 %v1961_v9, %v1963_v14 }
0x1766   :  { %v1964_v32 = vsel %vm1955_vm15, %v1953_v38, -inf  ;;  %v1966_v62 = vsel %vm1955_vm15, %v1954_v25, -inf }
0x1767   :  { %v1965_v44 = vmax.f32 %v1958_v17, %v1964_v32  ;;  %v1967_v6 = vmax.f32 %v1959_v1, %v1966_v62 }
0x1769   :  { %v1969_v16 = vmax.f32 %v1965_v44, %v1967_v6 }
0x176b   :  { %v1970_v24 = vmax.f32 %v1968_v35, %v1969_v16 }
0x176d   :  { %v1971_v19 = vsub.f32 %v1947_v48, %v1970_v24  ;;  %v1972_v26 = vsub.f32 %v1948_v34, %v1970_v24  ;;  %v1973_v28 = vsub.f32 %v1949_v51, %v1970_v24  ;;  %v1974_v22 = vsub.f32 %v1950_v54, %v1970_v24 }
0x176e   :  { %v1975_v27 = vsub.f32 %v1951_v5, %v1970_v24  ;;  %v1976_v11 = vsub.f32 %v1952_v49, %v1970_v24  ;;  %v1977_v45 = vsub.f32 %v1953_v38, %v1970_v24  ;;  %v1978_v61 = vsub.f32 %v1954_v25, %v1970_v24 }
0x176f   :  { %v1979_v8 = vmul.f32 1.442695, %v1971_v19  ;;  %v1981_v57 = vmul.f32 1.442695, %v1972_v26  ;;  %v1983_v60 = vmul.f32 1.442695, %v1973_v28 }
0x1770   :  { %v1985_v46 = vmul.f32 1.442695, %v1974_v22  ;;  %v1987_v58 = vmul.f32 1.442695, %v1975_v27  ;;  %v1989_v18 = vmul.f32 1.442695, %v1976_v11 }
0x1771   :  { %2846 = vpow2.f32 %v1979_v8  ;;  %v1991_v29 = vmul.f32 1.442695, %v1977_v45  ;;  %v1993_v13 = vmul.f32 1.442695, %v1978_v61  ;;  %v2121_v28 = vld [vmem:[%s3832_s11 + $0x20] sm:$0xff]  ;;  %v2122_v22 = vld [vmem:[%s3832_s11 + $0x28] sm:$0xff]  ;;  %v1699_v45 = vcombine.high %v3599_v10, %v3599_v10 }
0x1772   :  { %2848 = vpow2.f32 %v1981_v57  ;;  %v2125_v27 = vpack.c.bf16 %v2122_v22, %v2121_v28  ;;  %v2123_v8 = vld [vmem:[%s3832_s11 + $0x30] sm:$0xff]  ;;  %v2124_v11 = vld [vmem:[%s3832_s11 + $0x38] sm:$0xff]  ;;  %v2115_v28 = vld [vmem:[%s3832_s11] sm:$0xff] }
0x1773   :  { %2850 = vpow2.f32 %v1983_v60  ;;  %v2126_v57 = vpack.c.bf16 %v2124_v11, %v2123_v8  ;;  %v1687_v60 = vcombine.high %v3615_v7, %v3615_v7 }
0x1774   :  { %2852 = vpow2.f32 %v1985_v46  ;;  %2665 = vmatpush3.bf16.msra.mxu1 %v2125_v27 }
0x1775   :  { %2854 = vpow2.f32 %v1987_v58  ;;  %2666 = vmatprep.subr.bf16.mxu1 %v2876_v0 }
0x1776   :  { %2856 = vpow2.f32 %v1989_v18 }
0x1777   :  { %2858 = vpow2.f32 %v1991_v29 }
0x1778   :  { %2860 = vpow2.f32 %v1993_v13  ;;  %2667 = vmatpush3.bf16.msra.mxu1 %v2126_v57 }
0x1779   :  { %2672 = vmatprep.subr.bf16.mxu1 %v2876_v0 }
0x177b   :  { %v2847_v3 = vpop.eup %2846 }
0x177c   :  { %v2849_v12 = vpop.eup %2848  ;;  %v1995_v50 = vmul.f32 %v2847_v3, %v3071_v47 }
0x177d   :  { %v2851_v39 = vpop.eup %2850  ;;  %v1996_v56 = vmul.f32 %v2849_v12, %v3142_v41 }
0x177e   :  { %v2853_v48 = vpop.eup %2852  ;;  %v1997_v34 = vmul.f32 %v2851_v39, %v3225_v30  ;;  %v2003_v5 = vsel %vm1955_vm15, %v1995_v50, 0.0 }
0x177f   :  { %v2855_v49 = vpop.eup %2854  ;;  %v1998_v21 = vmul.f32 %v2853_v48, %v3310_v2  ;;  %v2004_v40 = vsel %vm1955_vm15, %v1996_v56, 0.0 }
0x1780   :  { %v2857_v15 = vpop.eup %2856  ;;  %v2005_v51 = vadd.f32 %v2004_v40, %v2003_v5  ;;  %v1999_v54 = vmul.f32 %v2855_v49, %v3363_v42  ;;  %v2006_v52 = vsel %vm1955_vm15, %v1997_v34, 0.0 }
0x1781   :  { %v2859_v47 = vpop.eup %2858  ;;  %v2000_v41 = vmul.f32 %v2857_v15, %v3304_v37  ;;  %v2008_v4 = vsel %vm1955_vm15, %v1998_v21, 0.0 }
0x1782   :  { %v2007_v55 = vadd.f32 %v2006_v52, %v2005_v51  ;;  %v2861_v30 = vpop.eup %2860  ;;  %v2001_v9 = vmul.f32 %v2859_v47, %v3235_v31  ;;  %v2010_v2 = vsel %vm1955_vm15, %v1999_v54, 0.0 }
0x1783   :  { %v2002_v38 = vmul.f32 %v2861_v30, %v3169_v36  ;;  %v2012_v25 = vsel %vm1955_vm15, %v2000_v41, 0.0 }
0x1784   :  { %v2009_v63 = vadd.f32 %v2008_v4, %v2007_v55  ;;  %v2014_v17 = vsel %vm1955_vm15, %v2001_v9, 0.0 }
0x1785   :  { %v2016_v32 = vsel %vm1955_vm15, %v2002_v38, 0.0 }
0x1786   :  { %v2011_v14 = vadd.f32 %v2010_v2, %v2009_v63 }
0x1788   :  { %v2013_v42 = vadd.f32 %v2012_v25, %v2011_v14 }
0x178a   :  { %v2015_v1 = vadd.f32 %v2014_v17, %v2013_v42 }
0x178c   :  { %v2017_v37 = vadd.f32 %v2016_v32, %v2015_v1 }
0x178e   :  { %v2018_v62 = vadd.f32 1e-30, %v2017_v37 }
0x1790   :  { %2862 = vrcp.f32 %v2018_v62 }
0x179a   :  { %v2863_v44 = vpop.eup %2862 }
0x179b   :  { %v2021_v6 = vmul.f32 %v2863_v44, %v1996_v56  ;;  %v2020_v35 = vmul.f32 %v2863_v44, %v1995_v50  ;;  %v2024_v31 = vmul.f32 %v2863_v44, %v1999_v54  ;;  %v2022_v16 = vmul.f32 %v2863_v44, %v1997_v34 }
0x179c   :  { %v2026_v36 = vmul.f32 %v2863_v44, %v2001_v9  ;;  %v2023_v24 = vmul.f32 %v2863_v44, %v1998_v21  ;;  %v2025_v19 = vmul.f32 %v2863_v44, %v2000_v41  ;;  %v2027_v26 = vmul.f32 %v2863_v44, %v2002_v38 }
0x179d   :  { %2035 = vperm.xlu0 %2709, %v2021_v6   ;;  %2030 = vperm.xlu1 %2708, %v2020_v35   ;;  %v1700_v21 = vcombine.high %v3602_v20, %v3602_v20 }
0x17a1   :  { %2050 = vperm.xlu0 %2709, %v2024_v31   ;;  %2040 = vperm.xlu1 %2708, %v2022_v16  }
0x17a5   :  { %2060 = vperm.xlu0 %2709, %v2026_v36   ;;  %2045 = vperm.xlu1 %2708, %v2023_v24   ;;  %v1690_v36 = vcombine.high %v3638_v33, %v3638_v33 }
0x17a9   :  { %2055 = vperm.xlu1 %2708, %v2025_v19  }
0x17ad   :  { %2065 = vperm.xlu1 %2708, %v2027_v26  }
0x181c   :  { %v2036_v46 = vpop.permute.xlu0 %2035  ;;  %v2031_v58 = vpop.permute.xlu1 %2030 }
0x181d   :  { %v2069_v61 = vmul.f32 %v2036_v46, %v1687_v60  ;;  %v2093_v18 = vmul.f32 %v2036_v46, %v1699_v45  ;;  %v2068_v29 = vmul.f32 %v2031_v58, %v3615_v7  ;;  %v2092_v13 = vmul.f32 %v2031_v58, %v3599_v10  ;;  %v2117_v45 = vld [vmem:[%s3832_s11 + $0x10] sm:$0xff]  ;;  %v2118_v46 = vld [vmem:[%s3832_s11 + $0x18] sm:$0xff] }
0x181e   :  { %v1688_v10 = vcombine.high %v3605_v23, %v3605_v23 }
0x181f   :  { %v2078_v3 = vsel %vm2076_vm6, %v2069_v61, 0.0  ;;  %v2101_v12 = vsel %vm2076_vm6, %v2093_v18, 0.0  ;;  %v2077_v56 = vsel %vm2076_vm6, %v2068_v29, 0.0  ;;  %v2100_v48 = vsel %vm2076_vm6, %v2092_v13, 0.0 }
0x1820   :  { %v2051_v50 = vpop.permute.xlu0 %2050  ;;  %v2041_v39 = vpop.permute.xlu1 %2040  ;;  %v2079_v40 = vadd.f32 %v2078_v3, %v2077_v56  ;;  %v2102_v15 = vadd.f32 %v2101_v12, %v2100_v48  ;;  %v2120_v61 = vpack.c.bf16 %v2118_v46, %v2117_v45  ;;  %v2448_v56 = vld [vmem:[%s3833_s12] ss:$0 sm:$0xff] }
0x1821   :  { %v2070_v34 = vmul.f32 %v2041_v39, %v3605_v23  ;;  %v2094_v5 = vmul.f32 %v2041_v39, %v3602_v20  ;;  %v2072_v51 = vmul.f32 %v2051_v50, %v3635_v59  ;;  %v2096_v52 = vmul.f32 %v2051_v50, %v3588_v43 }
0x1822   :  { %v1689_v23 = vcombine.high %v3635_v59, %v3635_v59  ;;  %v1701_v20 = vcombine.high %v3588_v43, %v3588_v43  ;;  %v1702_v43 = vcombine.high %v3610_v53, %v3610_v53 }
0x1823   :  { %v2080_v49 = vsel %vm2076_vm6, %v2070_v34, 0.0  ;;  %v2103_v7 = vsel %vm2076_vm6, %v2094_v5, 0.0  ;;  %v2084_v2 = vsel %vm2076_vm6, %v2072_v51, 0.0  ;;  %v2107_v42 = vsel %vm2076_vm6, %v2096_v52, 0.0  ;;  %v2277_v51 = vld [vmem:[%s3835_s14 + $0x20] sm:$0xff] }
0x1824   :  { %v2046_v54 = vpop.permute.xlu1 %2045  ;;  %v2081_v41 = vadd.f32 %v2080_v49, %v2079_v40  ;;  %v2104_v4 = vadd.f32 %v2103_v7, %v2102_v15  ;;  %v2061_v30 = vpop.permute.xlu0 %2060  ;;  %v2271_v52 = vld [vmem:[%s3835_s14] sm:$0xff] }
0x1825   :  { %v2071_v47 = vmul.f32 %v2046_v54, %v1688_v10  ;;  %v2095_v55 = vmul.f32 %v2046_v54, %v1700_v21  ;;  %v2098_v17 = vmul.f32 %v2061_v30, %v3610_v53  ;;  %v2074_v31 = vmul.f32 %v2061_v30, %v3638_v33  ;;  %v2116_v53 = vld [vmem:[%s3832_s11 + $0x8] sm:$0xff]  ;;  %v2449_v10 = vld [vmem:[%s3834_s13] ss:$0 sm:$0xff] }
0x1826   :  { %v2119_v57 = vpack.c.bf16 %v2116_v53, %v2115_v28  ;;  %v2278_v54 = vld [vmem:[%s3835_s14 + $0x28] sm:$0xff] }
0x1827   :  { %v2082_v63 = vsel %vm2076_vm6, %v2071_v47, 0.0  ;;  %v2105_v9 = vsel %vm2076_vm6, %v2095_v55, 0.0  ;;  %v2111_v16 = vsel %vm2076_vm6, %v2098_v17, 0.0  ;;  %v2088_v11 = vsel %vm2076_vm6, %v2074_v31, 0.0  ;;  %v2272_v55 = vld [vmem:[%s3835_s14 + $0x8] sm:$0xff] }
0x1828   :  { %v2083_v14 = vadd.f32 %v2082_v63, %v2081_v41  ;;  %v2106_v38 = vadd.f32 %v2105_v9, %v2104_v4  ;;  %v2056_v25 = vpop.permute.xlu1 %2055  ;;  %v2281_v47 = vpack.c.bf16 %v2278_v54, %v2277_v51  ;;  %v2279_v41 = vld [vmem:[%s3835_s14 + $0x30] sm:$0xff]  ;;  %v2280_v4 = vld [vmem:[%s3835_s14 + $0x38] sm:$0xff]  ;;  %v2275_v30 = vpack.c.bf16 %v2272_v55, %v2271_v52 }
0x1829   :  { %v2073_v1 = vmul.f32 %v2056_v25, %v1689_v23  ;;  %v2097_v32 = vmul.f32 %v2056_v25, %v1701_v20  ;;  %v2273_v63 = vld [vmem:[%s3835_s14 + $0x10] sm:$0xff]  ;;  %v2274_v9 = vld [vmem:[%s3835_s14 + $0x18] sm:$0xff]  ;;  %v2282_v23 = vpack.c.bf16 %v2280_v4, %v2279_v41 }
0x182a   :  { %v2085_v37 = vadd.f32 %v2084_v2, %v2083_v14  ;;  %v2108_v62 = vadd.f32 %v2107_v42, %v2106_v38  ;;  %2681 = vmatpush3.bf16.msra.mxu0 %v2281_v47  ;;  %v2276_v20 = vpack.c.bf16 %v2274_v9, %v2273_v63 }
0x182b   :  { %v2086_v44 = vsel %vm2076_vm6, %v2073_v1, 0.0  ;;  %v2109_v59 = vsel %vm2076_vm6, %v2097_v32, 0.0  ;;  %2682 = vmatprep.subr.bf16.mxu0 %v2876_v0 }
0x182c   :  { %v2110_v6 = vadd.f32 %v2109_v59, %v2108_v62  ;;  %v2066_v35 = vpop.permute.xlu1 %2065  ;;  %v2087_v19 = vadd.f32 %v2086_v44, %v2085_v37 }
0x182d   :  { %v2099_v24 = vmul.f32 %v2066_v35, %v1702_v43  ;;  %v2075_v22 = vmul.f32 %v2066_v35, %v1690_v36 }
0x182e   :  { %v2112_v26 = vadd.f32 %v2111_v16, %v2110_v6  ;;  %v2089_v33 = vadd.f32 %v2088_v11, %v2087_v19  ;;  %2683 = vmatpush3.bf16.msra.mxu0 %v2282_v23 }
0x182f   :  { %v2113_v27 = vsel %vm2076_vm6, %v2099_v24, 0.0  ;;  %v2090_v58 = vsel %vm2076_vm6, %v2075_v22, 0.0 }
0x1830   :  { %v3747_v8 = vadd.f32 %v2113_v27, %v2112_v26  ;;  %v3762_v18 = vadd.f32 %v2090_v58, %v2089_v33 }
0x1832   :  { %v2128_v60 = vpack.c.bf16 %v3747_v8, %v3747_v8  ;;  %v2127_v29 = vpack.c.bf16 %v3762_v18, %v3762_v18 }
0x1834   :  { %2669 = vmatmul.mubr.msk.bf16.vlgmr.msra.gmra.mrb[36].mxu1 %vm109_vm1, %v2128_v60 }
0x1835   :  { %2673 = vmatpush3.bf16.msra.mxu1 %v2119_v57  ;;  %2676 = vmatprep.mubr.msk.bf16.mxu1 %vm2877_vm0, %v2876_v0 }
0x1836   :  { %2674 = vmatprep.subr.bf16.mxu1 %v2876_v0 }
0x1839   :  { %2675 = vmatpush3.bf16.msra.mxu1 %v2120_v61 }
0x183a   :  { %2688 = vmatprep.subr.bf16.mxu1 %v2876_v0 }
0x183c   :  { %2677 = vmatmul.mubr.msk.bf16.vlgmr.msra.gmra.mrb[40].mxu1 %vm109_vm1, %v2127_v29 }
0x183d   :  { %2692 = vmatprep.mubr.msk.bf16.mxu1 %vm2877_vm0, %v2876_v0  ;;  %2689 = vmatpush3.bf16.msra.mxu1 %v2275_v30  ;;  %vm2373_vm0 = vcmask 8192  }
0x183e   :  { %2690 = vmatprep.subr.bf16.mxu1 %v2876_v0 }
0x1841   :  { %2691 = vmatpush3.bf16.msra.mxu1 %v2276_v20 }
0x1907   :  { %v2166_v13 = vpop.f32.mrb[36].mxu1 }
0x1908   :  { %v2670_v3 = vpop.f32.mrb[37].mxu1 }
0x1909   :  { %v2169_v12 = vpop.f32.mrb[38].mxu1 }
0x190a   :  { %v2671_v50 = vpop.f32.mrb[39].mxu1 }
0x190f   :  { %v2209_v39 = vpop.f32.mrb[40].mxu1 }
0x1910   :  { %v2210_v48 = vadd.f32 %v2209_v39, %v2166_v13  ;;  %v2678_v34 = vpop.f32.mrb[41].mxu1  ;;  %v2371_v39 = vld [vmem:[%s3836_s15] sm:$0x1] }
0x1911   :  { %v2212_v5 = vpop.f32.mrb[42].mxu1 }
0x1912   :  { %v2222_v49 = vadd.f32 %v2448_v56, %v2210_v48  ;;  %v2679_v7 = vpop.f32.mrb[43].mxu1 }
0x1914   :  { %2864 = vtanh.f32 %v2222_v49 }
0x191e   :  { %v2865_v21 = vpop.eup %2864 }
0x191f   :  { %v2231_v40 = vmul.f32 %v2865_v21, %v2449_v10 }
0x1921   :  { %v2232_v15 = vsel %vm2076_vm6, %v2231_v40, 0.0 }
0x1922   :  { %2233 = vadd.xlane.f32.xlu0 %v2232_v15 }
0x19af   :  { %v2234_v2 = vpop.xlane.xlu0 %2233 }
0x19b0   :  { %v2235_v14 = vsel %vm1662_vm10, %v2234_v2, -inf }
0x19b1   :  { %v2236_v38 = vrot.slane %v2235_v14, 4 }
0x19b3   :  { %v2237_v25 = vmax.f32 %v2235_v14, %v2236_v38 }
0x19b5   :  { %v2238_v42 = vrot.slane %v2237_v25, 2 }
0x19b7   :  { %v2239_v17 = vmax.f32 %v2237_v25, %v2238_v42 }
0x19b9   :  { %v2240_v1 = vrot.slane %v2239_v17, 1 }
0x19bb   :  { %v2241_v32 = vmax.f32 %v2239_v17, %v2240_v1 }
0x19bd   :  { %v2242_v37 = vsub.f32 %v2234_v2, %v2241_v32 }
0x19bf   :  { %v2243_v62 = vmul.f32 1.442695, %v2242_v37 }
0x19c1   :  { %2866 = vpow2.f32 %v2243_v62 }
0x19cb   :  { %v2867_v44 = vpop.eup %2866 }
0x19cc   :  { %v2245_v59 = vsel %vm1662_vm10, %v2867_v44, 0.0 }
0x19cd   :  { %v2246_v43 = vrot.slane %v2245_v59, 4 }
0x19cf   :  { %v2247_v6 = vadd.f32 %v2246_v43, %v2245_v59 }
0x19d1   :  { %v2248_v0 = vrot.slane %v2247_v6, 2 }
0x19d3   :  { %v2249_v35 = vadd.f32 %v2248_v0, %v2247_v6 }
0x19d5   :  { %v2250_v31 = vrot.slane %v2249_v35, 1 }
0x19d7   :  { %v2251_v16 = vadd.f32 %v2250_v31, %v2249_v35 }
0x19d9   :  { %v2252_v36 = vadd.f32 1e-30, %v2251_v16 }
0x19db   :  { %2868 = vrcp.f32 %v2252_v36 }
0x19e5   :  { %v2869_v24 = vpop.eup %2868 }
0x19e6   :  { %v2254_v19 = vmul.f32 %v2869_v24, %v2867_v44 }
0x19e8   :  { %v2255_v26 = vmul.f32 %v2254_v19, %v3762_v18  ;;  %v2263_v28 = vmul.f32 %v2254_v19, %v3747_v8 }
0x19ea   :  { %v2264_v53 = vsel %vm2076_vm6, %v2263_v28, 0.0  ;;  %v2256_v22 = vsel %vm2076_vm6, %v2255_v26, 0.0 }
0x19eb   :  { %v2265_v27 = vrot.slane %v2264_v53, 4  ;;  %v2257_v11 = vrot.slane %v2256_v22, 4 }
0x19ed   :  { %v2266_v57 = vadd.f32 %v2265_v27, %v2264_v53  ;;  %v2258_v33 = vadd.f32 %v2257_v11, %v2256_v22 }
0x19ef   :  { %v2267_v60 = vrot.slane %v2266_v57, 2  ;;  %v2259_v45 = vrot.slane %v2258_v33, 2 }
0x19f1   :  { %v2268_v46 = vadd.f32 %v2267_v60, %v2266_v57  ;;  %v2260_v58 = vadd.f32 %v2259_v45, %v2258_v33 }
0x19f3   :  { %v2269_v61 = vrot.slane %v2268_v46, 1  ;;  %v2261_v29 = vrot.slane %v2260_v58, 1 }
0x19f5   :  { %v2270_v13 = vadd.f32 %v2269_v61, %v2268_v46  ;;  %v2262_v3 = vadd.f32 %v2261_v29, %v2260_v58 }
0x19f7   :  { %v2284_v12 = vpack.c.bf16 %v2270_v13, %v2270_v13  ;;  %v2283_v18 = vpack.c.bf16 %v2262_v3, %v2262_v3 }
0x19f9   :  { %2685 = vmatmul.mubr.msk.bf16.vlgmr.msra.gmra.mrb[40].mxu0 %vm109_vm1, %v2284_v12  ;;  %2693 = vmatmul.mubr.msk.bf16.vlgmr.msra.gmra.mrb[44].mxu1 %vm109_vm1, %v2283_v18 }
0x1acc   :  { %v2322_v8 = vpop.f32.mrb[40].mxu0  ;;  %v2365_v50 = vpop.f32.mrb[44].mxu1 }
0x1acd   :  { %v2366_v56 = vadd.f32 %v2365_v50, %v2322_v8  ;;  %v2686_v48 = vpop.f32.mrb[41].mxu0  ;;  %v2694_v34 = vpop.f32.mrb[45].mxu1 }
0x1ace   :  { %v2325_v5 = vpop.f32.mrb[42].mxu0  ;;  %v2368_v49 = vpop.f32.mrb[46].mxu1 }
0x1acf   :  { %v2372_v7 = vadd.f32 %v2371_v39, %v2366_v56  ;;  %v2687_v10 = vpop.f32.mrb[43].mxu0  ;;  %v2695_v21 = vpop.f32.mrb[47].mxu1 }
0x1ad1   :  { %v2374_v40 = vsel %vm2373_vm0, %v2372_v7, -inf }
0x1ad2   :  { %2375 = vmax.xlane.f32.xlu1 %v2374_v40 }
0x1b5f   :  { %v2376_v15 = vpop.xlane.xlu1 %2375 }
0x1b60   :  { %v2377_v51 = vsub.f32 %v2372_v7, %v2376_v15 }
0x1b62   :  { %v2378_v54 = vmul.f32 1.442695, %v2377_v51 }
0x1b64   :  { %2870 = vpow2.f32 %v2378_v54 }
0x1b6e   :  { %v2871_v52 = vpop.eup %2870 }
0x1b6f   :  { %v2380_v47 = vsel %vm2373_vm0, %v2871_v52, 0.0 }
0x1b70   :  { %2381 = vadd.xlane.f32.xlu0 %v2380_v47 }
0x1bfd   :  { %v2382_v55 = vpop.xlane.xlu0 %2381 }
0x1bfe   :  { %2872 = vrcp.f32 %v2382_v55 }
0x1c08   :  { %v2873_v41 = vpop.eup %2872 }
0x1c09   :  { %v2384_v4 = vmul.f32 %v2873_v41, %v2871_v52 }
0x1c0b   :  { %2385 = vst.msk [vmem:[%s3837_s16] sm:$0x1] %vm2373_vm0, %v2384_v4 }

</bundles_post_ra>
